<compile_context>
chip_gen: v7x
topology: tpu7x:2x2x1
jax: 0.10.0
libtpu: 0.0.40
codegen_flags: <defaults>
</compile_context>

<pallas_src>
import math

import jax
import jax.numpy as jnp
from jax.experimental import pallas as pl
from jax.experimental.pallas import tpu as pltpu


def _round_up(x: int, m: int) -> int:
    return (x + m - 1) // m * m


def make_siren_kernel(num_linear: int):
    """Kernel body closed over the (static) number of Linear layers.

    refs = (w_0, b_0, w_1, b_1, ..., w_{L-1}, b_{L-1}, out_ref)
      x_ref : [in_features, block_m]      (batch on lanes)
      w_i   : [out_i, in_i]               (PyTorch nn.Linear layout, w0-folded)
      b_i   : [out_i, 1]                  (w0-folded)
      out   : [out_features, block_m]
    """

    def kernel(x_ref, *refs):
        out_ref = refs[-1]
        h = x_ref[...]                                   # [in, block_m] f32
        for i in range(num_linear):
            w = refs[2 * i][...]                         # [out_i, in_i]
            b = refs[2 * i + 1][...]                     # [out_i, 1]
            h = jnp.dot(w, h, preferred_element_type=jnp.float32) + b
            if i < num_linear - 1:
                h = jnp.sin(h)                           # scale already folded in
        out_ref[...] = h.astype(out_ref.dtype)

    return kernel


def siren_forward(x, weights, biases, *, w0_initial, w0, block_m=1024):
    """Run the SIREN MLP forward pass with one Pallas kernel.

    x:        [N, in_features] float32
    weights:  list of [out_i, in_i] arrays (PyTorch nn.Linear layout)
    biases:   list of [out_i] arrays
    returns:  [N, out_features] float32
    """
    N, in_features = x.shape
    num_linear = len(weights)
    out_features = weights[-1].shape[0]

    # Fold the w0 activation scale into the preceding layer's params:
    #   sin(w0 * (W h + b)) == sin((w0 W) h + (w0 b))
    w_list, b_list = [], []
    for i, (w, b) in enumerate(zip(weights, biases)):
        scale = 1.0 if i == num_linear - 1 else (w0_initial if i == 0 else w0)
        w_list.append((scale * w).astype(jnp.float32))
        b_list.append((scale * b).astype(jnp.float32).reshape(-1, 1))

    # Batch on lanes: work on x^T = [in_features, N]; tile the lane (batch) dim.
    # block_m is a multiple of 256 (MXU/lane alignment); pad N up to it.
    block_m = max(256, min(block_m, _round_up(N, 256)))
    n_pad = _round_up(N, block_m)
    xt = jnp.zeros((in_features, n_pad), jnp.float32).at[:, :N].set(x.T)

    in_specs = [pl.BlockSpec((in_features, block_m), lambda i: (0, i))]
    flat_params = []
    for w, b in zip(w_list, b_list):
        # Full (un-tiled) blocks with constant index_map -> hoisted, tiny DMAs.
        in_specs.append(pl.BlockSpec(w.shape, lambda i: (0, 0)))
        in_specs.append(pl.BlockSpec(b.shape, lambda i: (0, 0)))
        flat_params.extend((w, b))

    out_spec = pl.BlockSpec((out_features, block_m), lambda i: (0, i))

    hidden = [w.shape[0] for w in weights[:-1]]
    cost = pl.CostEstimate(
        flops=2 * n_pad * sum(w.shape[0] * w.shape[1] for w in weights),
        transcendentals=n_pad * sum(hidden),
        bytes_accessed=4 * (n_pad * (in_features + out_features)
                            + sum(w.size + b.size
                                  for w, b in zip(weights, biases))),
    )

    out_t = pl.pallas_call(
        make_siren_kernel(num_linear),
        out_shape=jax.ShapeDtypeStruct((out_features, n_pad), jnp.float32),
        grid_spec=pltpu.PrefetchScalarGridSpec(
            num_scalar_prefetch=0,
            grid=(n_pad // block_m,),
            in_specs=in_specs,
            out_specs=out_spec,
        ),
        compiler_params=pltpu.CompilerParams(
            dimension_semantics=("parallel",),
            # Explicit (generous but safe on v5e/v6e/v7x); actual usage is
            # only a few MiB even at block_m=2048.
            vmem_limit_bytes=32 * 1024 * 1024,
        ),
        cost_estimate=cost,
    )(xt, *flat_params)

    return out_t[:, :N].T


def init_siren_params(key, layers, in_features, out_features, c=6.0):
    """Deterministic SIREN init (mirrors siren_uniform_ for weights and
    PyTorch's default Linear bias init).  Weights in PyTorch [out, in] layout."""
    dims = [in_features] + list(layers) + [out_features]
    weights, biases = [], []
    for i in range(len(dims) - 1):
        fan_in, fan_out = dims[i], dims[i + 1]
        key, kw, kb = jax.random.split(key, 3)
        w_bound = math.sqrt(c) / math.sqrt(fan_in)   # siren_uniform_ (fan_in mode)
        b_bound = 1.0 / math.sqrt(fan_in)            # nn.Linear default bias init
        w = jax.random.uniform(kw, (fan_out, fan_in), jnp.float32,
                               minval=-w_bound, maxval=w_bound)
        b = jax.random.uniform(kb, (fan_out,), jnp.float32,
                               minval=-b_bound, maxval=b_bound)
        weights.append(w)
        biases.append(b)
    return weights, biases


def siren_reference(x, weights, biases, *, w0_initial, w0):
    """Pure-JAX reference (matches the PyTorch module exactly)."""
    h = x
    n = len(weights)
    for i, (w, b) in enumerate(zip(weights, biases)):
        h = h @ w.T + b
        if i < n - 1:
            h = jnp.sin((w0_initial if i == 0 else w0) * h)
    return h


if __name__ == "__main__":
    # Small SIREN: in_features=2 (e.g. (x,y) coords), hidden layers [32, 32],
    # out_features=3 (e.g. RGB), w0_initial=30, w0=1.
    layers = [32, 32]
    in_features = 2
    out_features = 3
    w0_initial = 30.0
    w0 = 1.0

    key = jax.random.PRNGKey(0)
    key, kx = jax.random.split(key)
    N = 300  # deliberately not a multiple of 256 to exercise the padding path
    x = jax.random.uniform(kx, (N, in_features), jnp.float32,
                           minval=-1.0, maxval=1.0)

    weights, biases = init_siren_params(key, layers, in_features,
                                        out_features, c=6.0)

    out = siren_forward(x, weights, biases,
                        w0_initial=w0_initial, w0=w0, block_m=1024)
    out = jax.block_until_ready(out)

    ref = siren_reference(x, weights, biases, w0_initial=w0_initial, w0=w0)
    assert out.shape == (N, out_features)
    assert jnp.allclose(out, ref, atol=1e-4, rtol=1e-4), "mismatch vs reference"

    print("KERNEL_OK")
</pallas_src>

<mosaic_0001>
module attributes {stable_mosaic.version = 11 : i64} {
  func.func @kernel(%arg0: i32, %arg1: memref<2x512xf32, #tpu.memory_space<vmem>>, %arg2: memref<32x2xf32, #tpu.memory_space<vmem>>, %arg3: memref<32x1xf32, #tpu.memory_space<vmem>>, %arg4: memref<32x32xf32, #tpu.memory_space<vmem>>, %arg5: memref<32x1xf32, #tpu.memory_space<vmem>>, %arg6: memref<3x32xf32, #tpu.memory_space<vmem>>, %arg7: memref<3x1xf32, #tpu.memory_space<vmem>>, %arg8: memref<3x512xf32, #tpu.memory_space<vmem>>) attributes {dimension_semantics = [#tpu.dimension_semantics<parallel>], iteration_bounds = array<i64: 1>, scalar_prefetch = 0 : i64, scratch_operands = 0 : i64, tpu.core_type = #tpu.core_type<tc>, window_params = [{transform_indices = @transform_0, window_bounds = array<i64: 2, 512>}, {pipeline_mode = #tpu.pipeline_mode<synchronous>, transform_indices = @transform_1, window_bounds = array<i64: 32, 2>}, {pipeline_mode = #tpu.pipeline_mode<synchronous>, transform_indices = @transform_2, window_bounds = array<i64: 32, 1>}, {pipeline_mode = #tpu.pipeline_mode<synchronous>, transform_indices = @transform_3, window_bounds = array<i64: 32, 32>}, {pipeline_mode = #tpu.pipeline_mode<synchronous>, transform_indices = @transform_4, window_bounds = array<i64: 32, 1>}, {pipeline_mode = #tpu.pipeline_mode<synchronous>, transform_indices = @transform_5, window_bounds = array<i64: 3, 32>}, {pipeline_mode = #tpu.pipeline_mode<synchronous>, transform_indices = @transform_6, window_bounds = array<i64: 3, 1>}, {transform_indices = @transform_7, window_bounds = array<i64: 3, 512>}]} {
    %c0 = arith.constant 0 : index
    %c0_0 = arith.constant 0 : index
    %0 = vector.load %arg1[%c0, %c0_0] : memref<2x512xf32, #tpu.memory_space<vmem>>, vector<2x512xf32>
    %c0_1 = arith.constant 0 : index
    %c0_2 = arith.constant 0 : index
    %1 = vector.load %arg2[%c0_1, %c0_2] : memref<32x2xf32, #tpu.memory_space<vmem>>, vector<32x2xf32>
    %c0_3 = arith.constant 0 : index
    %c0_4 = arith.constant 0 : index
    %2 = vector.load %arg3[%c0_3, %c0_4] : memref<32x1xf32, #tpu.memory_space<vmem>>, vector<32x1xf32>
    %cst = arith.constant dense<0.000000e+00> : vector<32x512xf32>
    %3 = tpu.matmul %1, %0, %cst {dimension_numbers = #tpu.dot_dimension_numbers<[1], [0], [0], [1], [0, 0, 1, 1], [], []>} : vector<32x2xf32>, vector<2x512xf32>, vector<32x512xf32> -> vector<32x512xf32>
    %4 = vector.broadcast %2 : vector<32x1xf32> to vector<32x512xf32>
    %5 = arith.addf %3, %4 : vector<32x512xf32>
    %6 = math.sin %5 : vector<32x512xf32>
    %c0_5 = arith.constant 0 : index
    %c0_6 = arith.constant 0 : index
    %7 = vector.load %arg4[%c0_5, %c0_6] : memref<32x32xf32, #tpu.memory_space<vmem>>, vector<32x32xf32>
    %c0_7 = arith.constant 0 : index
    %c0_8 = arith.constant 0 : index
    %8 = vector.load %arg5[%c0_7, %c0_8] : memref<32x1xf32, #tpu.memory_space<vmem>>, vector<32x1xf32>
    %cst_9 = arith.constant dense<0.000000e+00> : vector<32x512xf32>
    %9 = tpu.matmul %7, %6, %cst_9 {dimension_numbers = #tpu.dot_dimension_numbers<[1], [0], [0], [1], [0, 0, 1, 1], [], []>} : vector<32x32xf32>, vector<32x512xf32>, vector<32x512xf32> -> vector<32x512xf32>
    %10 = vector.broadcast %8 : vector<32x1xf32> to vector<32x512xf32>
    %11 = arith.addf %9, %10 : vector<32x512xf32>
    %12 = math.sin %11 : vector<32x512xf32>
    %c0_10 = arith.constant 0 : index
    %c0_11 = arith.constant 0 : index
    %13 = vector.load %arg6[%c0_10, %c0_11] : memref<3x32xf32, #tpu.memory_space<vmem>>, vector<3x32xf32>
    %c0_12 = arith.constant 0 : index
    %c0_13 = arith.constant 0 : index
    %14 = vector.load %arg7[%c0_12, %c0_13] : memref<3x1xf32, #tpu.memory_space<vmem>>, vector<3x1xf32>
    %cst_14 = arith.constant dense<0.000000e+00> : vector<3x512xf32>
    %15 = tpu.matmul %13, %12, %cst_14 {dimension_numbers = #tpu.dot_dimension_numbers<[1], [0], [0], [1], [0, 0, 1, 1], [], []>} : vector<3x32xf32>, vector<32x512xf32>, vector<3x512xf32> -> vector<3x512xf32>
    %16 = vector.broadcast %14 : vector<3x1xf32> to vector<3x512xf32>
    %17 = arith.addf %15, %16 : vector<3x512xf32>
    %c0_15 = arith.constant 0 : index
    %c0_16 = arith.constant 0 : index
    %18 = vector.load %arg8[%c0_15, %c0_16] : memref<3x512xf32, #tpu.memory_space<vmem>>, vector<3x512xf32>
    tpu.vector_store %arg8[%c0_15, %c0_16], %17 {strides = array<i32>} : memref<3x512xf32, #tpu.memory_space<vmem>>, vector<3x512xf32>,
    return
  }
  func.func @transform_0(%arg0: i32) -> (i32, i32) {
    %c0_i32 = arith.constant 0 : i32
    %c0_i32_0 = arith.constant 0 : i32
    return %c0_i32, %arg0 : i32, i32
  }
  func.func @transform_1(%arg0: i32) -> (i32, i32) {
    %c0_i32 = arith.constant 0 : i32
    %c0_i32_0 = arith.constant 0 : i32
    %c0_i32_1 = arith.constant 0 : i32
    return %c0_i32, %c0_i32_0 : i32, i32
  }
  func.func @transform_2(%arg0: i32) -> (i32, i32) {
    %c0_i32 = arith.constant 0 : i32
    %c0_i32_0 = arith.constant 0 : i32
    %c0_i32_1 = arith.constant 0 : i32
    return %c0_i32, %c0_i32_0 : i32, i32
  }
  func.func @transform_3(%arg0: i32) -> (i32, i32) {
    %c0_i32 = arith.constant 0 : i32
    %c0_i32_0 = arith.constant 0 : i32
    %c0_i32_1 = arith.constant 0 : i32
    return %c0_i32, %c0_i32_0 : i32, i32
  }
  func.func @transform_4(%arg0: i32) -> (i32, i32) {
    %c0_i32 = arith.constant 0 : i32
    %c0_i32_0 = arith.constant 0 : i32
    %c0_i32_1 = arith.constant 0 : i32
    return %c0_i32, %c0_i32_0 : i32, i32
  }
  func.func @transform_5(%arg0: i32) -> (i32, i32) {
    %c0_i32 = arith.constant 0 : i32
    %c0_i32_0 = arith.constant 0 : i32
    %c0_i32_1 = arith.constant 0 : i32
    return %c0_i32, %c0_i32_0 : i32, i32
  }
  func.func @transform_6(%arg0: i32) -> (i32, i32) {
    %c0_i32 = arith.constant 0 : i32
    %c0_i32_0 = arith.constant 0 : i32
    %c0_i32_1 = arith.constant 0 : i32
    return %c0_i32, %c0_i32_0 : i32, i32
  }
  func.func @transform_7(%arg0: i32) -> (i32, i32) {
    %c0_i32 = arith.constant 0 : i32
    %c0_i32_0 = arith.constant 0 : i32
    return %c0_i32, %arg0 : i32, i32
  }
}

</mosaic_0001>

<bundles_post_ra>
// kernel: tpu_custom_call.1
= control target key start
LH: loop header
LB: loop body
LE: loop exit
PB: predicated region body
PF: predicated region fallthrough
CT: control target
= control target key end

     0   :  { %v61_v1 = vlaneseq  ;;  %v4472_v2 = vmov 1983009808   ;;  %v7554_v4 = vmov 0.0   ;;  %v4474_v6 = vmov 0   ;;  %s7546_s0 = inlined_call_operand.vmem [shape: f32[2,512], index: 0, kind: input, shape index: {}]   ;;  %s7547_s1 = inlined_call_operand.vmem [shape: f32[32,2], index: 1, kind: input, shape index: {}]   ;;  %s7548_s2 = inlined_call_operand.vmem [shape: f32[32,1], index: 2, kind: input, shape index: {}]   ;;  %s7549_s3 = inlined_call_operand.vmem [shape: f32[32,32], index: 3, kind: input, shape index: {}]   ;;  %s7550_s4 = inlined_call_operand.vmem [shape: f32[32,1], index: 4, kind: input, shape index: {}]   ;;  %s7551_s5 = inlined_call_operand.vmem [shape: f32[3,32], index: 5, kind: input, shape index: {}]   ;;  %s7552_s6 = inlined_call_operand.vmem [shape: f32[3,1], index: 6, kind: input, shape index: {}]   ;;  %s7553_s7 = inlined_call_operand.hbm [shape: f32[3,512], index: 7, kind: output, shape index: {}]  }
   0x1   :  { %v27_v0 = vld [vmem:[%s7546_s0] sm:$0xff]  ;;  %v59_v3 = vunpack.c.l.s4 %v4472_v2  ;;  %160 = vmatprep.mubr.f32.mxu0 %v7554_v4  ;;  %249 = vmatprep.mubr.f32.mxu1 %v7554_v4  ;;  %v34_v10 = vld [vmem:[%s7548_s2 + $0x10] sm:$0xff]  ;;  %v33_v11 = vld [vmem:[%s7548_s2 + $0x8] sm:$0xff] }
   0x2   :  { %v62_v5 = vshrl.u32 %v61_v1, 7  ;;  %4317 = vset.pattern.permute.xlu0 %v4474_v6  ;;  %v32_v7 = vld [vmem:[%s7548_s2] sm:$0xff]  ;;  %4318 = vset.pattern.permute.xlu1 %v4474_v6  ;;  %v57_v9 = vcombine.high %v27_v0, %v27_v0  ;;  %v35_v13 = vld [vmem:[%s7548_s2 + $0x18] sm:$0xff] }
   0x3   :  { %v60_v8 = vunpack.c.0.s8 %v59_v3  ;;  %38 = vperm.xlu0 %4317, %v32_v7   ;;  %48 = vperm.xlu1 %4318, %v34_v10  }
   0x5   :  { %v63_v12 = vsub.s32 %v60_v8, %v62_v5 }
   0x6   :  { %12 = vsyncpa [#allocation3], 0  ;;  %vm87_vm0 = vcmask 1041408   ;;  %v28_v18 = vld [vmem:[%s7547_s1] sm:$0xff]  ;;  %vm74_vm1 = vcmask 15360   ;;  %v1943_v20 = vld [vmem:[%s7550_s4 + $0x8] sm:$0xff] }
   0x7   :  { %v64_v14 = vrot.slane %v27_v0, %v63_v12  ;;  %v71_v15 = vrot.slane %v57_v9, %v63_v12  ;;  %43 = vperm.xlu0 %4317, %v33_v11   ;;  %53 = vperm.xlu1 %4318, %v35_v13   ;;  %v1942_v19 = vld [vmem:[%s7550_s4] sm:$0xff]  ;;  %v29_v21 = vld [vmem:[%s7547_s1 + $0x8] sm:$0xff]  ;;  %v1944_v22 = vld [vmem:[%s7550_s4 + $0x10] sm:$0xff]  ;;  %v7573_v3 = vmov 683565275  }
   0x8   :  { %v1945_v23 = vld [vmem:[%s7550_s4 + $0x18] sm:$0xff]  ;;  %v30_v24 = vld [vmem:[%s7547_s1 + $0x10] sm:$0xff]  ;;  %v3822_v25 = vld [vmem:[%s7552_s6] sm:$0x7]  ;;  %v7568_v8 = vmov 2475754826  }
   0x9   :  { %v72_v16 = vcombine.high %v64_v14, %v64_v14  ;;  %v73_v17 = vcombine.high %v71_v15, %v71_v15  ;;  %v31_v26 = vld [vmem:[%s7547_s1 + $0x18] sm:$0xff]  ;;  %v7566_v10 = vmov 2131351028   ;;  %v7564_v12 = vmov 2102212464  }
   0xb   :  { %3997 = vmatprep.subr.msk.mxu0 %vm87_vm0, %v72_v16  ;;  %4003 = vmatprep.subr.msk.mxu1 %vm87_vm0, %v73_v17 }
   0xc   :  { %3998 = vmatpush1.msk.msra.mxu0 %vm87_vm0, %v64_v14  ;;  %4004 = vmatpush1.msk.msra.mxu1 %vm87_vm0, %v71_v15  ;;  %v7561_v14 = vmov 920167782  }
   0xd   :  { %3999 = vmatmul.mubr.msk.f32.vlgmr.msra.gmra.mrb[0].mxu0 %vm74_vm1, %v28_v18  ;;  %4005 = vmatmul.mubr.msk.f32.vlgmr.msra.gmra.mrb[0].mxu1 %vm74_vm1, %v28_v18 }
   0xe   :  { %166 = vmatprep.mubr.f32.mxu0 %v7554_v4  ;;  %255 = vmatprep.mubr.f32.mxu1 %v7554_v4 }
   0xf   :  { %1948 = vperm.xlu0 %4317, %v1942_v19   ;;  %1953 = vperm.xlu1 %4318, %v1943_v20  }
  0x11   :  { %4000 = vmatmul.mubr.msk.f32.gmra.mrb[2].mxu0 %vm74_vm1, %v29_v21  ;;  %4006 = vmatmul.mubr.msk.f32.gmra.mrb[2].mxu1 %vm74_vm1, %v29_v21 }
  0x12   :  { %172 = vmatprep.mubr.f32.mxu0 %v7554_v4  ;;  %261 = vmatprep.mubr.f32.mxu1 %v7554_v4 }
  0x13   :  { %1958 = vperm.xlu0 %4317, %v1944_v22   ;;  %1963 = vperm.xlu1 %4318, %v1945_v23   ;;  %v7559_v22 = vmov 1326507024  }
  0x15   :  { %4001 = vmatmul.mubr.msk.f32.gmra.mrb[4].mxu0 %vm74_vm1, %v30_v24  ;;  %4007 = vmatmul.mubr.msk.f32.gmra.mrb[4].mxu1 %vm74_vm1, %v30_v24 }
  0x16   :  { %178 = vmatprep.mubr.f32.mxu0 %v7554_v4  ;;  %267 = vmatprep.mubr.f32.mxu1 %v7554_v4 }
  0x17   :  { %3825 = vperm.xlu0 %4317, %v3822_v25  }
  0x19   :  { %4002 = vmatmul.mubr.msk.f32.gmra.mrb[6].mxu0 %vm74_vm1, %v31_v26  ;;  %4008 = vmatmul.mubr.msk.f32.gmra.mrb[6].mxu1 %vm74_vm1, %v31_v26 }
  0x1a   :  { %2043 = vmatprep.mubr.f32.mxu0 %v7554_v4  ;;  %2132 = vmatprep.mubr.f32.mxu1 %v7554_v4 }
  0x82   :  { %v39_v27 = vpop.permute.xlu0 %38 }
  0xe0   :  { %v162_v28 = vpop.f32.mrb[0].mxu0  ;;  %v251_v29 = vpop.f32.mrb[0].mxu1 }
  0xe1   :  { %v4582_v30 = vadd.f32 %v162_v28, %v39_v27  ;;  %v4584_v31 = vadd.f32 %v251_v29, %v39_v27  ;;  %v164_v32 = vpop.f32.mrb[1].mxu0  ;;  %v253_v33 = vpop.f32.mrb[1].mxu1 }
  0xe2   :  { %v4586_v34 = vadd.f32 %v164_v32, %v39_v27  ;;  %v4605_v56 = vadd.f32 %v253_v33, %v39_v27 }
  0xe3   :  { %7666 = vst [vmem:[#allocation5_spill] sm:$0xff] %v4582_v30  ;;  %7667 = vst [vmem:[#allocation6_spill] sm:$0xff] %v4584_v31  ;;  %v274_v35 = vand.u32 2147483647, %v4582_v30  ;;  %v277_v36 = vand.u32 2139095040, %v4582_v30  ;;  %v485_v38 = vand.u32 2139095040, %v4584_v31 }
  0xe4   :  { %v482_v37 = vand.u32 2147483647, %v4584_v31  ;;  %v4592_v39 = vpop.f32.mrb[2].mxu0  ;;  %v381_v41 = vand.u32 2139095040, %v4586_v34  ;;  %v4599_v47 = vpop.f32.mrb[2].mxu1  ;;  %7668 = vst [vmem:[#allocation7_spill] sm:$0xff] %v4605_v56 }
  0xe5   :  { %v278_v40 = vshrl.u32 %v277_v36, 23  ;;  %v281_v42 = vand.u32 8388607, %v274_v35  ;;  %v486_v43 = vshrl.u32 %v485_v38, 23  ;;  %v4601_v51 = vpop.f32.mrb[3].mxu0  ;;  %v4603_v52 = vpop.f32.mrb[3].mxu1 }
  0xe6   :  { %v489_v44 = vand.u32 8388607, %v482_v37  ;;  %v382_v46 = vshrl.u32 %v381_v41, 23  ;;  %v378_v0 = vand.u32 2147483647, %v4586_v34  ;;  %v589_v1 = vand.u32 2139095040, %v4605_v56 }
  0xe7   :  { %v4009_v45 = vadd.s32 4294967169, %v278_v40  ;;  %v4017_v48 = vadd.s32 4294967169, %v486_v43  ;;  %v282_v53 = vor.u32 8388608, %v281_v42 }
  0xe8   :  { %v4013_v50 = vadd.s32 4294967169, %v382_v46  ;;  %v490_v54 = vor.u32 8388608, %v489_v44  ;;  %v4623_v16 = vpop.f32.mrb[4].mxu0 }
  0xe9   :  { %v284_v49 = vadd.s32 1, %v4009_v45  ;;  %v492_v55 = vadd.s32 1, %v4017_v48  ;;  %v4609_v62 = vshll.u32 %v282_v53, 8 }
  0xea   :  { %v4607_v58 = vadd.s32 1, %v4013_v50  ;;  %v4611_v63 = vshll.u32 %v490_v54, 8 }
  0xeb   :  { %vm285_vm2 = vcmp.gt.s32.totalorder %v284_v49, 0  ;;  %vm493_vm3 = vcmp.gt.s32.totalorder %v492_v55, 0 }
  0xec   :  { %v286_v57 = vsel %vm285_vm2, %v284_v49, 0  ;;  %v494_v61 = vsel %vm493_vm3, %v492_v55, 0  ;;  %vm389_vm4 = vcmp.gt.s32.totalorder %v4607_v58, 0 }
  0xed   :  { %v287_v59 = vshrl.u32 %v286_v57, 5  ;;  %v288_v60 = vand.u32 31, %v286_v57  ;;  %v4616_v6 = vshrl.u32 %v494_v61, 5  ;;  %v496_v7 = vand.u32 31, %v494_v61 }
  0xef   :  { %v289_v2 = vsub.s32 32, %v288_v60  ;;  %v291_v5 = vshll.u32 %v7573_v3, %v288_v60  ;;  %v294_v9 = vshll.u32 %v7568_v8, %v288_v60  ;;  %v297_v11 = vshll.u32 %v7566_v10, %v288_v60 }
  0xf0   :  { %v300_v13 = vshll.u32 %v7564_v12, %v288_v60  ;;  %v303_v15 = vshll.u32 %v7561_v14, %v288_v60  ;;  %vm306_vm5 = vcmp.lt.s32.totalorder %v287_v59, 1  ;;  %vm307_vm6 = vcmp.lt.s32.totalorder %v287_v59, 2 }
  0xf1   :  { %v292_v17 = vshrl.u32 %v7568_v8, %v289_v2  ;;  %v295_v18 = vshrl.u32 %v7566_v10, %v289_v2  ;;  %v298_v19 = vshrl.u32 %v7564_v12, %v289_v2  ;;  %v290_v20 = vshrl.u32 %v7573_v3, %v289_v2 }
  0xf2   :  { %v301_v21 = vshrl.u32 %v7561_v14, %v289_v2  ;;  %v304_v23 = vshrl.u32 %v7559_v22, %v289_v2  ;;  %v497_v27 = vsub.s32 32, %v496_v7  ;;  %vm308_vm7 = vcmp.lt.s32.totalorder %v287_v59, 3 }
  0xf3   :  { %v293_v24 = vor.u32 %v292_v17, %v291_v5  ;;  %v296_v25 = vor.u32 %v295_v18, %v294_v9  ;;  %v299_v26 = vor.u32 %v298_v19, %v297_v11  ;;  %vm309_vm8 = vcmp.lt.s32.totalorder %v287_v59, 4 }
  0xf4   :  { %v302_v28 = vor.u32 %v301_v21, %v300_v13  ;;  %v305_v29 = vor.u32 %v304_v23, %v303_v15  ;;  %v499_v43 = vshll.u32 %v7573_v3, %v496_v7  ;;  %v500_v46 = vshrl.u32 %v7568_v8, %v497_v27 }
  0xf5   :  { %v310_v32 = vsel %vm306_vm5, %v290_v20, %v293_v24  ;;  %v311_v33 = vsel %vm309_vm8, %v299_v26, 2102212464  ;;  %v314_v36 = vsel %vm306_vm5, %v293_v24, %v296_v25  ;;  %v318_v38 = vsel %vm306_vm5, %v296_v25, %v299_v26 }
  0xf6   :  { %v312_v40 = vsel %vm308_vm7, %v296_v25, %v311_v33  ;;  %v315_v41 = vsel %vm309_vm8, %v302_v28, 920167782  ;;  %v319_v42 = vsel %vm309_vm8, %v305_v29, 1326507024  ;;  %v502_v48 = vshll.u32 %v7568_v8, %v496_v7 }
  0xf7   :  { %v316_v44 = vsel %vm308_vm7, %v299_v26, %v315_v41  ;;  %v320_v45 = vsel %vm308_vm7, %v302_v28, %v319_v42  ;;  %v313_v49 = vsel %vm307_vm6, %v310_v32, %v312_v40  ;;  %v503_v54 = vshrl.u32 %v7566_v10, %v497_v27 }
  0xf8   :  { %v317_v50 = vsel %vm307_vm6, %v314_v36, %v316_v44  ;;  %v321_v53 = vsel %vm307_vm6, %v318_v38, %v320_v45  ;;  %v501_v2 = vor.u32 %v500_v46, %v499_v43  ;;  %v505_v9 = vshll.u32 %v7566_v10, %v496_v7 }
  0xf9   :  { %v4642_v55 = vmul.u32.u64.low %v4609_v62, %v321_v53  ;;  %v4643_v57 = vmul.u32.u64.high %v4609_v62, %v321_v53, %v4642_v55  ;;  %v4646_v60 = vmul.u32.u64.low %v4609_v62, %v317_v50  ;;  %v4647_v61 = vmul.u32.u64.high %v4609_v62, %v317_v50, %v4646_v60  ;;  %v4680_v50 = vpop.f32.mrb[4].mxu1 }
  0xfa   :  { %v504_v5 = vor.u32 %v503_v54, %v502_v48  ;;  %v506_v11 = vshrl.u32 %v7564_v12, %v497_v27  ;;  %v508_v59 = vshll.u32 %v7564_v12, %v496_v7  ;;  %v509_v13 = vshrl.u32 %v7561_v14, %v497_v27 }
  0xfb   :  { %v512_v15 = vshrl.u32 %v7559_v22, %v497_v27  ;;  %v390_v17 = vsel %vm389_vm4, %v4607_v58, 0  ;;  %v329_v18 = vmul.u32 %v4609_v62, %v313_v49  ;;  %v498_v19 = vshrl.u32 %v7573_v3, %v497_v27 }
  0xfc   :  { %v507_v20 = vor.u32 %v506_v11, %v505_v9  ;;  %v511_v21 = vshll.u32 %v7561_v14, %v496_v7  ;;  %vm331_vm9 = vc.u32 %v4643_v57, %v4646_v60  ;;  %v332_v23 = vadd.s32 1, %v4647_v61 }
  0xfd   :  { %v510_v24 = vor.u32 %v509_v13, %v508_v59  ;;  %vm514_vm10 = vcmp.lt.s32.totalorder %v4616_v6, 1  ;;  %vm516_vm11 = vcmp.lt.s32.totalorder %v4616_v6, 3  ;;  %vm517_vm12 = vcmp.lt.s32.totalorder %v4616_v6, 4 }
  0xfe   :  { %v513_v25 = vor.u32 %v512_v15, %v511_v21  ;;  %v522_v58 = vsel %vm514_vm10, %v501_v2, %v504_v5  ;;  %v333_v62 = vsel %vm331_vm9, %v332_v23, %v4647_v61  ;;  %v519_v26 = vsel %vm517_vm12, %v507_v20, 2102212464 }
  0xff   :  { %v523_v27 = vsel %vm517_vm12, %v510_v24, 920167782  ;;  %v526_v28 = vsel %vm514_vm10, %v504_v5, %v507_v20  ;;  %v334_v7 = vadd.s32 %v333_v62, %v329_v18  ;;  %vm515_vm13 = vcmp.lt.s32.totalorder %v4616_v6, 2 }
 0x100   :  { %v524_v29 = vsel %vm516_vm11, %v507_v20, %v523_v27  ;;  %v527_v32 = vsel %vm517_vm12, %v513_v25, 1326507024  ;;  %v518_v33 = vsel %vm514_vm10, %v498_v19, %v501_v2  ;;  %v520_v36 = vsel %vm516_vm11, %v504_v5, %v519_v26 }
 0x101   :  { %v525_v38 = vsel %vm515_vm13, %v522_v58, %v524_v29  ;;  %v528_v40 = vsel %vm516_vm11, %v510_v24, %v527_v32  ;;  %v335_v41 = vadd.s32 536870912, %v334_v7  ;;  %v392_v48 = vand.u32 31, %v390_v17 }
 0x102   :  { %v529_v42 = vsel %vm515_vm13, %v526_v28, %v528_v40  ;;  %v4670_v43 = vmul.u32.u64.low %v4611_v63, %v525_v38  ;;  %v4671_v44 = vmul.u32.u64.high %v4611_v63, %v525_v38, %v4670_v43  ;;  %v521_v6 = vsel %vm515_vm13, %v518_v33, %v520_v36 }
 0x103   :  { %v4675_v45 = vmul.u32.u64.low %v4611_v63, %v529_v42  ;;  %v4676_v46 = vmul.u32.u64.high %v4611_v63, %v529_v42, %v4675_v45  ;;  %v4678_v49 = vshrl.u32 %v335_v41, 30  ;;  %v393_v53 = vsub.s32 32, %v392_v48 }
 0x104   :  { %v540_v55 = vadd.s32 1, %v4671_v44  ;;  %v385_v61 = vand.u32 8388607, %v378_v0  ;;  %v590_v2 = vshrl.u32 %v589_v1, 23  ;;  %v537_v5 = vmul.u32 %v4611_v63, %v521_v6 }
 0x105   :  { %v337_v54 = vshll.u32 %v4678_v49, 30  ;;  %vm539_vm14 = vc.u32 %v4676_v46, %v4670_v43  ;;  %v4691_v9 = vshrl.u32 %v390_v17, 5  ;;  %v398_v11 = vshll.u32 %v7568_v8, %v392_v48 }
 0x106   :  { %v541_v13 = vsel %vm539_vm14, %v540_v55, %v4671_v44  ;;  %v396_v15 = vshrl.u32 %v7568_v8, %v393_v53  ;;  %v399_v18 = vshrl.u32 %v7566_v10, %v393_v53  ;;  %v395_v1 = vshll.u32 %v7573_v3, %v392_v48 }
 0x107   :  { %v4694_v59 = vsub.s32 %v334_v7, %v337_v54  ;;  %v542_v19 = vadd.s32 %v541_v13, %v537_v5  ;;  %v401_v63 = vshll.u32 %v7566_v10, %v392_v48  ;;  %v402_v20 = vshrl.u32 %v7564_v12, %v393_v53 }
 0x108   :  { %v400_v21 = vor.u32 %v399_v18, %v398_v11  ;;  %v404_v23 = vshll.u32 %v7564_v12, %v392_v48  ;;  %v405_v24 = vshrl.u32 %v7561_v14, %v393_v53  ;;  %v407_v62 = vshll.u32 %v7561_v14, %v392_v48 }
 0x109   :  { %v340_v17 = vsub.s32 0, %v4694_v59  ;;  %v543_v25 = vadd.s32 536870912, %v542_v19  ;;  %v403_v58 = vor.u32 %v402_v20, %v401_v63  ;;  %v408_v26 = vshrl.u32 %v7559_v22, %v393_v53 }
 0x10a   :  { %v397_v28 = vor.u32 %v396_v15, %v395_v1  ;;  %v406_v7 = vor.u32 %v405_v24, %v404_v23  ;;  %vm413_vm15 = vcmp.lt.s32.totalorder %v4691_v9, 4  ;;  %vm410_vm0 = vcmp.lt.s32.totalorder %v4691_v9, 1 }
 0x10b   :  { %v4010_v27 = vmin.u32 %v340_v17, %v4694_v59  ;;  %v4708_v29 = vshrl.u32 %v543_v25, 30  ;;  %v409_v32 = vor.u32 %v408_v26, %v407_v62  ;;  %v4021_v38 = vadd.s32 4294967169, %v590_v2 }
 0x10c   :  { %v419_v36 = vsel %vm413_vm15, %v406_v7, 920167782  ;;  %v386_v41 = vor.u32 8388608, %v385_v61  ;;  %vm412_vm1 = vcmp.lt.s32.totalorder %v4691_v9, 3  ;;  %v422_v42 = vsel %vm410_vm0, %v400_v21, %v403_v58 }
 0x10d   :  { %v342_v33 = vclz %v4010_v27  ;;  %v545_v40 = vshll.u32 %v4708_v29, 30  ;;  %v418_v45 = vsel %vm410_vm0, %v397_v28, %v400_v21  ;;  %v420_v48 = vsel %vm412_vm1, %v403_v58, %v419_v36 }
 0x10e   :  { %v423_v6 = vsel %vm413_vm15, %v409_v32, 1326507024  ;;  %vm411_vm2 = vcmp.lt.s32.totalorder %v4691_v9, 2  ;;  %v415_v55 = vsel %vm413_vm15, %v403_v58, 2102212464  ;;  %v394_v2 = vshrl.u32 %v7573_v3, %v393_v53 }
 0x10f   :  { %v4011_v44 = vadd.s32 4294967294, %v342_v33  ;;  %v4720_v54 = vsub.s32 %v542_v19, %v545_v40  ;;  %v424_v61 = vsel %vm412_vm1, %v406_v7, %v423_v6  ;;  %v596_v11 = vadd.s32 1, %v4021_v38  ;;  %v4744_v7 = vpop.f32.mrb[5].mxu0 }
 0x110   :  { %v425_v5 = vsel %vm411_vm2, %v422_v42, %v424_v61  ;;  %v421_v18 = vsel %vm411_vm2, %v418_v45, %v420_v48  ;;  %v426_v19 = vshll.u32 %v386_v41, 8  ;;  %v414_v1 = vsel %vm410_vm0, %v394_v2, %v397_v28 }
 0x111   :  { %vm4012_vm3 = vcmp.lt.s32.totalorder %v4011_v44, 0  ;;  %v548_v15 = vsub.s32 0, %v4720_v54  ;;  %v416_v63 = vsel %vm412_vm1, %v400_v21, %v415_v55  ;;  %v7557_v20 = vand.u32 2147483647, %v4605_v56 }
 0x112   :  { %v345_v13 = vsel %vm4012_vm3, 0, %v4011_v44  ;;  %vm597_vm4 = vcmp.gt.s32.totalorder %v596_v11, 0  ;;  %v4737_v17 = vmul.u32.u64.low %v426_v19, %v425_v5  ;;  %v4738_v23 = vmul.u32.u64.high %v426_v19, %v425_v5, %v4737_v17  ;;  %v4755_v44 = vpop.permute.xlu0 %43 }
 0x113   :  { %v4018_v53 = vmin.u32 %v548_v15, %v4720_v54  ;;  %v598_v24 = vsel %vm597_vm4, %v596_v11, 0  ;;  %v346_v25 = vsub.s32 32, %v345_v13  ;;  %v350_v58 = vsub.s32 4294967266, %v345_v13 }
 0x114   :  { %v4740_v62 = vmul.u32.u64.low %v426_v19, %v421_v18  ;;  %v4741_v26 = vmul.u32.u64.high %v426_v19, %v421_v18, %v4740_v62  ;;  %v600_v28 = vand.u32 31, %v598_v24  ;;  %v330_v21 = vadd.s32 %v4646_v60, %v4643_v57 }
 0x115   :  { %v550_v27 = vclz %v4018_v53  ;;  %v417_v32 = vsel %vm411_vm2, %v414_v1, %v416_v63  ;;  %v351_v40 = vadd.s32 127, %v350_v58  ;;  %v593_v42 = vand.u32 8388607, %v7557_v20 }
 0x116   :  { %vm435_vm5 = vc.u32 %v4738_v23, %v4740_v62  ;;  %v601_v36 = vsub.s32 32, %v600_v28  ;;  %v348_v38 = vshrl.u32 %v330_v21, %v346_v25  ;;  %v436_v41 = vadd.s32 1, %v4741_v26 }
 0x117   :  { %v4019_v33 = vadd.s32 4294967294, %v550_v27  ;;  %v433_v45 = vmul.u32 %v426_v19, %v417_v32  ;;  %v347_v57 = vshll.u32 %v4694_v59, %v345_v13  ;;  %v4761_v9 = vadd.f32 %v4592_v39, %v4755_v44 }
 0x118   :  { %v437_v60 = vsel %vm435_vm5, %v436_v41, %v4741_v26  ;;  %v604_v55 = vshrl.u32 %v7568_v8, %v601_v36  ;;  %v607_v61 = vshrl.u32 %v7566_v10, %v601_v36  ;;  %v352_v5 = vshll.u32 %v351_v40, 23 }
 0x119   :  { %vm4020_vm6 = vcmp.lt.s32.totalorder %v4019_v33, 0  ;;  %7669 = vst [vmem:[#allocation8_spill] sm:$0xff] %v4761_v9  ;;  %v438_v6 = vadd.s32 %v437_v60, %v433_v45  ;;  %v349_v2 = vor.u32 %v348_v38, %v347_v57  ;;  %v538_v11 = vadd.s32 %v4670_v43, %v4676_v46 }
 0x11a   :  { %v4763_v48 = vsel %vm4020_vm6, 0, %v4019_v33  ;;  %v594_v15 = vor.u32 8388608, %v593_v42  ;;  %v603_v13 = vshll.u32 %v7573_v3, %v600_v28  ;;  %v606_v18 = vshll.u32 %v7568_v8, %v600_v28 }
 0x11b   :  { %v439_v59 = vadd.s32 536870912, %v438_v6  ;;  %v610_v39 = vshrl.u32 %v7564_v12, %v601_v36  ;;  %v558_v19 = vsub.s32 4294967266, %v4763_v48  ;;  %v609_v1 = vshll.u32 %v7566_v10, %v600_v28 }
 0x11c   :  { %v612_v63 = vshll.u32 %v7564_v12, %v600_v28  ;;  %v613_v53 = vshrl.u32 %v7561_v14, %v601_v36  ;;  %v599_v25 = vshrl.u32 %v598_v24, 5  ;;  %v605_v43 = vor.u32 %v604_v55, %v603_v13 }
 0x11d   :  { %v4776_v17 = vshrl.u32 %v439_v59, 30  ;;  %v608_v46 = vor.u32 %v607_v61, %v606_v18  ;;  %v611_v58 = vor.u32 %v610_v39, %v609_v1  ;;  %v615_v27 = vshll.u32 %v7561_v14, %v600_v28 }
 0x11e   :  { %v614_v26 = vor.u32 %v613_v53, %v612_v63  ;;  %v616_v21 = vshrl.u32 %v7559_v22, %v601_v36  ;;  %v353_v32 = vor.u32 4788187, %v352_v5  ;;  %v634_v38 = vshll.u32 %v594_v15, 8 }
 0x11f   :  { %v441_v33 = vshll.u32 %v4776_v17, 30  ;;  %v693_v40 = vand.u32 2139095040, %v4761_v9  ;;  %v356_v41 = vcvt.s32.f32 %v349_v2  ;;  %v559_v42 = vadd.s32 127, %v558_v19 }
 0x120   :  { %v602_v45 = vshrl.u32 %v7573_v3, %v601_v36  ;;  %v617_v57 = vor.u32 %v616_v21, %v615_v27  ;;  %v554_v24 = vsub.s32 32, %v4763_v48  ;;  %vm618_vm7 = vcmp.lt.s32.totalorder %v599_v25, 1 }
 0x121   :  { %v4784_v60 = vsub.s32 %v438_v6, %v441_v33  ;;  %vm621_vm8 = vcmp.lt.s32.totalorder %v599_v25, 4  ;;  %vm620_vm9 = vcmp.lt.s32.totalorder %v599_v25, 3  ;;  %v626_v55 = vsel %vm618_vm7, %v605_v43, %v608_v46 }
 0x122   :  { %v623_v28 = vsel %vm621_vm8, %v611_v58, 2102212464  ;;  %v627_v61 = vsel %vm621_vm8, %v614_v26, 920167782  ;;  %v354_v5 = vand.u32 2147483647, %v353_v32  ;;  %v630_v36 = vsel %vm618_vm7, %v608_v46, %v611_v58 }
 0x123   :  { %v444_v15 = vsub.s32 0, %v4784_v60  ;;  %vm619_vm10 = vcmp.lt.s32.totalorder %v599_v25, 2  ;;  %v628_v59 = vsel %vm620_vm9, %v611_v58, %v627_v61  ;;  %v560_v2 = vshll.u32 %v559_v42, 23 }
 0x124   :  { %v629_v13 = vsel %vm619_vm10, %v626_v55, %v628_v59  ;;  %v631_v18 = vsel %vm621_vm8, %v617_v57, 1326507024  ;;  %v622_v6 = vsel %vm618_vm7, %v602_v45, %v605_v43  ;;  %v624_v19 = vsel %vm620_vm9, %v608_v46, %v623_v28 }
 0x125   :  { %v4014_v39 = vmin.u32 %v444_v15, %v4784_v60  ;;  %v632_v1 = vsel %vm620_vm9, %v614_v26, %v631_v18  ;;  %v556_v63 = vshrl.u32 %v538_v11, %v554_v24  ;;  %v357_v32 = vmul.f32 %v356_v41, %v354_v5  ;;  %v4807_v15 = vpop.f32.mrb[5].mxu1 }
 0x126   :  { %v633_v53 = vsel %vm619_vm10, %v630_v36, %v632_v1  ;;  %v4790_v27 = vmul.u32.u64.low %v634_v38, %v629_v13  ;;  %v4791_v21 = vmul.u32.u64.high %v634_v38, %v629_v13, %v4790_v27  ;;  %v555_v58 = vshll.u32 %v4720_v54, %v4763_v48 }
 0x127   :  { %v446_v33 = vclz %v4014_v39  ;;  %v4794_v61 = vmul.u32.u64.low %v634_v38, %v633_v53  ;;  %v4795_v42 = vmul.u32.u64.high %v634_v38, %v633_v53, %v4794_v61  ;;  %v561_v57 = vor.u32 4788187, %v560_v2 }
 0x128   :  { %v625_v43 = vsel %vm619_vm10, %v622_v6, %v624_v19  ;;  %v694_v46 = vshrl.u32 %v693_v40, 23  ;;  %v360_v11 = vsub.s32 4, %v4678_v49  ;;  %v690_v45 = vand.u32 2147483647, %v4761_v9 }
 0x129   :  { %v4015_v26 = vadd.s32 4294967294, %v446_v33  ;;  %vm276_vm11 = vcmp.lt.s32.totalorder %v4582_v30, 0  ;;  %v557_v24 = vor.u32 %v556_v63, %v555_v58  ;;  %v644_v41 = vadd.s32 1, %v4791_v21 }
 0x12a   :  { %v4025_v28 = vadd.s32 4294967169, %v694_v46  ;;  %v358_v55 = vxor.u32 2147483648, %v357_v32  ;;  %v641_v5 = vmul.u32 %v634_v38, %v625_v43  ;;  %vm643_vm13 = vc.u32 %v4795_v42, %v4790_v27 }
 0x12b   :  { %vm4016_vm12 = vcmp.lt.s32.totalorder %v4015_v26, 0  ;;  %v562_v54 = vand.u32 2147483647, %v561_v57  ;;  %v645_v25 = vsel %vm643_vm13, %v644_v41, %v4791_v21  ;;  %v4812_v59 = vsel %vm276_vm11, %v360_v11, %v4678_v49 }
 0x12c   :  { %v449_v48 = vsel %vm4016_vm12, 0, %v4015_v26  ;;  %v700_v40 = vadd.s32 1, %v4025_v28  ;;  %v646_v13 = vadd.s32 %v645_v25, %v641_v5  ;;  %v697_v38 = vand.u32 8388607, %v690_v45 }
 0x12d   :  { %v454_v2 = vsub.s32 4294967266, %v449_v48  ;;  %v564_v36 = vcvt.s32.f32 %v557_v24  ;;  %v450_v18 = vsub.s32 32, %v449_v48  ;;  %v4818_v39 = vadd.f32 %v4599_v47, %v4755_v44 }
 0x12e   :  { %vm701_vm14 = vcmp.gt.s32.totalorder %v700_v40, 0  ;;  %v568_v6 = vsub.s32 4, %v4708_v29  ;;  %v647_v1 = vadd.s32 536870912, %v646_v13  ;;  %v359_v49 = vsel %vm276_vm11, %v358_v55, %v357_v32 }
 0x12f   :  { %7670 = vst [vmem:[#allocation9_spill] sm:$0xff] %v4818_v39  ;;  %v455_v19 = vadd.s32 127, %v454_v2  ;;  %v702_v63 = vsel %vm701_vm14, %v700_v40, 0  ;;  %v4823_v53 = vmul.f32 %v564_v36, %v562_v54  ;;  %v434_v21 = vadd.s32 %v4740_v62, %v4738_v23 }
 0x130   :  { %v704_v33 = vand.u32 31, %v702_v63  ;;  %v451_v61 = vshll.u32 %v4784_v60, %v449_v48  ;;  %v4828_v57 = vshrl.u32 %v647_v1, 30  ;;  %v698_v47 = vor.u32 8388608, %v697_v38 }
 0x131   :  { %v456_v58 = vshll.u32 %v455_v19, 23  ;;  %v452_v43 = vshrl.u32 %v434_v21, %v450_v18  ;;  %v703_v46 = vshrl.u32 %v702_v63, 5  ;;  %v901_v26 = vand.u32 2139095040, %v4818_v39 }
 0x132   :  { %v705_v11 = vsub.s32 32, %v704_v33  ;;  %v649_v24 = vshll.u32 %v4828_v57, 30  ;;  %v707_v32 = vshll.u32 %v7573_v3, %v704_v33  ;;  %v710_v41 = vshll.u32 %v7568_v8, %v704_v33 }
 0x133   :  { %v713_v23 = vshll.u32 %v7566_v10, %v704_v33  ;;  %v457_v62 = vor.u32 4788187, %v456_v58  ;;  %vm4840_vm15 = vcmp.le.f32.partialorder %v274_v35, 0.7853982  ;;  %v716_v48 = vshll.u32 %v7564_v12, %v704_v33 }
 0x134   :  { %v708_v60 = vshrl.u32 %v7568_v8, %v705_v11  ;;  %v711_v28 = vshrl.u32 %v7566_v10, %v705_v11  ;;  %v714_v55 = vshrl.u32 %v7564_v12, %v705_v11  ;;  %v4844_v54 = vsub.s32 %v646_v13, %v649_v24 }
 0x135   :  { %v717_v25 = vshrl.u32 %v7561_v14, %v705_v11  ;;  %v719_v40 = vshll.u32 %v7561_v14, %v704_v33  ;;  %v720_v18 = vshrl.u32 %v7559_v22, %v705_v11  ;;  %vm484_vm0 = vcmp.lt.s32.totalorder %v4584_v31, 0 }
 0x136   :  { %v709_v2 = vor.u32 %v708_v60, %v707_v32  ;;  %v712_v38 = vor.u32 %v711_v28, %v710_v41  ;;  %v715_v36 = vor.u32 %v714_v55, %v713_v23  ;;  %v566_v35 = vxor.u32 2147483648, %v4823_v53 }
 0x137   :  { %v652_v19 = vsub.s32 0, %v4844_v54  ;;  %v718_v1 = vor.u32 %v717_v25, %v716_v48  ;;  %v738_v13 = vshll.u32 %v698_v47, 8  ;;  %v453_v63 = vor.u32 %v452_v43, %v451_v61 }
 0x138   :  { %v706_v21 = vshrl.u32 %v7573_v3, %v705_v11  ;;  %v721_v58 = vor.u32 %v720_v18, %v719_v40  ;;  %v902_v24 = vshrl.u32 %v901_v26, 23  ;;  %v458_v4 = vand.u32 2147483647, %v457_v62 }
 0x139   :  { %v4022_v33 = vmin.u32 %v652_v19, %v4844_v54  ;;  %vm722_vm1 = vcmp.lt.s32.totalorder %v703_v46, 1  ;;  %vm725_vm2 = vcmp.lt.s32.totalorder %v703_v46, 4  ;;  %vm724_vm3 = vcmp.lt.s32.totalorder %v703_v46, 3 }
 0x13a   :  { %v727_v32 = vsel %vm725_vm2, %v715_v36, 2102212464  ;;  %v730_v41 = vsel %vm722_vm1, %v709_v2, %v712_v38  ;;  %v731_v23 = vsel %vm725_vm2, %v718_v1, 920167782  ;;  %vm723_vm4 = vcmp.lt.s32.totalorder %v703_v46, 2 }
 0x13b   :  { %v654_v60 = vclz %v4022_v33  ;;  %v732_v28 = vsel %vm724_vm3, %v715_v36, %v731_v23  ;;  %v734_v55 = vsel %vm722_vm1, %v712_v38, %v715_v36  ;;  %v460_v48 = vcvt.s32.f32 %v453_v63 }
 0x13c   :  { %v726_v47 = vsel %vm722_vm1, %v706_v21, %v709_v2  ;;  %v733_v61 = vsel %vm723_vm4, %v730_v41, %v732_v28  ;;  %v735_v43 = vsel %vm725_vm2, %v721_v58, 1326507024  ;;  %v728_v26 = vsel %vm724_vm3, %v712_v38, %v727_v32  ;;  %v4906_v41 = vpop.f32.mrb[6].mxu0 }
 0x13d   :  { %v4023_v11 = vadd.s32 4294967294, %v654_v60  ;;  %v736_v62 = vsel %vm724_vm3, %v718_v1, %v735_v43  ;;  %v4033_v25 = vadd.s32 4294967169, %v902_v24  ;;  %v362_v40 = vsel %vm4840_vm15, %v4582_v30, %v359_v49 }
 0x13e   :  { %v737_v18 = vsel %vm723_vm4, %v734_v55, %v736_v62  ;;  %v4860_v19 = vmul.u32.u64.low %v738_v13, %v733_v61  ;;  %v4861_v33 = vmul.u32.u64.high %v738_v13, %v733_v61, %v4860_v19  ;;  %v461_v36 = vmul.f32 %v460_v48, %v458_v4 }
 0x13f   :  { %vm4024_vm5 = vcmp.lt.s32.totalorder %v4023_v11, 0  ;;  %v4864_v2 = vmul.u32.u64.low %v738_v13, %v737_v18  ;;  %v4865_v63 = vmul.u32.u64.high %v738_v13, %v737_v18, %v4864_v2  ;;  %v567_v38 = vsel %vm484_vm0, %v566_v35, %v4823_v53 }
 0x140   :  { %v729_v1 = vsel %vm723_vm4, %v726_v47, %v728_v26  ;;  %v7556_v21 = vand.u32 2147483647, %v4818_v39  ;;  %v908_v49 = vadd.s32 1, %v4033_v25  ;;  %v363_v58 = vsel %vm4840_vm15, 0, %v4812_v59 }
 0x141   :  { %vm4877_vm6 = vcmp.le.f32.partialorder %v482_v37, 0.7853982  ;;  %v4881_v24 = vsel %vm4024_vm5, 0, %v4023_v11  ;;  %v4885_v53 = vadd.f32 %v4601_v51, %v4755_v44  ;;  %4320 = vcosq.f32 %v362_v40 }
 0x142   :  { %v4892_v46 = vsel %vm484_vm0, %v568_v6, %v4708_v29  ;;  %v748_v59 = vadd.s32 1, %v4861_v33  ;;  %vm909_vm7 = vcmp.gt.s32.totalorder %v908_v49, 0  ;;  %v4898_v37 = vsel %vm4877_vm6, %v4584_v31, %v567_v38 }
 0x143   :  { %v462_v5 = vxor.u32 2147483648, %v461_v36  ;;  %v745_v35 = vmul.u32 %v738_v13, %v729_v1  ;;  %vm747_vm8 = vc.u32 %v4865_v63, %v4860_v19  ;;  %v662_v51 = vsub.s32 4294967266, %v4881_v24 }
 0x144   :  { %v749_v32 = vsel %vm747_vm8, %v748_v59, %v4861_v33  ;;  %v905_v29 = vand.u32 8388607, %v7556_v21  ;;  %v910_v6 = vsel %vm909_vm7, %v908_v49, 0  ;;  %4322 = vsinq.f32 %v362_v40 }
 0x145   :  { %vm380_vm9 = vcmp.lt.s32.totalorder %v4586_v34, 0  ;;  %v750_v23 = vadd.s32 %v749_v32, %v745_v35  ;;  %v797_v60 = vand.u32 2139095040, %v4885_v53  ;;  %v4910_v13 = vadd.s32 3, %v363_v58 }
 0x146   :  { %4324 = vcosq.f32 %v4898_v37  ;;  %v912_v55 = vand.u32 31, %v910_v6  ;;  %v4918_v48 = vsel %vm380_vm9, %v462_v5, %v461_v36  ;;  %v642_v47 = vadd.s32 %v4790_v27, %v4795_v42 }
 0x147   :  { %7675 = vst [vmem:[#allocation10_spill] sm:$0xff] %v4910_v13  ;;  %v751_v61 = vadd.s32 536870912, %v750_v23  ;;  %v7558_v43 = vand.u32 2147483647, %v4885_v53  ;;  %v658_v11 = vsub.s32 32, %v4881_v24  ;;  %v663_v26 = vadd.s32 127, %v662_v51 }
 0x148   :  { %v906_v62 = vor.u32 8388608, %v905_v29  ;;  %v913_v25 = vsub.s32 32, %v912_v55  ;;  %v915_v18 = vshll.u32 %v7573_v3, %v912_v55  ;;  %v918_v33 = vshll.u32 %v7568_v8, %v912_v55 }
 0x149   :  { %v4924_v40 = vshrl.u32 %v751_v61, 30  ;;  %v798_v2 = vshrl.u32 %v797_v60, 23  ;;  %v921_v27 = vshll.u32 %v7566_v10, %v912_v55  ;;  %v911_v49 = vshrl.u32 %v910_v6, 5 }
 0x14a   :  { %v916_v36 = vshrl.u32 %v7568_v8, %v913_v25  ;;  %v919_v38 = vshrl.u32 %v7566_v10, %v913_v25  ;;  %v922_v42 = vshrl.u32 %v7564_v12, %v913_v25  ;;  %v924_v58 = vshll.u32 %v7564_v12, %v912_v55 }
 0x14b   :  { %v753_v1 = vshll.u32 %v4924_v40, 30  ;;  %v925_v59 = vshrl.u32 %v7561_v14, %v913_v25  ;;  %v4935_v5 = vpop.eup %4320  ;;  %v928_v29 = vshrl.u32 %v7559_v22, %v913_v25  ;;  %vm4940_vm10 = vcmp.le.f32.partialorder %v378_v0, 0.7853982 }
 0x14c   :  { %7676 = vst [vmem:[#allocation11_spill] sm:$0xff] %v4935_v5  ;;  %v917_v35 = vor.u32 %v916_v36, %v915_v18  ;;  %v920_v51 = vor.u32 %v919_v38, %v918_v33  ;;  %v923_v32 = vor.u32 %v922_v42, %v921_v27  ;;  %v664_v61 = vshll.u32 %v663_v26, 23 }
 0x14d   :  { %v4944_v21 = vsub.s32 %v750_v23, %v753_v1  ;;  %v926_v6 = vor.u32 %v925_v59, %v924_v58  ;;  %v927_v28 = vshll.u32 %v7561_v14, %v912_v55  ;;  %v659_v20 = vshll.u32 %v4844_v54, %v4881_v24 }
 0x14e   :  { %v660_v18 = vshrl.u32 %v642_v47, %v658_v11  ;;  %v946_v33 = vshll.u32 %v906_v62, 8  ;;  %v801_v36 = vand.u32 8388607, %v7558_v43  ;;  %v4951_v38 = vpop.eup %4322  ;;  %vm930_vm11 = vcmp.lt.s32.totalorder %v911_v49, 1  ;;  %v4962_v43 = vpop.f32.mrb[6].mxu1 }
 0x14f   :  { %7679 = vst [vmem:[#allocation12_spill] sm:$0xff] %v4951_v38  ;;  %v756_v0 = vsub.s32 0, %v4944_v21  ;;  %v929_v27 = vor.u32 %v928_v29, %v927_v28  ;;  %vm933_vm12 = vcmp.lt.s32.totalorder %v911_v49, 4  ;;  %v914_v26 = vshrl.u32 %v7573_v3, %v913_v25 }
 0x150   :  { %v4954_v23 = vpop.eup %4324  ;;  %v935_v55 = vsel %vm933_vm12, %v923_v32, 2102212464  ;;  %v938_v42 = vsel %vm930_vm11, %v917_v35, %v920_v51  ;;  %v4029_v54 = vadd.s32 4294967169, %v798_v2  ;;  %v665_v24 = vor.u32 4788187, %v664_v61 }
 0x151   :  { %7680 = vst [vmem:[#allocation13_spill] sm:$0xff] %v4954_v23  ;;  %v4026_v47 = vmin.u32 %v756_v0, %v4944_v21  ;;  %vm932_vm13 = vcmp.lt.s32.totalorder %v911_v49, 3  ;;  %v939_v11 = vsel %vm933_vm12, %v926_v6, 920167782  ;;  %vm931_vm14 = vcmp.lt.s32.totalorder %v911_v49, 2 }
 0x152   :  { %v934_v62 = vsel %vm930_vm11, %v914_v26, %v917_v35  ;;  %v940_v1 = vsel %vm932_vm13, %v923_v32, %v939_v11  ;;  %v942_v28 = vsel %vm930_vm11, %v920_v51, %v923_v32  ;;  %v936_v59 = vsel %vm932_vm13, %v920_v51, %v935_v55 }
 0x153   :  { %v758_v58 = vclz %v4026_v47  ;;  %v941_v29 = vsel %vm931_vm14, %v938_v42, %v940_v1  ;;  %v943_v25 = vsel %vm933_vm12, %v929_v27, 1326507024  ;;  %v804_v0 = vadd.s32 1, %v4029_v54 }
 0x154   :  { %v944_v22 = vsel %vm932_vm13, %v926_v6, %v943_v25  ;;  %v4964_v2 = vmul.u32.u64.low %v946_v33, %v941_v29  ;;  %v4965_v61 = vmul.u32.u64.high %v946_v33, %v941_v29, %v4964_v2  ;;  %v661_v14 = vor.u32 %v660_v18, %v659_v20 }
 0x155   :  { %vm692_vm15 = vcmp.lt.s32.totalorder %v4761_v9, 0  ;;  %v4027_v35 = vadd.s32 4294967294, %v758_v58  ;;  %v945_v32 = vsel %vm931_vm14, %v942_v28, %v944_v22  ;;  %v4972_v51 = vadd.f32 %v4603_v52, %v4755_v44 }
 0x156   :  { %v4978_v6 = vsel %vm4940_vm10, %v4586_v34, %v4918_v48  ;;  %v4980_v27 = vmul.u32.u64.low %v946_v33, %v945_v32  ;;  %v4981_v26 = vmul.u32.u64.high %v946_v33, %v945_v32, %v4980_v27  ;;  %vm805_vm0 = vcmp.gt.s32.totalorder %v804_v0, 0 }
 0x157   :  { %7681 = vst [vmem:[#allocation14_spill] sm:$0xff] %v4972_v51  ;;  %vm4028_vm1 = vcmp.lt.s32.totalorder %v4027_v35, 0  ;;  %v937_v20 = vsel %vm931_vm14, %v934_v62, %v936_v59  ;;  %v802_v18 = vor.u32 8388608, %v801_v36  ;;  %v806_v55 = vsel %vm805_vm0, %v804_v0, 0 }
 0x158   :  { %4326 = vsinq.f32 %v4898_v37  ;;  %v666_v22 = vand.u32 2147483647, %v665_v24  ;;  %v956_v52 = vadd.s32 1, %v4965_v61  ;;  %v808_v44 = vand.u32 31, %v806_v55 }
 0x159   :  { %4328 = vcosq.f32 %v4978_v6  ;;  %v668_v42 = vcvt.s32.f32 %v661_v14  ;;  %vm4989_vm2 = vcmp.le.f32.partialorder %v690_v45, 0.7853982  ;;  %v776_v49 = vsub.s32 4, %v4924_v40 }
 0x15a   :  { %v4994_v54 = vsel %vm4028_vm1, 0, %v4027_v35  ;;  %v953_v36 = vmul.u32 %v946_v33, %v937_v20  ;;  %vm955_vm3 = vc.u32 %v4981_v26, %v4964_v2  ;;  %v809_v37 = vsub.s32 32, %v808_v44 }
 0x15b   :  { %v746_v24 = vadd.s32 %v4860_v19, %v4865_v63  ;;  %v957_v14 = vsel %vm955_vm3, %v956_v52, %v4965_v61  ;;  %v5001_v47 = vshll.u32 %v802_v18, 8  ;;  %v7563_v45 = vand.u32 2147483647, %v4972_v51 }
 0x15c   :  { %v669_v11 = vmul.f32 %v668_v42, %v666_v22  ;;  %v958_v62 = vadd.s32 %v957_v14, %v953_v36  ;;  %v812_v1 = vshrl.u32 %v7568_v8, %v809_v37  ;;  %v815_v28 = vshrl.u32 %v7566_v10, %v809_v37 }
 0x15d   :  { %v766_v33 = vsub.s32 4294967266, %v4994_v54  ;;  %v811_v58 = vshll.u32 %v7573_v3, %v808_v44  ;;  %v814_v59 = vshll.u32 %v7568_v8, %v808_v44  ;;  %v818_v19 = vshrl.u32 %v7564_v12, %v809_v37 }
 0x15e   :  { %v777_v63 = vsel %vm692_vm15, %v776_v49, %v4924_v40  ;;  %v959_v29 = vadd.s32 536870912, %v958_v62  ;;  %v807_v25 = vshrl.u32 %v806_v55, 5  ;;  %v817_v61 = vshll.u32 %v7566_v10, %v808_v44 }
 0x15f   :  { %v813_v0 = vor.u32 %v812_v1, %v811_v58  ;;  %v816_v35 = vor.u32 %v815_v28, %v814_v59  ;;  %v820_v32 = vshll.u32 %v7564_v12, %v808_v44  ;;  %v7684_v27 = vmov 920167782  }
 0x160   :  { %v821_v20 = vshrl.u32 %v7684_v27, %v809_v37  ;;  %v670_v18 = vxor.u32 2147483648, %v669_v11  ;;  %v5016_v22 = vshrl.u32 %v959_v29, 30  ;;  %v7685_v52 = vmov 1326507024  }
 0x161   :  { %v824_v42 = vshrl.u32 %v7685_v52, %v809_v37  ;;  %v1005_v36 = vand.u32 2139095040, %v4972_v51  ;;  %vm588_vm4 = vcmp.lt.s32.totalorder %v4605_v56, 0  ;;  %v767_v40 = vadd.s32 127, %v766_v33 }
 0x162   :  { %v819_v49 = vor.u32 %v818_v19, %v817_v61  ;;  %v822_v55 = vor.u32 %v821_v20, %v820_v32  ;;  %v823_v14 = vshll.u32 %v7684_v27, %v808_v44  ;;  %v5022_v1 = vpop.eup %4326  ;;  %v779_v28 = vsel %vm4989_vm2, 0, %v777_v63 }
 0x163   :  { %7686 = vst [vmem:[#allocation15_spill] sm:$0xff] %v5022_v1  ;;  %v961_v58 = vshll.u32 %v5016_v22, 30  ;;  %vm826_vm5 = vcmp.lt.s32.totalorder %v807_v25, 1  ;;  %v5029_v59 = vand.u32 8388607, %v7563_v45  ;;  %v5031_v29 = vpop.eup %4328  ;;  %v762_v33 = vsub.s32 32, %v4994_v54 }
 0x164   :  { %v825_v19 = vor.u32 %v824_v42, %v823_v14  ;;  %vm829_vm7 = vcmp.lt.s32.totalorder %v807_v25, 4  ;;  %v834_v44 = vsel %vm826_vm5, %v813_v0, %v816_v35  ;;  %v7687_v61 = vand.u32 2147483647, %v4605_v56 }
 0x165   :  { %v7688_v32 = vmov 0  ;;  %v5041_v63 = vsub.s32 %v958_v62, %v961_v58  ;;  %vm828_vm11 = vcmp.lt.s32.totalorder %v807_v25, 3  ;;  %v835_v20 = vsel %vm829_vm7, %v822_v55, 920167782 }
 0x166   :  { %vm5037_vm8 = vcmp.le.f32.partialorder %v7687_v61, 0.7853982  ;;  %v1006_v45 = vshrl.u32 %v1005_v36, 23  ;;  %v768_v12 = vshll.u32 %v767_v40, 23  ;;  %vm827_vm12 = vcmp.lt.s32.totalorder %v807_v25, 2 }
 0x167   :  { %v7689_v32 = vsel %vm5037_vm8, 4294967295, %v7688_v32  ;;  %v831_v10 = vsel %vm829_vm7, %v819_v49, 2102212464  ;;  %v836_v42 = vsel %vm828_vm11, %v819_v49, %v835_v20  ;;  %v964_v14 = vsub.s32 0, %v5041_v63 }
 0x168   :  { %7690 = vst [vmem:[#allocation16_spill] sm:$0xff] %v7689_v32  ;;  %v810_v8 = vshrl.u32 %v7573_v3, %v809_v37  ;;  %v837_v61 = vsel %vm827_vm12, %v834_v44, %v836_v42  ;;  %v838_v31 = vsel %vm826_vm5, %v816_v35, %v819_v49  ;;  %v764_v62 = vshrl.u32 %v746_v24, %v762_v33 }
 0x169   :  { %v839_v58 = vsel %vm829_vm7, %v825_v19, 1326507024  ;;  %v5052_v23 = vmul.u32.u64.low %v5001_v47, %v837_v61  ;;  %v5053_v36 = vmul.u32.u64.high %v5001_v47, %v837_v61, %v5052_v23  ;;  %v4034_v40 = vmin.u32 %v964_v14, %v5041_v63 }
 0x16a   :  { %v830_v20 = vsel %vm826_vm5, %v810_v8, %v813_v0  ;;  %v832_v1 = vsel %vm828_vm11, %v816_v35, %v831_v10  ;;  %v840_v37 = vsel %vm828_vm11, %v822_v55, %v839_v58  ;;  %v763_v44 = vshll.u32 %v4944_v21, %v4994_v54  ;;  %v5071_v55 = vpop.f32.mrb[7].mxu0 }
 0x16b   :  { %v769_v49 = vor.u32 4788187, %v768_v12  ;;  %v841_v24 = vsel %vm827_vm12, %v838_v31, %v840_v37  ;;  %v4037_v33 = vadd.s32 4294967169, %v1006_v45  ;;  %v671_v19 = vsel %vm588_vm4, %v670_v18, %v669_v11 }
 0x16c   :  { %v966_v42 = vclz %v4034_v40  ;;  %v5066_v61 = vmul.u32.u64.low %v5001_v47, %v841_v24  ;;  %v5067_v14 = vmul.u32.u64.high %v5001_v47, %v841_v24, %v5066_v61  ;;  %v765_v8 = vor.u32 %v764_v62, %v763_v44 }
 0x16d   :  { %v833_v10 = vsel %vm827_vm12, %v830_v20, %v832_v1  ;;  %v852_v0 = vadd.s32 1, %v5053_v36  ;;  %v1012_v35 = vadd.s32 1, %v4037_v33  ;;  %v7691_v31 = vsel %vm4877_vm6, 0, %v4892_v46 }
 0x16e   :  { %v5077_v12 = vadd.s32 3, %v7691_v31  ;;  %4330 = vsinq.f32 %v4978_v6  ;;  %v5080_v21 = vadd.s32 3, %v779_v28  ;;  %v4035_v54 = vadd.s32 4294967294, %v966_v42  ;;  %v5091_v6 = vpop.permute.xlu1 %48 }
 0x16f   :  { %v5085_v45 = vsel %vm5037_vm8, %v4605_v56, %v671_v19  ;;  %v770_v11 = vand.u32 2147483647, %v769_v49  ;;  %v1010_v25 = vor.u32 8388608, %v5029_v59  ;;  %vm1013_vm13 = vcmp.gt.s32.totalorder %v1012_v35, 0 }
 0x170   :  { %7692 = vst [vmem:[#allocation17_spill] sm:$0xff] %v5077_v12  ;;  %7693 = vst [vmem:[#allocation18_spill] sm:$0xff] %v5080_v21  ;;  %vm4036_vm14 = vcmp.lt.s32.totalorder %v4035_v54, 0  ;;  %v849_v4 = vmul.u32 %v5001_v47, %v833_v10  ;;  %vm851_vm6 = vc.u32 %v5067_v14, %v5052_v23  ;;  %v1014_v46 = vsel %vm1013_vm13, %v1012_v35, 0 }
 0x171   :  { %v772_v18 = vcvt.s32.f32 %v765_v8  ;;  %v5093_v1 = vsel %vm4036_vm14, 0, %v4035_v54  ;;  %v853_v28 = vsel %vm851_vm6, %v852_v0, %v5053_v36  ;;  %v1016_v62 = vand.u32 31, %v1014_v46 }
 0x172   :  { %v954_v58 = vadd.s32 %v4964_v2, %v4981_v26  ;;  %v854_v40 = vadd.s32 %v853_v28, %v849_v4  ;;  %v5101_v47 = vadd.f32 %v4623_v16, %v5091_v6  ;;  %v970_v37 = vsub.s32 32, %v5093_v1 }
 0x173   :  { %v5103_v20 = vmul.f32 %v772_v18, %v770_v11  ;;  %v1017_v44 = vsub.s32 32, %v1016_v62  ;;  %v5106_v49 = vshll.u32 %v1010_v25, 8  ;;  %v974_v36 = vsub.s32 4294967266, %v5093_v1 }
 0x174   :  { %7694 = vst [vmem:[#allocation19_spill] sm:$0xff] %v5101_v47  ;;  %v855_v24 = vadd.s32 536870912, %v854_v40  ;;  %v1019_v33 = vshll.u32 %v7573_v3, %v1016_v62  ;;  %v7695_v2 = vmov 2475754826   ;;  %v7696_v42 = vmov 2131351028  }
 0x175   :  { %v1022_v26 = vshll.u32 %v7695_v2, %v1016_v62  ;;  %v1020_v19 = vshrl.u32 %v7695_v2, %v1017_v44  ;;  %v1023_v61 = vshrl.u32 %v7696_v42, %v1017_v44  ;;  %v1025_v16 = vshll.u32 %v7696_v42, %v1016_v62 }
 0x176   :  { %v7697_v8 = vmov 2102212464   ;;  %v5115_v0 = vshrl.u32 %v855_v24, 30  ;;  %v1015_v35 = vshrl.u32 %v1014_v46, 5  ;;  %v1029_v54 = vshrl.u32 %v7684_v27, %v1017_v44 }
 0x177   :  { %v1026_v10 = vshrl.u32 %v7697_v8, %v1017_v44  ;;  %v1028_v31 = vshll.u32 %v7697_v8, %v1016_v62  ;;  %v1021_v11 = vor.u32 %v1020_v19, %v1019_v33  ;;  %v1024_v25 = vor.u32 %v1023_v61, %v1022_v26 }
 0x178   :  { %v5120_v28 = vpop.eup %4330  ;;  %v857_v59 = vshll.u32 %v5115_v0, 30  ;;  %v1109_v12 = vand.u32 2139095040, %v5101_v47  ;;  %v5126_v24 = vadd.f32 %v4680_v50, %v5091_v6  ;;  %vm900_vm0 = vcmp.lt.s32.totalorder %v4818_v39, 0 }
 0x179   :  { %v1027_v4 = vor.u32 %v1026_v10, %v1025_v16  ;;  %v1030_v3 = vor.u32 %v1029_v54, %v1028_v31  ;;  %v972_v46 = vshrl.u32 %v954_v58, %v970_v37  ;;  %v975_v21 = vadd.s32 127, %v974_v36 }
 0x17a   :  { %7698 = vst [vmem:[#allocation20_spill] sm:$0xff] %v5126_v24  ;;  %v1031_v33 = vshll.u32 %v7684_v27, %v1016_v62  ;;  %v1032_v26 = vshrl.u32 %v7685_v52, %v1017_v44  ;;  %v5131_v19 = vsub.s32 %v854_v40, %v857_v59  ;;  %vm1034_vm1 = vcmp.lt.s32.totalorder %v1015_v35, 1 }
 0x17b   :  { %vm1036_vm3 = vcmp.lt.s32.totalorder %v1015_v35, 3  ;;  %vm1037_vm5 = vcmp.lt.s32.totalorder %v1015_v35, 4  ;;  %v1042_v10 = vsel %vm1034_vm1, %v1021_v11, %v1024_v25  ;;  %v7699_v54 = vmov 683565275  }
 0x17c   :  { %v1033_v61 = vor.u32 %v1032_v26, %v1031_v33  ;;  %v1039_v16 = vsel %vm1037_vm5, %v1027_v4, 2102212464  ;;  %v1043_v31 = vsel %vm1037_vm5, %v1030_v3, 920167782  ;;  %v860_v50 = vsub.s32 0, %v5131_v19 }
 0x17d   :  { %v1018_v18 = vshrl.u32 %v7699_v54, %v1017_v44  ;;  %vm1035_vm7 = vcmp.lt.s32.totalorder %v1015_v35, 2  ;;  %v1044_v58 = vsel %vm1036_vm3, %v1027_v4, %v1043_v31  ;;  %v976_v62 = vshll.u32 %v975_v21, 23 }
 0x17e   :  { %v1045_v37 = vsel %vm1035_vm7, %v1042_v10, %v1044_v58  ;;  %v1046_v59 = vsel %vm1034_vm1, %v1024_v25, %v1027_v4  ;;  %v1047_v40 = vsel %vm1037_vm5, %v1033_v61, 1326507024  ;;  %v4030_v36 = vmin.u32 %v860_v50, %v5131_v19 }
 0x17f   :  { %v1038_v33 = vsel %vm1034_vm1, %v1018_v18, %v1021_v11  ;;  %v1040_v26 = vsel %vm1036_vm3, %v1024_v25, %v1039_v16  ;;  %v1048_v5 = vsel %vm1036_vm3, %v1030_v3, %v1047_v40  ;;  %v7700_v38 = vand.u32 2147483647, %v4818_v39 }
 0x180   :  { %v1049_v21 = vsel %vm1035_vm7, %v1046_v59, %v1048_v5  ;;  %v5151_v10 = vmul.u32.u64.low %v5106_v49, %v1045_v37  ;;  %v5152_v4 = vmul.u32.u64.high %v5106_v49, %v1045_v37, %v5151_v10  ;;  %v1110_v61 = vshrl.u32 %v1109_v12, 23 }
 0x181   :  { %vm5145_vm11 = vcmp.le.f32.partialorder %v7700_v38, 0.7853982  ;;  %v774_v11 = vxor.u32 2147483648, %v5103_v20  ;;  %v862_v18 = vclz %v4030_v36  ;;  %v971_v38 = vshll.u32 %v5041_v63, %v5093_v1 }
 0x182   :  { %v5157_v25 = vmul.u32.u64.low %v5106_v49, %v1049_v21  ;;  %v5158_v3 = vmul.u32.u64.high %v5106_v49, %v1049_v21, %v5157_v25  ;;  %v977_v16 = vor.u32 4788187, %v976_v62  ;;  %v1041_v31 = vsel %vm1035_vm7, %v1038_v33, %v1040_v26 }
 0x183   :  { %v4041_v5 = vadd.s32 4294967169, %v1110_v61  ;;  %4332 = vcosq.f32 %v5085_v45  ;;  %v7703_v50 = vsub.s32 4, %v5016_v22  ;;  %v4031_v58 = vadd.s32 4294967294, %v862_v18 }
 0x184   :  { %v7704_v37 = vand.u32 2147483647, %v5101_v47  ;;  %v973_v40 = vor.u32 %v972_v46, %v971_v38  ;;  %v1060_v63 = vadd.s32 1, %v5152_v4  ;;  %v1317_v35 = vand.u32 2139095040, %v5126_v24 }
 0x185   :  { %v5169_v12 = vsel %vm900_vm0, %v7703_v50, %v5016_v22  ;;  %v1116_v1 = vadd.s32 1, %v4041_v5  ;;  %v775_v62 = vsel %vm692_vm15, %v774_v11, %v5103_v20  ;;  %vm4032_vm12 = vcmp.lt.s32.totalorder %v4031_v58, 0  ;;  %v5181_v22 = vpop.f32.mrb[7].mxu1 }
 0x186   :  { %v1113_v59 = vand.u32 8388607, %v7704_v37  ;;  %v1057_v36 = vmul.u32 %v5106_v49, %v1041_v31  ;;  %vm1059_vm13 = vc.u32 %v5158_v3, %v5151_v10  ;;  %v978_v33 = vand.u32 2147483647, %v977_v16 }
 0x187   :  { %v865_v26 = vsel %vm4032_vm12, 0, %v4031_v58  ;;  %v1061_v46 = vsel %vm1059_vm13, %v1060_v63, %v5152_v4  ;;  %vm1117_vm14 = vcmp.gt.s32.totalorder %v1116_v1, 0  ;;  %4334 = vsinq.f32 %v5085_v45 }
 0x188   :  { %v870_v21 = vsub.s32 4294967266, %v865_v26  ;;  %v1062_v61 = vadd.s32 %v1061_v46, %v1057_v36  ;;  %v1114_v18 = vor.u32 8388608, %v1113_v59  ;;  %v980_v25 = vcvt.s32.f32 %v973_v40 }
 0x189   :  { %v866_v20 = vsub.s32 32, %v865_v26  ;;  %v1118_v11 = vsel %vm1117_vm14, %v1116_v1, 0  ;;  %v1318_v38 = vshrl.u32 %v1317_v35, 23  ;;  %v5188_v49 = vsel %vm4989_vm2, %v4761_v9, %v775_v62 }
 0x18a   :  { %v871_v4 = vadd.s32 127, %v870_v21  ;;  %v1063_v31 = vadd.s32 536870912, %v1062_v61  ;;  %v5193_v5 = vmul.f32 %v980_v25, %v978_v33  ;;  %v850_v45 = vadd.s32 %v5052_v23, %v5067_v14 }
 0x18b   :  { %v1120_v50 = vand.u32 31, %v1118_v11  ;;  %v867_v37 = vshll.u32 %v5131_v19, %v865_v26  ;;  %v5201_v40 = vshll.u32 %v1114_v18, 8  ;;  %v1119_v1 = vshrl.u32 %v1118_v11, 5 }
 0x18c   :  { %v872_v59 = vshll.u32 %v871_v4, 23  ;;  %v5199_v48 = vshrl.u32 %v1063_v31, 30  ;;  %v868_v63 = vshrl.u32 %v850_v45, %v866_v20  ;;  %v4049_v62 = vadd.s32 4294967169, %v1318_v38 }
 0x18d   :  { %v1121_v35 = vsub.s32 32, %v1120_v50  ;;  %v5203_v36 = vpop.eup %4332  ;;  %v1123_v23 = vshll.u32 %v7699_v54, %v1120_v50  ;;  %v1126_v14 = vshll.u32 %v7695_v2, %v1120_v50  ;;  %v1129_v46 = vshll.u32 %v7696_v42, %v1120_v50 }
 0x18e   :  { %7705 = vst [vmem:[#allocation21_spill] sm:$0xff] %v5199_v48  ;;  %7706 = vst [vmem:[#allocation22_spill] sm:$0xff] %v5203_v36  ;;  %v1065_v33 = vshll.u32 %v5199_v48, 30  ;;  %v873_v19 = vor.u32 4788187, %v872_v59  ;;  %v1132_v20 = vshll.u32 %v7697_v8, %v1120_v50  ;;  %v1135_v38 = vshll.u32 %v7684_v27, %v1120_v50 }
 0x18f   :  { %v1124_v26 = vshrl.u32 %v7695_v2, %v1121_v35  ;;  %v1127_v21 = vshrl.u32 %v7696_v42, %v1121_v35  ;;  %v1130_v18 = vshrl.u32 %v7697_v8, %v1121_v35  ;;  %v1133_v11 = vshrl.u32 %v7684_v27, %v1121_v35 }
 0x190   :  { %v5212_v25 = vsub.s32 %v1062_v61, %v1065_v33  ;;  %v1136_v16 = vshrl.u32 %v7685_v52, %v1121_v35  ;;  %v869_v58 = vor.u32 %v868_v63, %v867_v37  ;;  %v1324_v30 = vadd.s32 1, %v4049_v62 }
 0x191   :  { %v1125_v4 = vor.u32 %v1124_v26, %v1123_v23  ;;  %v1128_v31 = vor.u32 %v1127_v21, %v1126_v14  ;;  %v1131_v45 = vor.u32 %v1130_v18, %v1129_v46  ;;  %v5218_v59 = vpop.eup %4334  ;;  %v1134_v13 = vor.u32 %v1133_v11, %v1132_v20 }
 0x192   :  { %7707 = vst [vmem:[#allocation23_spill] sm:$0xff] %v5218_v59  ;;  %v1068_v9 = vsub.s32 0, %v5212_v25  ;;  %v874_v61 = vand.u32 2147483647, %v873_v19  ;;  %v1122_v33 = vshrl.u32 %v7699_v54, %v1121_v35  ;;  %v1137_v36 = vor.u32 %v1136_v16, %v1135_v38 }
 0x193   :  { %vm1138_vm15 = vcmp.lt.s32.totalorder %v1119_v1, 1  ;;  %vm1140_vm2 = vcmp.lt.s32.totalorder %v1119_v1, 3  ;;  %vm1141_vm6 = vcmp.lt.s32.totalorder %v1119_v1, 4  ;;  %vm1139_vm1 = vcmp.lt.s32.totalorder %v1119_v1, 2 }
 0x194   :  { %v4038_v32 = vmin.u32 %v1068_v9, %v5212_v25  ;;  %v1146_v50 = vsel %vm1138_vm15, %v1125_v4, %v1128_v31  ;;  %v1143_v23 = vsel %vm1141_vm6, %v1131_v45, 2102212464  ;;  %v1147_v14 = vsel %vm1141_vm6, %v1134_v13, 920167782 }
 0x195   :  { %v1150_v46 = vsel %vm1138_vm15, %v1128_v31, %v1131_v45  ;;  %v1151_v26 = vsel %vm1141_vm6, %v1137_v36, 1326507024  ;;  %v1148_v37 = vsel %vm1140_vm2, %v1131_v45, %v1147_v14  ;;  %v7708_v63 = vand.u32 2147483647, %v5126_v24 }
 0x196   :  { %v1070_v21 = vclz %v4038_v32  ;;  %v876_v35 = vcvt.s32.f32 %v869_v58  ;;  %v1142_v16 = vsel %vm1138_vm15, %v1122_v33, %v1125_v4  ;;  %v1149_v19 = vsel %vm1139_vm1, %v1146_v50, %v1148_v37 }
 0x197   :  { %v5226_v62 = vand.u32 8388607, %v7708_v63  ;;  %v1152_v9 = vsel %vm1140_vm2, %v1134_v13, %v1151_v26  ;;  %v1144_v20 = vsel %vm1140_vm2, %v1128_v31, %v1143_v23  ;;  %vm1325_vm3 = vcmp.gt.s32.totalorder %v1324_v30, 0 }
 0x198   :  { %v4039_v18 = vadd.s32 4294967294, %v1070_v21  ;;  %v1153_v11 = vsel %vm1139_vm1, %v1150_v46, %v1152_v9  ;;  %v877_v32 = vmul.f32 %v876_v35, %v874_v61  ;;  %v1326_v45 = vsel %vm1325_vm3, %v1324_v30, 0 }
 0x199   :  { %v5233_v36 = vmul.u32.u64.low %v5201_v40, %v1153_v11  ;;  %v5234_v38 = vmul.u32.u64.high %v5201_v40, %v1153_v11, %v5233_v36  ;;  %4336 = vcosq.f32 %v5188_v49  ;;  %v1145_v31 = vsel %vm1139_vm1, %v1142_v16, %v1144_v20 }
 0x19a   :  { %vm4040_vm5 = vcmp.lt.s32.totalorder %v4039_v18, 0  ;;  %v5238_v58 = vmul.u32.u64.low %v5201_v40, %v1149_v19  ;;  %v5239_v4 = vmul.u32.u64.high %v5201_v40, %v1149_v19, %v5238_v58  ;;  %4338 = vsinq.f32 %v5188_v49 }
 0x19b   :  { %v1073_v13 = vsel %vm4040_vm5, 0, %v4039_v18  ;;  %v1328_v33 = vand.u32 31, %v1326_v45  ;;  %v982_v61 = vxor.u32 2147483648, %v5193_v5  ;;  %vm796_vm7 = vcmp.lt.s32.totalorder %v4885_v53, 0 }
 0x19c   :  { %v1058_v30 = vadd.s32 %v5151_v10, %v5158_v3  ;;  %v1074_v50 = vsub.s32 32, %v1073_v13  ;;  %v1078_v23 = vsub.s32 4294967266, %v1073_v13  ;;  %v878_v14 = vxor.u32 2147483648, %v877_v32 }
 0x19d   :  { %vm1163_vm12 = vc.u32 %v5234_v38, %v5238_v58  ;;  %v1322_v46 = vor.u32 8388608, %v5226_v62  ;;  %v1329_v49 = vsub.s32 32, %v1328_v33  ;;  %v1161_v1 = vmul.u32 %v5201_v40, %v1145_v31 }
 0x19e   :  { %v1079_v26 = vadd.s32 127, %v1078_v23  ;;  %v1164_v21 = vadd.s32 1, %v5239_v4  ;;  %v5253_v37 = vshrl.u32 %v1326_v45, 5  ;;  %v1076_v63 = vshrl.u32 %v1058_v30, %v1074_v50 }
 0x19f   :  { %v1331_v35 = vshll.u32 %v7699_v54, %v1328_v33  ;;  %v1332_v10 = vshrl.u32 %v7695_v2, %v1329_v49  ;;  %v1335_v3 = vshrl.u32 %v7696_v42, %v1329_v49  ;;  %v1334_v62 = vshll.u32 %v7695_v2, %v1328_v33 }
 0x1a0   :  { %v1080_v16 = vshll.u32 %v1079_v26, 23  ;;  %v1165_v19 = vsel %vm1163_vm12, %v1164_v21, %v5239_v4  ;;  %v1338_v9 = vshrl.u32 %v7697_v8, %v1329_v49  ;;  %v1075_v40 = vshll.u32 %v5212_v25, %v1073_v13 }
 0x1a1   :  { %v1166_v18 = vadd.s32 %v1165_v19, %v1161_v1  ;;  %v1333_v20 = vor.u32 %v1332_v10, %v1331_v35  ;;  %v1337_v11 = vshll.u32 %v7696_v42, %v1328_v33  ;;  %v1336_v45 = vor.u32 %v1335_v3, %v1334_v62 }
 0x1a2   :  { %v1081_v36 = vor.u32 4788187, %v1080_v16  ;;  %v1340_v31 = vshll.u32 %v7697_v8, %v1328_v33  ;;  %v1341_v30 = vshrl.u32 %v7684_v27, %v1329_v49  ;;  %v1343_v4 = vshll.u32 %v7684_v27, %v1328_v33 }
 0x1a3   :  { %v1167_v50 = vadd.s32 536870912, %v1166_v18  ;;  %v1339_v23 = vor.u32 %v1338_v9, %v1337_v11  ;;  %v1344_v26 = vshrl.u32 %v7685_v52, %v1329_v49  ;;  %v5267_v21 = vpop.eup %4336  ;;  %v983_v25 = vsel %vm900_vm0, %v982_v61, %v5193_v5 }
 0x1a4   :  { %7709 = vst [vmem:[#allocation24_spill] sm:$0xff] %v5267_v21  ;;  %v1077_v13 = vor.u32 %v1076_v63, %v1075_v40  ;;  %v1342_v1 = vor.u32 %v1341_v30, %v1340_v31  ;;  %v5274_v35 = vadd.f32 %v4744_v7, %v5091_v6  ;;  %v5276_v10 = vpop.eup %4338  ;;  %v7711_v3 = vand.u32 2147483647, %v4885_v53 }
 0x1a5   :  { %7710 = vst [vmem:[#allocation25_spill] sm:$0xff] %v5276_v10  ;;  %v879_v16 = vsel %vm796_vm7, %v878_v14, %v877_v32  ;;  %v1168_v19 = vshrl.u32 %v1167_v50, 30  ;;  %v1345_v62 = vor.u32 %v1344_v26, %v1343_v4  ;;  %vm1349_vm0 = vcmp.lt.s32.totalorder %v5253_v37, 4 }
 0x1a6   :  { %vm5280_vm13 = vcmp.le.f32.partialorder %v7711_v3, 0.7853982  ;;  %v1082_v5 = vand.u32 2147483647, %v1081_v36  ;;  %vm1108_vm14 = vcmp.lt.s32.totalorder %v5101_v47, 0  ;;  %vm1346_vm15 = vcmp.lt.s32.totalorder %v5253_v37, 1 }
 0x1a7   :  { %vm1348_vm2 = vcmp.lt.s32.totalorder %v5253_v37, 3  ;;  %v1355_v7 = vsel %vm1349_vm0, %v1342_v1, 920167782  ;;  %v1169_v61 = vshll.u32 %v1168_v19, 30  ;;  %v1354_v63 = vsel %vm1346_vm15, %v1333_v20, %v1336_v45 }
 0x1a8   :  { %v1356_v9 = vsel %vm1348_vm2, %v1339_v23, %v1355_v7  ;;  %v1362_v32 = vshll.u32 %v1322_v46, 8  ;;  %v1084_v14 = vcvt.s32.f32 %v1077_v13  ;;  %v1351_v40 = vsel %vm1349_vm0, %v1339_v23, 2102212464 }
 0x1a9   :  { %v1358_v11 = vsel %vm1346_vm15, %v1336_v45, %v1339_v23  ;;  %v1359_v36 = vsel %vm1349_vm0, %v1345_v62, 1326507024  ;;  %vm7604_vm6 = vcmp.lt.s32.totalorder %v4972_v51, 0  ;;  %v5297_v31 = vsub.s32 %v1166_v18, %v1169_v61 }
 0x1aa   :  { %v1330_v30 = vshrl.u32 %v7699_v54, %v1329_v49  ;;  %vm1347_vm1 = vcmp.lt.s32.totalorder %v5253_v37, 2  ;;  %v1360_v50 = vsel %vm1348_vm2, %v1342_v1, %v1359_v36  ;;  %v1085_v4 = vmul.f32 %v1084_v14, %v1082_v5 }
 0x1ab   :  { %v1357_v46 = vsel %vm1347_vm1, %v1354_v63, %v1356_v9  ;;  %v1361_v26 = vsel %vm1347_vm1, %v1358_v11, %v1360_v50  ;;  %v1213_v23 = vand.u32 2139095040, %v5274_v35  ;;  %v1172_v13 = vsub.s32 0, %v5297_v31 }
 0x1ac   :  { %v1192_v18 = vsub.s32 4, %v1168_v19  ;;  %v1350_v49 = vsel %vm1346_vm15, %v1330_v30, %v1333_v20  ;;  %v1352_v3 = vsel %vm1348_vm2, %v1336_v45, %v1351_v40  ;;  %v986_v1 = vsel %vm5145_vm11, %v4818_v39, %v983_v25 }
 0x1ad   :  { %v7714_v62 = vand.u32 2147483647, %v4972_v51  ;;  %v7715_v5 = vmov 0  ;;  %v5322_v7 = vmul.u32.u64.low %v1362_v32, %v1361_v26  ;;  %v5323_v61 = vmul.u32.u64.high %v1362_v32, %v1361_v26, %v5322_v7 }
 0x1ae   :  { %v1214_v63 = vshrl.u32 %v1213_v23, 23  ;;  %v4042_v9 = vmin.u32 %v1172_v13, %v5297_v31  ;;  %v5326_v20 = vmul.u32.u64.low %v1362_v32, %v1357_v46  ;;  %v5327_v14 = vmul.u32.u64.high %v1362_v32, %v1357_v46, %v5326_v20 }
 0x1af   :  { %vm5318_vm3 = vcmp.le.f32.partialorder %v7714_v62, 0.7853982  ;;  %v7583_v45 = vand.u32 2147483647, %v5274_v35  ;;  %v882_v25 = vsel %vm5280_vm13, %v4885_v53, %v879_v16  ;;  %v1086_v40 = vxor.u32 2147483648, %v1085_v4 }
 0x1b0   :  { %v7716_v5 = vsel %vm5318_vm3, 4294967295, %v7715_v5  ;;  %v1353_v11 = vsel %vm1347_vm1, %v1350_v49, %v1352_v3  ;;  %v4045_v36 = vadd.s32 4294967169, %v1214_v63  ;;  %4340 = vcosq.f32 %v986_v1 }
 0x1b1   :  { %7717 = vst [vmem:[#allocation26_spill] sm:$0xff] %v7716_v5  ;;  %v7718_v30 = vsel %vm5145_vm11, 0, %v5169_v12  ;;  %v1174_v46 = vclz %v4042_v9  ;;  %v1193_v26 = vsel %vm1108_vm14, %v1192_v18, %v1168_v19  ;;  %4342 = vsinq.f32 %v986_v1 }
 0x1b2   :  { %v5340_v50 = vadd.s32 3, %v7718_v30  ;;  %v7720_v23 = vand.u32 2147483647, %v5101_v47  ;;  %vm1371_vm12 = vc.u32 %v5323_v61, %v5326_v20  ;;  %v1220_v37 = vadd.s32 1, %v4045_v36 }
 0x1b3   :  { %4344 = vcosq.f32 %v882_v25  ;;  %v4043_v44 = vadd.s32 4294967294, %v1174_v46  ;;  %v1369_v12 = vmul.u32 %v1362_v32, %v1353_v11  ;;  %v1372_v13 = vadd.s32 1, %v5327_v14 }
 0x1b4   :  { %7719 = vst [vmem:[#allocation27_spill] sm:$0xff] %v5340_v50  ;;  %vm5346_vm5 = vcmp.le.f32.partialorder %v7720_v23, 0.7853982  ;;  %v1087_v49 = vsel %vm7604_vm6, %v1086_v40, %v1085_v4  ;;  %v1217_v18 = vand.u32 8388607, %v7583_v45  ;;  %vm1221_vm11 = vcmp.gt.s32.totalorder %v1220_v37, 0 }
 0x1b5   :  { %v1195_v19 = vsel %vm5346_vm5, 0, %v1193_v26  ;;  %vm4044_vm0 = vcmp.lt.s32.totalorder %v4043_v44, 0  ;;  %v1373_v3 = vsel %vm1371_vm12, %v1372_v13, %v5327_v14  ;;  %v1222_v1 = vsel %vm1221_vm11, %v1220_v37, 0 }
 0x1b6   :  { %v5362_v62 = vadd.f32 %v4807_v15, %v5091_v6  ;;  %4346 = vsinq.f32 %v882_v25  ;;  %v1177_v32 = vsel %vm4044_vm0, 0, %v4043_v44  ;;  %v1374_v7 = vadd.s32 %v1373_v3, %v1369_v12 }
 0x1b7   :  { %v1224_v63 = vand.u32 31, %v1222_v1  ;;  %v5367_v4 = vsel %vm5318_vm3, %v4972_v51, %v1087_v49  ;;  %v1162_v9 = vadd.s32 %v5238_v58, %v5234_v38  ;;  %v1178_v40 = vsub.s32 32, %v1177_v32 }
 0x1b8   :  { %v1182_v11 = vsub.s32 4294967266, %v1177_v32  ;;  %v5371_v14 = vadd.s32 3, %v1195_v19  ;;  %v1375_v36 = vadd.s32 536870912, %v1374_v7  ;;  %v1218_v30 = vor.u32 8388608, %v1217_v18 }
 0x1b9   :  { %v1225_v15 = vsub.s32 32, %v1224_v63  ;;  %v1227_v25 = vshll.u32 %v7699_v54, %v1224_v63  ;;  %v1230_v46 = vshll.u32 %v7695_v2, %v1224_v63  ;;  %v1421_v26 = vand.u32 2139095040, %v5362_v62 }
 0x1ba   :  { %7723 = vst [vmem:[#allocation28_spill] sm:$0xff] %v5371_v14  ;;  %v1183_v6 = vadd.s32 127, %v1182_v11  ;;  %v1180_v23 = vshrl.u32 %v1162_v9, %v1178_v40  ;;  %v5376_v37 = vshrl.u32 %v1375_v36, 30  ;;  %v5380_v58 = vpop.eup %4340  ;;  %v1233_v13 = vshll.u32 %v7696_v42, %v1224_v63 }
 0x1bb   :  { %v1228_v44 = vshrl.u32 %v7695_v2, %v1225_v15  ;;  %v1231_v38 = vshrl.u32 %v7696_v42, %v1225_v15  ;;  %7724 = vst [vmem:[#allocation29_spill] sm:$0xff] %v5380_v58  ;;  %v1234_v49 = vshrl.u32 %v7697_v8, %v1225_v15  ;;  %v1237_v19 = vshrl.u32 %v7684_v27, %v1225_v15  ;;  %v5385_v18 = vpop.eup %4342 }
 0x1bc   :  { %v1184_v12 = vshll.u32 %v1183_v6, 23  ;;  %7725 = vst [vmem:[#allocation30_spill] sm:$0xff] %v5385_v18  ;;  %v1179_v3 = vshll.u32 %v5297_v31, %v1177_v32  ;;  %v1377_v9 = vshll.u32 %v5376_v37, 30  ;;  %v1223_v40 = vshrl.u32 %v1222_v1, 5 }
 0x1bd   :  { %v1236_v11 = vshll.u32 %v7697_v8, %v1224_v63  ;;  %v5390_v36 = vpop.eup %4344  ;;  %v1229_v14 = vor.u32 %v1228_v44, %v1227_v25  ;;  %v1232_v6 = vor.u32 %v1231_v38, %v1230_v46  ;;  %v1235_v39 = vor.u32 %v1234_v49, %v1233_v13 }
 0x1be   :  { %v1185_v45 = vor.u32 4788187, %v1184_v12  ;;  %v5392_v58 = vsub.s32 %v1374_v7, %v1377_v9  ;;  %v1239_v21 = vshll.u32 %v7684_v27, %v1224_v63  ;;  %v1240_v18 = vshrl.u32 %v7685_v52, %v1225_v15 }
 0x1bf   :  { %v1238_v50 = vor.u32 %v1237_v19, %v1236_v11  ;;  %v1181_v10 = vor.u32 %v1180_v23, %v1179_v3  ;;  %v1258_v31 = vshll.u32 %v1218_v30, 8  ;;  %v7592_v32 = vand.u32 2147483647, %v5362_v62 }
 0x1c0   :  { %v1422_v1 = vshrl.u32 %v1421_v26, 23  ;;  %v5397_v5 = vpop.eup %4346  ;;  %v1380_v51 = vsub.s32 0, %v5392_v58  ;;  %v1226_v25 = vshrl.u32 %v7699_v54, %v1225_v15  ;;  %v1241_v46 = vor.u32 %v1240_v18, %v1239_v21 }
 0x1c1   :  { %vm1242_vm15 = vcmp.lt.s32.totalorder %v1223_v40, 1  ;;  %v1186_v7 = vand.u32 2147483647, %v1185_v45  ;;  %vm1244_vm2 = vcmp.lt.s32.totalorder %v1223_v40, 3  ;;  %vm1245_vm1 = vcmp.lt.s32.totalorder %v1223_v40, 4 }
 0x1c2   :  { %v1250_v44 = vsel %vm1242_vm15, %v1229_v14, %v1232_v6  ;;  %v4050_v63 = vmin.u32 %v1380_v51, %v5392_v58  ;;  %v1247_v38 = vsel %vm1245_vm1, %v1235_v39, 2102212464  ;;  %v1251_v23 = vsel %vm1245_vm1, %v1238_v50, 920167782 }
 0x1c3   :  { %v1254_v30 = vsel %vm1242_vm15, %v1232_v6, %v1235_v39  ;;  %v1188_v12 = vcvt.s32.f32 %v1181_v10  ;;  %vm1243_vm12 = vcmp.lt.s32.totalorder %v1223_v40, 2  ;;  %v1252_v26 = vsel %vm1244_vm2, %v1235_v39, %v1251_v23  ;;  %v5412_v10 = vpop.permute.xlu1 %53 }
 0x1c4   :  { %v1255_v13 = vsel %vm1245_vm1, %v1241_v46, 1326507024  ;;  %vm1316_vm11 = vcmp.lt.s32.totalorder %v5126_v24, 0  ;;  %v1382_v49 = vclz %v4050_v63  ;;  %v1246_v15 = vsel %vm1242_vm15, %v1226_v25, %v1229_v14 }
 0x1c5   :  { %v1253_v21 = vsel %vm1243_vm12, %v1250_v44, %v1252_v26  ;;  %v1256_v45 = vsel %vm1244_vm2, %v1238_v50, %v1255_v13  ;;  %v1248_v19 = vsel %vm1244_vm2, %v1232_v6, %v1247_v38  ;;  %v1189_v39 = vmul.f32 %v1188_v12, %v1186_v7 }
 0x1c6   :  { %v1257_v51 = vsel %vm1243_vm12, %v1254_v30, %v1256_v45  ;;  %v5408_v18 = vmul.u32.u64.low %v1258_v31, %v1253_v21  ;;  %v5409_v3 = vmul.u32.u64.high %v1258_v31, %v1253_v21, %v5408_v18  ;;  %v4051_v9 = vadd.s32 4294967294, %v1382_v49 }
 0x1c7   :  { %v5414_v11 = vmul.u32.u64.low %v1258_v31, %v1257_v51  ;;  %v5415_v46 = vmul.u32.u64.high %v1258_v31, %v1257_v51, %v5414_v11  ;;  %4348 = vcosq.f32 %v5367_v4  ;;  %v4053_v14 = vadd.s32 4294967169, %v1422_v1 }
 0x1c8   :  { %v1425_v50 = vand.u32 8388607, %v7592_v32  ;;  %v5422_v6 = vadd.f32 %v4906_v41, %v5412_v10  ;;  %v1370_v25 = vadd.s32 %v5326_v20, %v5323_v61  ;;  %vm4052_vm0 = vcmp.lt.s32.totalorder %v4051_v9, 0 }
 0x1c9   :  { %v1249_v7 = vsel %vm1243_vm12, %v1246_v15, %v1248_v19  ;;  %v5429_v44 = vadd.f32 %v4962_v43, %v5412_v10  ;;  %v1385_v63 = vsel %vm4052_vm0, 0, %v4051_v9  ;;  %v1400_v1 = vsub.s32 4, %v5376_v37 }
 0x1ca   :  { %v1268_v38 = vadd.s32 1, %v5409_v3  ;;  %v1428_v23 = vadd.s32 1, %v4053_v14  ;;  %v1190_v30 = vxor.u32 2147483648, %v1189_v39  ;;  %v1386_v12 = vsub.s32 32, %v1385_v63 }
 0x1cb   :  { %v1390_v41 = vsub.s32 4294967266, %v1385_v63  ;;  %v1426_v26 = vor.u32 8388608, %v1425_v50  ;;  %v1265_v13 = vmul.u32 %v1258_v31, %v1249_v7  ;;  %vm1267_vm15 = vc.u32 %v5415_v46, %v5408_v18 }
 0x1cc   :  { %vm1429_vm2 = vcmp.gt.s32.totalorder %v1428_v23, 0  ;;  %v1525_v61 = vand.u32 2139095040, %v5422_v6  ;;  %v1388_v20 = vshrl.u32 %v1370_v25, %v1386_v12  ;;  %v1269_v40 = vsel %vm1267_vm15, %v1268_v38, %v5409_v3 }
 0x1cd   :  { %v1391_v43 = vadd.s32 127, %v1390_v41  ;;  %v1430_v49 = vsel %vm1429_vm2, %v1428_v23, 0  ;;  %v5440_v15 = vsel %vm1316_vm11, %v1400_v1, %v5376_v37  ;;  %v1270_v21 = vadd.s32 %v1269_v40, %v1265_v13 }
 0x1ce   :  { %v1432_v45 = vand.u32 31, %v1430_v49  ;;  %v1522_v31 = vand.u32 2147483647, %v5422_v6  ;;  %v1191_v19 = vsel %vm1108_vm14, %v1190_v30, %v1189_v39  ;;  %v1387_v51 = vshll.u32 %v5392_v58, %v1385_v63 }
 0x1cf   :  { %v1392_v9 = vshll.u32 %v1391_v43, 23  ;;  %v5446_v11 = vshll.u32 %v1426_v26, 8  ;;  %v1271_v14 = vadd.s32 536870912, %v1270_v21  ;;  %v1431_v3 = vshrl.u32 %v1430_v49, 5 }
 0x1d0   :  { %v1433_v50 = vsub.s32 32, %v1432_v45  ;;  %v1526_v25 = vshrl.u32 %v1525_v61, 23  ;;  %v1389_v7 = vor.u32 %v1388_v20, %v1387_v51  ;;  %v1435_v37 = vshll.u32 %v7699_v54, %v1432_v45 }
 0x1d1   :  { %v1393_v38 = vor.u32 4788187, %v1392_v9  ;;  %v1438_v1 = vshll.u32 %v7695_v2, %v1432_v45  ;;  %v5450_v23 = vpop.eup %4348  ;;  %v5452_v12 = vshrl.u32 %v1271_v14, 30  ;;  %v1441_v63 = vshll.u32 %v7696_v42, %v1432_v45 }
 0x1d2   :  { %7726 = vst [vmem:[#allocation31_spill] sm:$0xff] %v5450_v23  ;;  %v1436_v39 = vshrl.u32 %v7695_v2, %v1433_v50  ;;  %v1439_v58 = vshrl.u32 %v7696_v42, %v1433_v50  ;;  %v1442_v30 = vshrl.u32 %v7697_v8, %v1433_v50  ;;  %v1444_v41 = vshll.u32 %v7697_v8, %v1432_v45 }
 0x1d3   :  { %7727 = vst [vmem:[#allocation32_spill] sm:$0xff] %v5452_v12  ;;  %v1445_v26 = vshrl.u32 %v7684_v27, %v1433_v50  ;;  %v1447_v13 = vshll.u32 %v7684_v27, %v1432_v45  ;;  %v7728_v61 = vand.u32 2147483647, %v5126_v24  ;;  %v1273_v43 = vshll.u32 %v5452_v12, 30 }
 0x1d4   :  { %v1437_v40 = vor.u32 %v1436_v39, %v1435_v37  ;;  %v1440_v49 = vor.u32 %v1439_v58, %v1438_v1  ;;  %v1448_v51 = vshrl.u32 %v7685_v52, %v1433_v50  ;;  %v1443_v9 = vor.u32 %v1442_v30, %v1441_v63 }
 0x1d5   :  { %vm5463_vm14 = vcmp.le.f32.partialorder %v7728_v61, 0.7853982  ;;  %v1446_v14 = vor.u32 %v1445_v26, %v1444_v41  ;;  %v4057_v32 = vadd.s32 4294967169, %v1526_v25  ;;  %v1529_v23 = vand.u32 8388607, %v1522_v31 }
 0x1d6   :  { %v1394_v59 = vand.u32 2147483647, %v1393_v38  ;;  %v5471_v45 = vsub.s32 %v1270_v21, %v1273_v43  ;;  %v1449_v48 = vor.u32 %v1448_v51, %v1447_v13  ;;  %vm1450_vm1 = vcmp.lt.s32.totalorder %v1431_v3, 1 }
 0x1d7   :  { %v1396_v61 = vcvt.s32.f32 %v1389_v7  ;;  %v1434_v56 = vshrl.u32 %v7699_v54, %v1433_v50  ;;  %vm1453_vm12 = vcmp.lt.s32.totalorder %v1431_v3, 4  ;;  %v1458_v12 = vsel %vm1450_vm1, %v1437_v40, %v1440_v49 }
 0x1d8   :  { %v1276_v37 = vsub.s32 0, %v5471_v45  ;;  %vm1452_vm0 = vcmp.lt.s32.totalorder %v1431_v3, 3  ;;  %v1455_v1 = vsel %vm1453_vm12, %v1443_v9, 2102212464  ;;  %v1459_v39 = vsel %vm1453_vm12, %v1446_v14, 920167782 }
 0x1d9   :  { %vm1451_vm15 = vcmp.lt.s32.totalorder %v1431_v3, 2  ;;  %v1460_v25 = vsel %vm1452_vm0, %v1443_v9, %v1459_v39  ;;  %v1462_v58 = vsel %vm1450_vm1, %v1440_v49, %v1443_v9  ;;  %v1463_v63 = vsel %vm1453_vm12, %v1449_v48, 1326507024 }
 0x1da   :  { %v1397_v30 = vmul.f32 %v1396_v61, %v1394_v59  ;;  %v4046_v21 = vmin.u32 %v1276_v37, %v5471_v45  ;;  %v1454_v38 = vsel %vm1450_vm1, %v1434_v56, %v1437_v40  ;;  %v1461_v41 = vsel %vm1451_vm15, %v1458_v12, %v1460_v25 }
 0x1db   :  { %v1456_v7 = vsel %vm1452_vm0, %v1440_v49, %v1455_v1  ;;  %v1464_v26 = vsel %vm1452_vm0, %v1446_v14, %v1463_v63  ;;  %v5478_v50 = vmul.u32.u64.low %v5446_v11, %v1461_v41  ;;  %v5479_v13 = vmul.u32.u64.high %v5446_v11, %v1461_v41, %v5478_v50 }
 0x1dc   :  { %4350 = vsinq.f32 %v5367_v4  ;;  %v1278_v43 = vclz %v4046_v21  ;;  %v1465_v51 = vsel %vm1451_vm15, %v1462_v58, %v1464_v26  ;;  %v5486_v48 = vadd.f32 %v5071_v55, %v5412_v10 }
 0x1dd   :  { %v1403_v56 = vsel %vm5463_vm14, 0, %v5440_v15  ;;  %v5492_v59 = vmul.u32.u64.low %v5446_v11, %v1465_v51  ;;  %v5493_v12 = vmul.u32.u64.high %v5446_v11, %v1465_v51, %v5492_v59  ;;  %v1532_v40 = vadd.s32 1, %v4057_v32 }
 0x1de   :  { %v5498_v4 = vsel %vm5346_vm5, %v5101_v47, %v1191_v19  ;;  %v1398_v49 = vxor.u32 2147483648, %v1397_v30  ;;  %v4047_v9 = vadd.s32 4294967294, %v1278_v43  ;;  %v1457_v14 = vsel %vm1451_vm15, %v1454_v38, %v1456_v7 }
 0x1df   :  { %v1476_v55 = vadd.s32 1, %v5479_v13  ;;  %v1530_v61 = vor.u32 8388608, %v1529_v23  ;;  %vm1533_vm2 = vcmp.gt.s32.totalorder %v1532_v40, 0  ;;  %v1733_v37 = vand.u32 2139095040, %v5429_v44 }
 0x1e0   :  { %v1266_v1 = vadd.s32 %v5408_v18, %v5415_v46  ;;  %vm4048_vm1 = vcmp.lt.s32.totalorder %v4047_v9, 0  ;;  %v1534_v32 = vsel %vm1533_vm2, %v1532_v40, 0  ;;  %v7601_v39 = vand.u32 2147483647, %v5429_v44 }
 0x1e1   :  { %v1281_v16 = vsel %vm4048_vm1, 0, %v4047_v9  ;;  %v1473_v19 = vmul.u32 %v5446_v11, %v1457_v14  ;;  %vm1475_vm5 = vc.u32 %v5493_v12, %v5478_v50  ;;  %v5509_v3 = vshrl.u32 %v1534_v32, 5 }
 0x1e2   :  { %v1399_v23 = vsel %vm1316_vm11, %v1398_v49, %v1397_v30  ;;  %v1282_v25 = vsub.s32 32, %v1281_v16  ;;  %v1286_v58 = vsub.s32 4294967266, %v1281_v16  ;;  %v1477_v63 = vsel %vm1475_vm5, %v1476_v55, %v5479_v13 }
 0x1e3   :  { %v1478_v18 = vadd.s32 %v1477_v63, %v1473_v19  ;;  %v1536_v46 = vand.u32 31, %v1534_v32  ;;  %v5514_v21 = vshll.u32 %v1530_v61, 8  ;;  %v1734_v38 = vshrl.u32 %v1733_v37, 23 }
 0x1e4   :  { %v1283_v41 = vshll.u32 %v5471_v45, %v1281_v16  ;;  %v1284_v11 = vshrl.u32 %v1266_v1, %v1282_v25  ;;  %v1287_v7 = vadd.s32 127, %v1286_v58  ;;  %vm1554_vm12 = vcmp.lt.s32.totalorder %v5509_v3, 1 }
 0x1e5   :  { %v1479_v26 = vadd.s32 536870912, %v1478_v18  ;;  %v1537_v43 = vsub.s32 32, %v1536_v46  ;;  %v1539_v51 = vshll.u32 %v7699_v54, %v1536_v46  ;;  %vm1555_vm11 = vcmp.lt.s32.totalorder %v5509_v3, 2 }
 0x1e6   :  { %vm1556_vm0 = vcmp.lt.s32.totalorder %v5509_v3, 3  ;;  %v5521_v30 = vpop.eup %4350  ;;  %v1285_v13 = vor.u32 %v1284_v11, %v1283_v41  ;;  %v1288_v59 = vshll.u32 %v1287_v7, 23  ;;  %v1542_v40 = vshll.u32 %v7695_v2, %v1536_v46 }
 0x1e7   :  { %v1545_v45 = vshll.u32 %v7696_v42, %v1536_v46  ;;  %v5525_v49 = vshrl.u32 %v1479_v26, 30  ;;  %v1540_v9 = vshrl.u32 %v7695_v2, %v1537_v43  ;;  %v1543_v14 = vshrl.u32 %v7696_v42, %v1537_v43 }
 0x1e8   :  { %v1548_v55 = vshll.u32 %v7697_v8, %v1536_v46  ;;  %v1289_v61 = vor.u32 4788187, %v1288_v59  ;;  %v1292_v37 = vcvt.s32.f32 %v1285_v13  ;;  %v1546_v1 = vshrl.u32 %v7697_v8, %v1537_v43 }
 0x1e9   :  { %v1549_v32 = vshrl.u32 %v7684_v27, %v1537_v43  ;;  %v1481_v16 = vshll.u32 %v5525_v49, 30  ;;  %v1541_v19 = vor.u32 %v1540_v9, %v1539_v51  ;;  %v1544_v25 = vor.u32 %v1543_v14, %v1542_v40 }
 0x1ea   :  { %v1551_v58 = vshll.u32 %v7684_v27, %v1536_v46  ;;  %v1290_v63 = vand.u32 2147483647, %v1289_v61  ;;  %v1547_v41 = vor.u32 %v1546_v1, %v1545_v45  ;;  %v1552_v7 = vshrl.u32 %v7685_v52, %v1537_v43 }
 0x1eb   :  { %v1550_v11 = vor.u32 %v1549_v32, %v1548_v55  ;;  %vm7603_vm15 = vcmp.lt.s32.totalorder %v5274_v35, 0  ;;  %v5536_v26 = vsub.s32 %v1478_v18, %v1481_v16  ;;  %v1538_v13 = vshrl.u32 %v7699_v54, %v1537_v43 }
 0x1ec   :  { %vm1557_vm2 = vcmp.lt.s32.totalorder %v5509_v3, 4  ;;  %v1562_v59 = vsel %vm1554_vm12, %v1541_v19, %v1544_v25  ;;  %v1293_v51 = vmul.f32 %v1292_v37, %v1290_v63  ;;  %v1553_v40 = vor.u32 %v1552_v7, %v1551_v58 }
 0x1ed   :  { %v1559_v9 = vsel %vm1557_vm2, %v1547_v41, 2102212464  ;;  %v1563_v46 = vsel %vm1557_vm2, %v1550_v11, 920167782  ;;  %v1484_v45 = vsub.s32 0, %v5536_v26  ;;  %v1558_v14 = vsel %vm1554_vm12, %v1538_v13, %v1541_v19 }
 0x1ee   :  { %v1564_v18 = vsel %vm1556_vm0, %v1547_v41, %v1563_v46  ;;  %v1566_v43 = vsel %vm1554_vm12, %v1544_v25, %v1547_v41  ;;  %v7731_v55 = vand.u32 2147483647, %v5274_v35  ;;  %v1560_v37 = vsel %vm1556_vm0, %v1544_v25, %v1559_v9 }
 0x1ef   :  { %v1565_v1 = vsel %vm1555_vm11, %v1562_v59, %v1564_v18  ;;  %v1567_v32 = vsel %vm1557_vm2, %v1553_v40, 1326507024  ;;  %v4065_v16 = vadd.s32 4294967169, %v1734_v38  ;;  %v4054_v19 = vmin.u32 %v1484_v45, %v5536_v26 }
 0x1f0   :  { %vm5551_vm1 = vcmp.le.f32.partialorder %v7731_v55, 0.7853982  ;;  %v1568_v58 = vsel %vm1556_vm0, %v1550_v11, %v1567_v32  ;;  %v5563_v63 = vmul.u32.u64.low %v5514_v21, %v1565_v1  ;;  %v5564_v41 = vmul.u32.u64.high %v5514_v21, %v1565_v1, %v5563_v63 }
 0x1f1   :  { %v1402_v7 = vsel %vm5463_vm14, %v5126_v24, %v1399_v23  ;;  %v1294_v25 = vxor.u32 2147483648, %v1293_v51  ;;  %v1569_v13 = vsel %vm1555_vm11, %v1566_v43, %v1568_v58  ;;  %v1737_v38 = vand.u32 8388607, %v7601_v39 }
 0x1f2   :  { %4352 = vcosq.f32 %v5498_v4  ;;  %v1486_v59 = vclz %v4054_v19  ;;  %v5576_v11 = vmul.u32.u64.low %v5514_v21, %v1569_v13  ;;  %v5577_v40 = vmul.u32.u64.high %v5514_v21, %v1569_v13, %v5576_v11 }
 0x1f3   :  { %4354 = vsinq.f32 %v5498_v4  ;;  %v1561_v9 = vsel %vm1555_vm11, %v1558_v14, %v1560_v37  ;;  %v1740_v23 = vadd.s32 1, %v4065_v16  ;;  %v5584_v46 = vadd.f32 %v5181_v22, %v5412_v10 }
 0x1f4   :  { %4356 = vcosq.f32 %v1402_v7  ;;  %v5590_v45 = vadd.s32 3, %v1403_v56  ;;  %v4055_v18 = vadd.s32 4294967294, %v1486_v59  ;;  %v1580_v43 = vadd.s32 1, %v5564_v41 }
 0x1f5   :  { %4358 = vsinq.f32 %v1402_v7  ;;  %v1295_v4 = vsel %vm7603_vm15, %v1294_v25, %v1293_v51  ;;  %v1738_v3 = vor.u32 8388608, %v1737_v38  ;;  %vm1741_vm5 = vcmp.gt.s32.totalorder %v1740_v23, 0 }
 0x1f6   :  { %7734 = vst [vmem:[#allocation33_spill] sm:$0xff] %v5590_v45  ;;  %vm4056_vm12 = vcmp.lt.s32.totalorder %v4055_v18, 0  ;;  %v1577_v22 = vmul.u32 %v5514_v21, %v1561_v9  ;;  %vm1579_vm11 = vc.u32 %v5577_v40, %v5563_v63  ;;  %v1742_v10 = vsel %vm1741_vm5, %v1740_v23, 0 }
 0x1f7   :  { %v1474_v15 = vadd.s32 %v5478_v50, %v5493_v12  ;;  %v1489_v20 = vsel %vm4056_vm12, 0, %v4055_v18  ;;  %v1581_v56 = vsel %vm1579_vm11, %v1580_v43, %v5564_v41  ;;  %v1744_v14 = vand.u32 31, %v1742_v10 }
 0x1f8   :  { %v5604_v51 = vsel %vm5551_vm1, %v5274_v35, %v1295_v4  ;;  %v1490_v55 = vsub.s32 32, %v1489_v20  ;;  %v1494_v37 = vsub.s32 4294967266, %v1489_v20  ;;  %v1582_v1 = vadd.s32 %v1581_v56, %v1577_v22 }
 0x1f9   :  { %v1491_v21 = vshll.u32 %v5536_v26, %v1489_v20  ;;  %vm1524_vm14 = vcmp.lt.s32.totalorder %v5422_v6, 0  ;;  %v1745_v32 = vsub.s32 32, %v1744_v14  ;;  %v5608_v16 = vshll.u32 %v1738_v3, 8 }
 0x1fa   :  { %v1629_v50 = vand.u32 2139095040, %v5486_v48  ;;  %v1492_v12 = vshrl.u32 %v1474_v15, %v1490_v55  ;;  %v1495_v19 = vadd.s32 127, %v1494_v37  ;;  %v1583_v58 = vadd.s32 536870912, %v1582_v1 }
 0x1fb   :  { %v1747_v41 = vshll.u32 %v7699_v54, %v1744_v14  ;;  %v1748_v7 = vshrl.u32 %v7695_v2, %v1745_v32  ;;  %v1751_v25 = vshrl.u32 %v7696_v42, %v1745_v32  ;;  %v1753_v13 = vshll.u32 %v7696_v42, %v1744_v14 }
 0x1fc   :  { %v1754_v26 = vshrl.u32 %v7697_v8, %v1745_v32  ;;  %v5616_v38 = vpop.eup %4352  ;;  %v1493_v59 = vor.u32 %v1492_v12, %v1491_v21  ;;  %v1496_v11 = vshll.u32 %v1495_v19, 23  ;;  %v1584_v9 = vshrl.u32 %v1583_v58, 30 }
 0x1fd   :  { %7735 = vst [vmem:[#allocation34_spill] sm:$0xff] %v5616_v38  ;;  %v1757_v23 = vshrl.u32 %v7684_v27, %v1745_v32  ;;  %v5619_v18 = vpop.eup %4354  ;;  %v1743_v43 = vshrl.u32 %v1742_v10, 5  ;;  %v1749_v4 = vor.u32 %v1748_v7, %v1747_v41  ;;  %v1750_v3 = vshll.u32 %v7695_v2, %v1744_v14 }
 0x1fe   :  { %v1756_v22 = vshll.u32 %v7697_v8, %v1744_v14  ;;  %v5623_v15 = vpop.eup %4356  ;;  %v1497_v20 = vor.u32 4788187, %v1496_v11  ;;  %vm5627_vm0 = vcmp.le.f32.partialorder %v1522_v31, 0.7853982  ;;  %v1585_v55 = vshll.u32 %v1584_v9, 30 }
 0x1ff   :  { %7736 = vst [vmem:[#allocation35_spill] sm:$0xff] %v5623_v15  ;;  %v1608_v37 = vsub.s32 4, %v1584_v9  ;;  %v1755_v21 = vor.u32 %v1754_v26, %v1753_v13  ;;  %v5631_v12 = vpop.eup %4358  ;;  %v1752_v10 = vor.u32 %v1751_v25, %v1750_v3  ;;  %v1759_v58 = vshll.u32 %v7684_v27, %v1744_v14 }
 0x200   :  { %7739 = vst [vmem:[#allocation36_spill] sm:$0xff] %v5631_v12  ;;  %v1758_v19 = vor.u32 %v1757_v23, %v1756_v22  ;;  %v1760_v41 = vshrl.u32 %v7685_v52, %v1745_v32  ;;  %vm7611_vm2 = vcmp.lt.s32.totalorder %v5362_v62, 0  ;;  %v1498_v7 = vand.u32 2147483647, %v1497_v20 }
 0x201   :  { %v1500_v11 = vcvt.s32.f32 %v1493_v59  ;;  %v5636_v39 = vsub.s32 %v1582_v1, %v1585_v55  ;;  %v1746_v31 = vshrl.u32 %v7699_v54, %v1745_v32  ;;  %vm1762_vm5 = vcmp.lt.s32.totalorder %v1743_v43, 1 }
 0x202   :  { %v1761_v24 = vor.u32 %v1760_v41, %v1759_v58  ;;  %vm1763_vm12 = vcmp.lt.s32.totalorder %v1743_v43, 2  ;;  %vm1765_vm11 = vcmp.lt.s32.totalorder %v1743_v43, 4  ;;  %v1609_v14 = vsel %vm1524_vm14, %v1608_v37, %v1584_v9 }
 0x203   :  { %v1501_v13 = vmul.f32 %v1500_v11, %v1498_v7  ;;  %v1588_v25 = vsub.s32 0, %v5636_v39  ;;  %v1767_v26 = vsel %vm1765_vm11, %v1755_v21, 2102212464  ;;  %v7740_v23 = vand.u32 2147483647, %v5362_v62 }
 0x204   :  { %vm1764_vm6 = vcmp.lt.s32.totalorder %v1743_v43, 3  ;;  %v1766_v1 = vsel %vm1762_vm5, %v1746_v31, %v1749_v4  ;;  %v1770_v32 = vsel %vm1762_vm5, %v1749_v4, %v1752_v10  ;;  %v1771_v3 = vsel %vm1765_vm11, %v1758_v19, 920167782 }
 0x205   :  { %vm5645_vm15 = vcmp.le.f32.partialorder %v7740_v23, 0.7853982  ;;  %v4058_v22 = vmin.u32 %v1588_v25, %v5636_v39  ;;  %v1768_v20 = vsel %vm1764_vm6, %v1752_v10, %v1767_v26  ;;  %v1772_v55 = vsel %vm1764_vm6, %v1755_v21, %v1771_v3 }
 0x206   :  { %v1774_v58 = vsel %vm1762_vm5, %v1752_v10, %v1755_v21  ;;  %v1502_v41 = vxor.u32 2147483648, %v1501_v13  ;;  %v1773_v9 = vsel %vm1763_vm12, %v1770_v32, %v1772_v55  ;;  %v1775_v37 = vsel %vm1765_vm11, %v1761_v24, 1326507024 }
 0x207   :  { %v1630_v7 = vshrl.u32 %v1629_v50, 23  ;;  %4360 = vcosq.f32 %v5604_v51  ;;  %v1590_v11 = vclz %v4058_v22  ;;  %v1776_v23 = vsel %vm1764_vm6, %v1758_v19, %v1775_v37 }
 0x208   :  { %v7605_v31 = vand.u32 2147483647, %v5486_v48  ;;  %v1611_v4 = vsel %vm5627_vm0, 0, %v1609_v14  ;;  %v1777_v25 = vsel %vm1763_vm12, %v1774_v58, %v1776_v23  ;;  %v1769_v24 = vsel %vm1763_vm12, %v1766_v1, %v1768_v20 }
 0x209   :  { %v5659_v26 = vmul.u32.u64.low %v5608_v16, %v1773_v9  ;;  %v5660_v21 = vmul.u32.u64.high %v5608_v16, %v1773_v9, %v5659_v26  ;;  %v4059_v10 = vadd.s32 4294967294, %v1590_v11  ;;  %4362 = vsinq.f32 %v5604_v51 }
 0x20a   :  { %v5665_v50 = vmul.u32.u64.low %v5608_v16, %v1777_v25  ;;  %v5666_v32 = vmul.u32.u64.high %v5608_v16, %v1777_v25, %v5665_v50  ;;  %v1503_v19 = vsel %vm7611_vm2, %v1502_v41, %v1501_v13  ;;  %v4061_v14 = vadd.s32 4294967169, %v1630_v7 }
 0x20b   :  { %v7607_v3 = vand.u32 2147483647, %v5584_v46  ;;  %v1578_v22 = vadd.s32 %v5563_v63, %v5577_v40  ;;  %vm4060_vm6 = vcmp.lt.s32.totalorder %v4059_v10, 0  ;;  %v5674_v55 = vadd.s32 3, %v1611_v4 }
 0x20c   :  { %v1633_v43 = vand.u32 8388607, %v7605_v31  ;;  %v1593_v1 = vsel %vm4060_vm6, 0, %v4059_v10  ;;  %v1785_v20 = vmul.u32 %v5608_v16, %v1769_v24  ;;  %v1788_v51 = vadd.s32 1, %v5660_v21 }
 0x20d   :  { %7743 = vst [vmem:[#allocation37_spill] sm:$0xff] %v5674_v55  ;;  %v1636_v58 = vadd.s32 1, %v4061_v14  ;;  %v1506_v13 = vsel %vm5645_vm15, %v5362_v62, %v1503_v19  ;;  %v1594_v41 = vsub.s32 32, %v1593_v1  ;;  %v1598_v9 = vsub.s32 4294967266, %v1593_v1 }
 0x20e   :  { %v1837_v63 = vand.u32 2139095040, %v5584_v46  ;;  %v1595_v40 = vshll.u32 %v5636_v39, %v1593_v1  ;;  %vm1787_vm5 = vc.u32 %v5666_v32, %v5659_v26  ;;  %v1841_v16 = vand.u32 8388607, %v7607_v3 }
 0x20f   :  { %vm1637_vm12 = vcmp.gt.s32.totalorder %v1636_v58, 0  ;;  %v1596_v37 = vshrl.u32 %v1578_v22, %v1594_v41  ;;  %v1599_v7 = vadd.s32 127, %v1598_v9  ;;  %v1789_v11 = vsel %vm1787_vm5, %v1788_v51, %v5660_v21 }
 0x210   :  { %v1638_v23 = vsel %vm1637_vm12, %v1636_v58, 0  ;;  %4364 = vcosq.f32 %v1506_v13  ;;  %v1790_v4 = vadd.s32 %v1789_v11, %v1785_v20  ;;  %v1634_v25 = vor.u32 8388608, %v1633_v43 }
 0x211   :  { %v1640_v10 = vand.u32 31, %v1638_v23  ;;  %v5690_v24 = vpop.eup %4360  ;;  %4366 = vsinq.f32 %v1506_v13  ;;  %v1597_v39 = vor.u32 %v1596_v37, %v1595_v40  ;;  %v1600_v50 = vshll.u32 %v1599_v7, 23 }
 0x212   :  { %v1838_v19 = vshrl.u32 %v1837_v63, 23  ;;  %v1791_v14 = vadd.s32 536870912, %v1790_v4  ;;  %v1639_v1 = vshrl.u32 %v1638_v23, 5  ;;  %v1842_v15 = vor.u32 8388608, %v1841_v16 }
 0x213   :  { %v1641_v31 = vsub.s32 32, %v1640_v10  ;;  %v1601_v3 = vor.u32 4788187, %v1600_v50  ;;  %v1604_v22 = vcvt.s32.f32 %v1597_v39  ;;  %v1643_v41 = vshll.u32 %v7699_v54, %v1640_v10  ;;  %v5694_v51 = vpop.eup %4362 }
 0x214   :  { %v1646_v21 = vshll.u32 %v7695_v2, %v1640_v10  ;;  %v1792_v43 = vshrl.u32 %v1791_v14, 30  ;;  %v1649_v13 = vshll.u32 %v7696_v42, %v1640_v10  ;;  %v1652_v40 = vshll.u32 %v7697_v8, %v1640_v10 }
 0x215   :  { %v1644_v20 = vshrl.u32 %v7695_v2, %v1641_v31  ;;  %v1647_v58 = vshrl.u32 %v7696_v42, %v1641_v31  ;;  %v1602_v9 = vand.u32 2147483647, %v1601_v3  ;;  %v1650_v63 = vshrl.u32 %v7697_v8, %v1641_v31 }
 0x216   :  { %v1653_v16 = vshrl.u32 %v7684_v27, %v1641_v31  ;;  %v1793_v37 = vshll.u32 %v1792_v43, 30  ;;  %v5702_v23 = vshll.u32 %v1634_v25, 8  ;;  %v1656_v12 = vshrl.u32 %v7685_v52, %v1641_v31 }
 0x217   :  { %v1645_v7 = vor.u32 %v1644_v20, %v1643_v41  ;;  %v1648_v11 = vor.u32 %v1647_v58, %v1646_v21  ;;  %v1605_v39 = vmul.f32 %v1604_v22, %v1602_v9  ;;  %v1651_v50 = vor.u32 %v1650_v63, %v1649_v13 }
 0x218   :  { %v1654_v14 = vor.u32 %v1653_v16, %v1652_v40  ;;  %v1786_v45 = vadd.s32 %v5659_v26, %v5666_v32  ;;  %v5707_v3 = vsub.s32 %v1790_v4, %v1793_v37  ;;  %v1655_v47 = vshll.u32 %v7684_v27, %v1640_v10 }
 0x219   :  { %v464_v55 = vsub.s32 4, %v4776_v17  ;;  %vm1732_vm11 = vcmp.lt.s32.totalorder %v5429_v44, 0  ;;  %v1642_v41 = vshrl.u32 %v7699_v54, %v1641_v31  ;;  %vm1658_vm6 = vcmp.lt.s32.totalorder %v1639_v1, 1 }
 0x21a   :  { %v4069_v25 = vadd.s32 4294967169, %v1838_v19  ;;  %v5713_v22 = vshll.u32 %v1842_v15, 8  ;;  %v5715_v21 = vpop.eup %4364  ;;  %v1606_v20 = vxor.u32 2147483648, %v1605_v39  ;;  %v1796_v58 = vsub.s32 0, %v5707_v3 }
 0x21b   :  { %v1657_v26 = vor.u32 %v1656_v12, %v1655_v47  ;;  %vm1661_vm5 = vcmp.lt.s32.totalorder %v1639_v1, 4  ;;  %v5718_v32 = vpop.eup %4366  ;;  %vm1660_vm12 = vcmp.lt.s32.totalorder %v1639_v1, 3  ;;  %v1666_v10 = vsel %vm1658_vm6, %v1645_v7, %v1648_v11 }
 0x21c   :  { %v1663_v4 = vsel %vm1661_vm5, %v1651_v50, 2102212464  ;;  %v1667_v31 = vsel %vm1661_vm5, %v1654_v14, 920167782  ;;  %v4066_v19 = vmin.u32 %v1796_v58, %v5707_v3  ;;  %vm1659_vm2 = vcmp.lt.s32.totalorder %v1639_v1, 2 }
 0x21d   :  { %v1668_v15 = vsel %vm1660_vm12, %v1651_v50, %v1667_v31  ;;  %v465_v13 = vsel %vm380_vm9, %v464_v55, %v4776_v17  ;;  %v1662_v47 = vsel %vm1658_vm6, %v1642_v41, %v1645_v7  ;;  %v1664_v12 = vsel %vm1660_vm12, %v1648_v11, %v1663_v4 }
 0x21e   :  { %v1669_v9 = vsel %vm1659_vm2, %v1666_v10, %v1668_v15  ;;  %v1670_v63 = vsel %vm1658_vm6, %v1648_v11, %v1651_v50  ;;  %v1607_v40 = vsel %vm1524_vm14, %v1606_v20, %v1605_v39  ;;  %v1798_v16 = vclz %v4066_v19 }
 0x21f   :  { %v1816_v37 = vsub.s32 4, %v1792_v43  ;;  %v1671_v58 = vsel %vm1661_vm5, %v1657_v26, 1326507024  ;;  %v5737_v38 = vmul.u32.u64.low %v5702_v23, %v1669_v9  ;;  %v5738_v17 = vmul.u32.u64.high %v5702_v23, %v1669_v9, %v5737_v38 }
 0x220   :  { %v1672_v31 = vsel %vm1660_vm12, %v1654_v14, %v1671_v58  ;;  %v1844_v55 = vadd.s32 1, %v4069_v25  ;;  %v4067_v7 = vadd.s32 4294967294, %v1798_v16  ;;  %v1665_v41 = vsel %vm1659_vm2, %v1662_v47, %v1664_v12 }
 0x221   :  { %v1673_v11 = vsel %vm1659_vm2, %v1670_v63, %v1672_v31  ;;  %v467_v39 = vsel %vm4940_vm10, 0, %v465_v13  ;;  %v5752_v26 = vsel %vm5627_vm0, %v5422_v6, %v1607_v40  ;;  %v5756_v25 = vsel %vm1732_vm11, %v1816_v37, %v1792_v43 }
 0x222   :  { %v5746_v50 = vmul.u32.u64.low %v5702_v23, %v1673_v11  ;;  %v5747_v20 = vmul.u32.u64.high %v5702_v23, %v1673_v11, %v5746_v50  ;;  %vm1845_vm9 = vcmp.gt.s32.totalorder %v1844_v55, 0  ;;  %v471_v14 = vadd.s32 3, %v467_v39 }
 0x223   :  { %vm4068_vm14 = vcmp.lt.s32.totalorder %v4067_v7, 0  ;;  %v1846_v1 = vsel %vm1845_vm9, %v1844_v55, 0  ;;  %v1681_v60 = vmul.u32 %v5702_v23, %v1665_v41  ;;  %v1684_v10 = vadd.s32 1, %v5738_v17 }
 0x224   :  { %v1801_v4 = vsel %vm4068_vm14, 0, %v4067_v7  ;;  %v1848_v19 = vand.u32 31, %v1846_v1  ;;  %v5760_v47 = vshrl.u32 %v1846_v1, 5  ;;  %vm1683_vm10 = vc.u32 %v5747_v20, %v5737_v38 }
 0x225   :  { %v1802_v15 = vsub.s32 32, %v1801_v4  ;;  %v1806_v13 = vsub.s32 4294967266, %v1801_v4  ;;  %v1803_v12 = vshll.u32 %v5707_v3, %v1801_v4  ;;  %v5766_v9 = vand.u32 3, %v471_v14 }
 0x226   :  { %v1849_v43 = vsub.s32 32, %v1848_v19  ;;  %v1685_v23 = vsel %vm1683_vm10, %v1684_v10, %v5738_v17  ;;  %v1851_v16 = vshll.u32 %v7699_v54, %v1848_v19  ;;  %v1854_v31 = vshll.u32 %v7695_v2, %v1848_v19 }
 0x227   :  { %v1804_v63 = vshrl.u32 %v1786_v45, %v1802_v15  ;;  %v1807_v40 = vadd.s32 127, %v1806_v13  ;;  %v1686_v37 = vadd.s32 %v1685_v23, %v1681_v60  ;;  %v1857_v41 = vshll.u32 %v7696_v42, %v1848_v19 }
 0x228   :  { %v1852_v58 = vshrl.u32 %v7695_v2, %v1849_v43  ;;  %v1855_v55 = vshrl.u32 %v7696_v42, %v1849_v43  ;;  %v1858_v11 = vshrl.u32 %v7697_v8, %v1849_v43  ;;  %v7744_v45 = vand.u32 2147483647, %v5429_v44 }
 0x229   :  { %v1805_v3 = vor.u32 %v1804_v63, %v1803_v12  ;;  %v1808_v7 = vshll.u32 %v1807_v40, 23  ;;  %v1687_v17 = vadd.s32 536870912, %v1686_v37  ;;  %v1850_v50 = vshrl.u32 %v7699_v54, %v1849_v43 }
 0x22a   :  { %vm5777_vm0 = vcmp.le.f32.partialorder %v7744_v45, 0.7853982  ;;  %v1853_v14 = vor.u32 %v1852_v58, %v1851_v16  ;;  %v1856_v1 = vor.u32 %v1855_v55, %v1854_v31  ;;  %v1859_v60 = vor.u32 %v1858_v11, %v1857_v41 }
 0x22b   :  { %v1809_v4 = vor.u32 4788187, %v1808_v7  ;;  %v1860_v10 = vshll.u32 %v7697_v8, %v1848_v19  ;;  %v1861_v15 = vshrl.u32 %v7684_v27, %v1849_v43  ;;  %v1812_v13 = vcvt.s32.f32 %v1805_v3 }
 0x22c   :  { %v5784_v12 = vshrl.u32 %v1687_v17, 30  ;;  %v1863_v63 = vshll.u32 %v7684_v27, %v1848_v19  ;;  %v1864_v40 = vshrl.u32 %v7685_v52, %v1849_v43  ;;  %vm1866_vm2 = vcmp.lt.s32.totalorder %v5760_v47, 1 }
 0x22d   :  { %v1810_v23 = vand.u32 2147483647, %v1809_v4  ;;  %v1862_v45 = vor.u32 %v1861_v15, %v1860_v10  ;;  %vm1867_vm6 = vcmp.lt.s32.totalorder %v5760_v47, 2  ;;  %vm1868_vm5 = vcmp.lt.s32.totalorder %v5760_v47, 3 }
 0x22e   :  { %v1689_v16 = vshll.u32 %v5784_v12, 30  ;;  %v1865_v58 = vor.u32 %v1864_v40, %v1863_v63  ;;  %vm1869_vm12 = vcmp.lt.s32.totalorder %v5760_v47, 4  ;;  %v1874_v3 = vsel %vm1866_vm2, %v1853_v14, %v1856_v1 }
 0x22f   :  { %v1813_v31 = vmul.f32 %v1812_v13, %v1810_v23  ;;  %v1871_v55 = vsel %vm1869_vm12, %v1859_v60, 2102212464  ;;  %v1875_v7 = vsel %vm1869_vm12, %v1862_v45, 920167782  ;;  %v1870_v43 = vsel %vm1866_vm2, %v1850_v50, %v1853_v14 }
 0x230   :  { %v5793_v19 = vsub.s32 %v1686_v37, %v1689_v16  ;;  %v1876_v41 = vsel %vm1868_vm5, %v1859_v60, %v1875_v7  ;;  %v1878_v11 = vsel %vm1866_vm2, %v1856_v1, %v1859_v60  ;;  %v1872_v4 = vsel %vm1868_vm5, %v1856_v1, %v1871_v55 }
 0x231   :  { %v1814_v17 = vxor.u32 2147483648, %v1813_v31  ;;  %v1877_v10 = vsel %vm1867_vm6, %v1874_v3, %v1876_v41  ;;  %v1879_v15 = vsel %vm1869_vm12, %v1865_v58, 1326507024  ;;  %4368 = vcosq.f32 %v5752_v26 }
 0x232   :  { %v1692_v63 = vsub.s32 0, %v5793_v19  ;;  %v1880_v40 = vsel %vm1868_vm5, %v1862_v45, %v1879_v15  ;;  %v5799_v56 = vmul.u32.u64.low %v5713_v22, %v1877_v10  ;;  %v5800_v13 = vmul.u32.u64.high %v5713_v22, %v1877_v10, %v5799_v56 }
 0x233   :  { %v1819_v37 = vsel %vm5777_vm0, 0, %v5756_v25  ;;  %v1881_v50 = vsel %vm1867_vm6, %v1878_v11, %v1880_v40  ;;  %v478_v14 = vxor.u32 2147483648, %v5031_v29  ;;  %4370 = vsinq.f32 %v5752_v26 }
 0x234   :  { %v4062_v1 = vmin.u32 %v1692_v63, %v5793_v19  ;;  %v5812_v60 = vmul.u32.u64.low %v5713_v22, %v1881_v50  ;;  %v5813_v23 = vmul.u32.u64.high %v5713_v22, %v1881_v50, %v5812_v60  ;;  %v1815_v45 = vsel %vm1732_vm11, %v1814_v17, %v1813_v31 }
 0x235   :  { %v1873_v16 = vsel %vm1867_vm6, %v1870_v43, %v1872_v4  ;;  %vm474_vm9 = vcmp.eq.s32.totalorder %v5766_v9, 0  ;;  %v880_v58 = vsub.s32 4, %v5115_v0  ;;  %v1892_v3 = vadd.s32 1, %v5800_v13  ;;  %v7748_v60 = vld [vmem:[#allocation7_spill] sm:$0xff] }
 0x236   :  { %v1694_v55 = vclz %v4062_v1  ;;  %v7747_v26 = vxor.u32 2147483648, %v5120_v28  ;;  %vm477_vm14 = vcmp.eq.s32.totalorder %v5766_v9, 2  ;;  %vm470_vm10 = vweird.f32 %v4586_v34 }
 0x237   :  { %vm473_vm11 = vcmp.lt.s32.totalorder %v5766_v9, 2  ;;  %v479_v47 = vsel %vm477_vm14, %v478_v14, %v5120_v28  ;;  %v881_v31 = vsel %vm796_vm7, %v880_v58, %v5115_v0  ;;  %v1889_v41 = vmul.u32 %v5713_v22, %v1873_v16 }
 0x238   :  { %v476_v7 = vsel %vm474_vm9, %v5031_v29, %v7747_v26  ;;  %v4063_v43 = vadd.s32 4294967294, %v1694_v55  ;;  %vm1891_vm2 = vc.u32 %v5813_v23, %v5799_v56  ;;  %v5837_v29 = vsel %vm5777_vm0, %v5429_v44, %v1815_v45 }
 0x239   :  { %v480_v11 = vsel %vm473_vm11, %v476_v7, %v479_v47  ;;  %v1682_v9 = vadd.s32 %v5737_v38, %v5747_v20  ;;  %v1893_v28 = vsel %vm1891_vm2, %v1892_v3, %v5800_v13  ;;  %v883_v17 = vsel %vm5280_vm13, 0, %v881_v31 }
 0x23a   :  { %vm4064_vm7 = vcmp.lt.s32.totalorder %v4063_v43, 0  ;;  %v1894_v0 = vadd.s32 %v1893_v28, %v1889_v41  ;;  %vm886_vm6 = vweird.f32 %v4885_v53  ;;  %v887_v22 = vadd.s32 3, %v883_v17  ;;  %v7752_v28 = vld [vmem:[#allocation22_spill] sm:$0xff] }
 0x23b   :  { %v672_v4 = vsub.s32 4, %v4828_v57  ;;  %v1697_v10 = vsel %vm4064_vm7, 0, %v4063_v43  ;;  %v5847_v15 = vadd.s32 %v5799_v56, %v5813_v23  ;;  %v481_v63 = vsel %vm470_vm10, nan, %v480_v11  ;;  %v5853_v50 = vpop.eup %4368  ;;  %v7749_v23 = vld [vmem:[#allocation21_spill] sm:$0xff] }
 0x23c   :  { %v891_v38 = vxor.u32 2147483648, %v5397_v5  ;;  %v1698_v20 = vsub.s32 32, %v1697_v10  ;;  %v1702_v40 = vsub.s32 4294967266, %v1697_v10  ;;  %v1895_v33 = vadd.s32 536870912, %v1894_v0 }
 0x23d   :  { %v894_v13 = vxor.u32 2147483648, %v5390_v36  ;;  %v1699_v14 = vshll.u32 %v5793_v19, %v1697_v10  ;;  %v888_v1 = vand.u32 3, %v887_v22  ;;  %v673_v56 = vsel %vm588_vm4, %v672_v4, %v4828_v57  ;;  %v5860_v34 = vpop.eup %4370  ;;  %v7751_v19 = vld [vmem:[#allocation23_spill] sm:$0xff] }
 0x23e   :  { %v1088_v45 = vsub.s32 4, %v7749_v23  ;;  %v1700_v16 = vshrl.u32 %v1682_v9, %v1698_v20  ;;  %v1703_v58 = vadd.s32 127, %v1702_v40  ;;  %v5862_v55 = vshrl.u32 %v1895_v33, 30 }
 0x23f   :  { %v675_v26 = vsel %vm5037_vm8, 0, %v673_v56  ;;  %vm890_vm13 = vcmp.eq.s32.totalorder %v888_v1, 0  ;;  %vm893_vm5 = vcmp.eq.s32.totalorder %v888_v1, 2  ;;  %v683_v47 = vxor.u32 2147483648, %v7751_v19 }
 0x240   :  { %v679_v7 = vadd.s32 3, %v675_v26  ;;  %v1701_v31 = vor.u32 %v1700_v16, %v1699_v14  ;;  %v1704_v43 = vshll.u32 %v1703_v58, 23  ;;  %v1897_v57 = vshll.u32 %v5862_v55, 30 }
 0x241   :  { %v892_v41 = vsel %vm890_vm13, %v5390_v36, %v891_v38  ;;  %vm678_vm4 = vweird.f32 %v7748_v60  ;;  %vm1628_vm12 = vcmp.lt.s32.totalorder %v5486_v48, 0  ;;  %vm889_vm9 = vcmp.lt.s32.totalorder %v888_v1, 2  ;;  %v7756_v38 = vld [vmem:[#allocation14_spill] sm:$0xff] }
 0x242   :  { %v895_v11 = vsel %vm893_vm5, %v894_v13, %v5397_v5  ;;  %v680_v9 = vand.u32 3, %v679_v7  ;;  %v686_v17 = vxor.u32 2147483648, %v7752_v28  ;;  %v7753_v22 = vand.u32 2147483647, %v5486_v48  ;;  %v7759_v7 = vld [vmem:[#allocation31_spill] sm:$0xff] }
 0x243   :  { %v1705_v10 = vor.u32 4788187, %v1704_v43  ;;  %v5879_v20 = vsub.s32 %v1894_v0, %v1897_v57  ;;  %v896_v36 = vsel %vm889_vm9, %v892_v41, %v895_v11  ;;  %vm7757_vm14 = vcmp.lt.s32.totalorder %v7756_v38, 0 }
 0x244   :  { %vm5875_vm8 = vcmp.le.f32.partialorder %v7753_v22, 0.7853982  ;;  %v1089_v40 = vsel %vm7757_vm14, %v1088_v45, %v7749_v23  ;;  %v1708_v33 = vcvt.s32.f32 %v1701_v31  ;;  %v897_v5 = vsel %vm886_vm6, nan, %v896_v36  ;;  %v7760_v31 = vld [vmem:[#allocation5_spill] sm:$0xff] }
 0x245   :  { %vm682_vm10 = vcmp.eq.s32.totalorder %v680_v9, 0  ;;  %vm685_vm11 = vcmp.eq.s32.totalorder %v680_v9, 2  ;;  %v1706_v13 = vand.u32 2147483647, %v1705_v10  ;;  %v1900_v14 = vsub.s32 0, %v5879_v20 }
 0x246   :  { %v4147_v1 = vpack.c.bf16 %v897_v5, %v481_v63  ;;  %v684_v56 = vsel %vm682_vm10, %v7752_v28, %v683_v47  ;;  %vm681_vm2 = vcmp.lt.s32.totalorder %v680_v9, 2  ;;  %v687_v0 = vsel %vm685_vm11, %v686_v17, %v7751_v19  ;;  %v7761_v47 = vld [vmem:[#allocation10_spill] sm:$0xff]  ;;  %v7762_v19 = vld [vmem:[#allocation12_spill] sm:$0xff]  ;;  %v7763_v28 = vld [vmem:[#allocation11_spill] sm:$0xff] }
 0x247   :  { %v1091_v58 = vsel %vm5318_vm3, 0, %v1089_v40  ;;  %vm1094_vm7 = vweird.f32 %v7756_v38  ;;  %v1099_v23 = vxor.u32 2147483648, %v5521_v30  ;;  %v1709_v53 = vmul.f32 %v1708_v33, %v1706_v13  ;;  %v7764_v40 = vld [vmem:[#allocation18_spill] sm:$0xff] }
 0x248   :  { %v4070_v45 = vmin.u32 %v1900_v14, %v5879_v20  ;;  %4148 = vmatprep.subr.bf16.mxu0 %v4147_v1  ;;  %v688_v3 = vsel %vm681_vm2, %v684_v56, %v687_v0  ;;  %v1095_v26 = vadd.s32 3, %v1091_v58  ;;  %v1102_v63 = vxor.u32 2147483648, %v7759_v7  ;;  %v7765_v58 = vld [vmem:[#allocation8_spill] sm:$0xff] }
 0x249   :  { %vm366_vm6 = vweird.f32 %v7760_v31  ;;  %v368_v43 = vand.u32 3, %v7761_v47  ;;  %v371_v57 = vxor.u32 2147483648, %v7762_v19  ;;  %v1710_v41 = vxor.u32 2147483648, %v1709_v53  ;;  %v7766_v47 = vld [vmem:[#allocation25_spill] sm:$0xff] }
 0x24a   :  { %v1902_v11 = vclz %v4070_v45  ;;  %v1096_v9 = vand.u32 3, %v1095_v26  ;;  %v374_v17 = vxor.u32 2147483648, %v7763_v28  ;;  %v689_v22 = vsel %vm678_vm4, nan, %v688_v3  ;;  %v7770_v31 = vld [vmem:[#allocation13_spill] sm:$0xff] }
 0x24b   :  { %vm369_vm3 = vcmp.lt.s32.totalorder %v368_v43, 2  ;;  %vm370_vm13 = vcmp.eq.s32.totalorder %v368_v43, 0  ;;  %vm373_vm5 = vcmp.eq.s32.totalorder %v368_v43, 2  ;;  %v1711_v10 = vsel %vm1628_vm12, %v1710_v41, %v1709_v53  ;;  %v7768_v41 = vld [vmem:[#allocation17_spill] sm:$0xff] }
 0x24c   :  { %v4071_v36 = vadd.s32 4294967294, %v1902_v11  ;;  %vm1098_vm9 = vcmp.eq.s32.totalorder %v1096_v9, 0  ;;  %v784_v33 = vand.u32 3, %v7764_v40  ;;  %v1714_v5 = vsel %vm5875_vm8, %v5486_v48, %v1711_v10  ;;  %v7769_v11 = vld [vmem:[#allocation15_spill] sm:$0xff] }
 0x24d   :  { %v1100_v13 = vsel %vm1098_vm9, %v7759_v7, %v1099_v23  ;;  %vm1101_vm14 = vcmp.eq.s32.totalorder %v1096_v9, 2  ;;  %v372_v60 = vsel %vm370_vm13, %v7763_v28, %v371_v57  ;;  %vm1097_vm10 = vcmp.lt.s32.totalorder %v1096_v9, 2 }
 0x24e   :  { %vm4072_vm4 = vcmp.lt.s32.totalorder %v4071_v36, 0  ;;  %v1103_v14 = vsel %vm1101_vm14, %v1102_v63, %v5521_v30  ;;  %v375_v1 = vsel %vm373_vm5, %v374_v17, %v7762_v19  ;;  %vm782_vm11 = vweird.f32 %v7765_v58  ;;  %v7767_v19 = vld [vmem:[#allocation24_spill] sm:$0xff] }
 0x24f   :  { %v1905_v56 = vsel %vm4072_vm4, 0, %v4071_v36  ;;  %v1104_v0 = vsel %vm1097_vm10, %v1100_v13, %v1103_v14  ;;  %v376_v16 = vsel %vm369_vm3, %v372_v60, %v375_v1  ;;  %4372 = vcosq.f32 %v1714_v5  ;;  %v7774_v1 = vld [vmem:[#allocation27_spill] sm:$0xff] }
 0x250   :  { %v1906_v53 = vsub.s32 32, %v1905_v56  ;;  %v1910_v45 = vsub.s32 4294967266, %v1905_v56  ;;  %v1105_v23 = vsel %vm1094_vm7, nan, %v1104_v0  ;;  %4374 = vsinq.f32 %v1714_v5 }
 0x251   :  { %v1907_v3 = vshll.u32 %v5879_v20, %v1905_v56  ;;  %v4155_v26 = vpack.c.bf16 %v1105_v23, %v689_v22  ;;  %v377_v30 = vsel %vm366_vm6, nan, %v376_v16  ;;  %vm786_vm2 = vcmp.eq.s32.totalorder %v784_v33, 0 }
 0x252   :  { %v1908_v7 = vshrl.u32 %v5847_v15, %v1906_v53  ;;  %v1911_v63 = vadd.s32 127, %v1910_v45  ;;  %v787_v43 = vxor.u32 2147483648, %v7766_v47  ;;  %vm789_vm3 = vcmp.eq.s32.totalorder %v784_v33, 2  ;;  %v7775_v45 = vld [vmem:[#allocation30_spill] sm:$0xff] }
 0x253   :  { %4156 = vmatprep.subr.bf16.mxu1 %v4155_v26  ;;  %v790_v57 = vxor.u32 2147483648, %v7767_v19  ;;  %v576_v38 = vand.u32 3, %v7768_v41  ;;  %v579_v9 = vxor.u32 2147483648, %v7769_v11  ;;  %v582_v22 = vxor.u32 2147483648, %v7770_v31  ;;  %v7776_v26 = vld [vmem:[#allocation6_spill] sm:$0xff] }
 0x254   :  { %v1909_v28 = vor.u32 %v1908_v7, %v1907_v3  ;;  %v1912_v20 = vshll.u32 %v1911_v63, 23  ;;  %v788_v17 = vsel %vm786_vm2, %v7767_v19, %v787_v43  ;;  %vm1836_vm7 = vcmp.lt.s32.totalorder %v5584_v46, 0  ;;  %v7777_v63 = vld [vmem:[#allocation29_spill] sm:$0xff]  ;;  %v7778_v43 = vld [vmem:[#allocation32_spill] sm:$0xff] }
 0x255   :  { %vm785_vm6 = vcmp.lt.s32.totalorder %v784_v33, 2  ;;  %v791_v15 = vsel %vm789_vm3, %v790_v57, %v7766_v47  ;;  %vm577_vm13 = vcmp.lt.s32.totalorder %v576_v38, 2  ;;  %vm578_vm5 = vcmp.eq.s32.totalorder %v576_v38, 0 }
 0x256   :  { %v7771_v10 = vand.u32 2147483647, %v5584_v46  ;;  %v1913_v40 = vor.u32 4788187, %v1912_v20  ;;  %v792_v5 = vsel %vm785_vm6, %v788_v17, %v791_v15  ;;  %v580_v13 = vsel %vm578_vm5, %v7770_v31, %v579_v9 }
 0x257   :  { %vm581_vm14 = vcmp.eq.s32.totalorder %v576_v38, 2  ;;  %v1916_v60 = vcvt.s32.f32 %v1909_v28  ;;  %v793_v14 = vsel %vm782_vm11, nan, %v792_v5  ;;  %v992_v56 = vand.u32 3, %v7774_v1  ;;  %v7779_v38 = vld [vmem:[#allocation9_spill] sm:$0xff] }
 0x258   :  { %vm5929_vm9 = vcmp.le.f32.partialorder %v7771_v10, 0.7853982  ;;  %v583_v33 = vsel %vm581_vm14, %v582_v22, %v7769_v11  ;;  %v1914_v0 = vand.u32 2147483647, %v1913_v40  ;;  %v4149_v16 = vpack.c.bf16 %v793_v14, %v377_v30 }
 0x259   :  { %v584_v53 = vsel %vm577_vm13, %v580_v13, %v583_v33  ;;  %v995_v23 = vxor.u32 2147483648, %v7775_v45  ;;  %4376 = vcosq.f32 %v5837_v29  ;;  %v5944_v3 = vadd.s32 3, %v1819_v37  ;;  %v4373_v58 = vpop.eup %4372 }
 0x25a   :  { %vm574_vm4 = vweird.f32 %v7776_v26  ;;  %vm994_vm10 = vcmp.eq.s32.totalorder %v992_v56, 0  ;;  %v1917_v7 = vmul.f32 %v1916_v60, %v1914_v0  ;;  %4150 = vmatpush1.bf16.msra.mxu0 %v4149_v16  ;;  %v998_v30 = vxor.u32 2147483648, %v7777_v63  ;;  %v4375_v57 = vpop.eup %4374 }
 0x25b   :  { %v996_v47 = vsel %vm994_vm10, %v7777_v63, %v995_v23  ;;  %v1296_v19 = vsub.s32 4, %v7778_v43  ;;  %v585_v41 = vsel %vm574_vm4, nan, %v584_v53  ;;  %vm990_vm11 = vweird.f32 %v7779_v38 }
 0x25c   :  { %vm997_vm2 = vcmp.eq.s32.totalorder %v992_v56, 2  ;;  %v1712_v25 = vsub.s32 4, %v5784_v12  ;;  %v1918_v39 = vxor.u32 2147483648, %v1917_v7  ;;  %vm993_vm0 = vcmp.lt.s32.totalorder %v992_v56, 2 }
 0x25d   :  { %v999_v37 = vsel %vm997_vm2, %v998_v30, %v7775_v45  ;;  %vm7780_vm3 = vcmp.lt.s32.totalorder %v5274_v35, 0  ;;  %vm1302_vm6 = vweird.f32 %v5274_v35  ;;  %v1307_v20 = vxor.u32 2147483648, %v5694_v51 }
 0x25e   :  { %v1297_v11 = vsel %vm7780_vm3, %v1296_v19, %v7778_v43  ;;  %v1000_v9 = vsel %vm993_vm0, %v996_v47, %v999_v37  ;;  %v1713_v17 = vsel %vm1628_vm12, %v1712_v25, %v5784_v12  ;;  %v1919_v31 = vsel %vm1836_vm7, %v1918_v39, %v1917_v7  ;;  %v7782_v43 = vld [vmem:[#allocation28_spill] sm:$0xff] }
 0x25f   :  { %v1299_v28 = vsel %vm5551_vm1, 0, %v1297_v11  ;;  %v1001_v22 = vsel %vm990_vm11, nan, %v1000_v9  ;;  %v1715_v10 = vsel %vm5875_vm8, 0, %v1713_v17  ;;  %v1922_v61 = vsel %vm5929_vm9, %v5584_v46, %v1919_v31  ;;  %v7783_v11 = vld [vmem:[#allocation34_spill] sm:$0xff]  ;;  %v7784_v17 = vld [vmem:[#allocation37_spill] sm:$0xff] }
 0x260   :  { %v1303_v15 = vadd.s32 3, %v1299_v28  ;;  %v4157_v40 = vpack.c.bf16 %v1001_v22, %v585_v41  ;;  %v1310_v5 = vxor.u32 2147483648, %v5690_v24  ;;  %v1719_v13 = vadd.s32 3, %v1715_v10  ;;  %v7785_v22 = vld [vmem:[#allocation19_spill] sm:$0xff] }
 0x261   :  { %4378 = vcosq.f32 %v1922_v61  ;;  %v1723_v14 = vxor.u32 2147483648, %v4375_v57  ;;  %v1504_v12 = vsub.s32 4, %v5525_v49  ;;  %vm1718_vm1 = vweird.f32 %v5486_v48 }
 0x262   :  { %v1304_v60 = vand.u32 3, %v1303_v15  ;;  %4380 = vsinq.f32 %v1922_v61  ;;  %4158 = vmatpush1.bf16.msra.mxu1 %v4157_v40  ;;  %v1720_v33 = vand.u32 3, %v1719_v13  ;;  %v1726_v4 = vxor.u32 2147483648, %v4373_v58 }
 0x263   :  { %vm7781_vm13 = vcmp.lt.s32.totalorder %v5362_v62, 0  ;;  %v1515_v56 = vxor.u32 2147483648, %v5718_v32  ;;  %v5977_v0 = vpop.eup %4376  ;;  %4382 = vsinq.f32 %v5837_v29  ;;  %vm1926_vm0 = vweird.f32 %v5584_v46 }
 0x264   :  { %vm1306_vm12 = vcmp.eq.s32.totalorder %v1304_v60, 0  ;;  %vm1309_vm8 = vcmp.eq.s32.totalorder %v1304_v60, 2  ;;  %v1505_v1 = vsel %vm7781_vm13, %v1504_v12, %v5525_v49  ;;  %vm1305_vm5 = vcmp.lt.s32.totalorder %v1304_v60, 2  ;;  %v7786_v12 = vld [vmem:[#allocation33_spill] sm:$0xff] }
 0x265   :  { %v1308_v16 = vsel %vm1306_vm12, %v5690_v24, %v1307_v20  ;;  %v1311_v53 = vsel %vm1309_vm8, %v1310_v5, %v5694_v51  ;;  %vm1722_vm14 = vcmp.eq.s32.totalorder %v1720_v33, 0  ;;  %vm1725_vm4 = vcmp.eq.s32.totalorder %v1720_v33, 2 }
 0x266   :  { %v1312_v45 = vsel %vm1305_vm5, %v1308_v16, %v1311_v53  ;;  %v1724_v23 = vsel %vm1722_vm14, %v4373_v58, %v1723_v14  ;;  %v1507_v26 = vsel %vm5645_vm15, 0, %v1505_v1  ;;  %vm1721_vm10 = vcmp.lt.s32.totalorder %v1720_v33, 2  ;;  %v7788_v16 = vld [vmem:[#allocation35_spill] sm:$0xff] }
 0x267   :  { %v1727_v7 = vsel %vm1725_vm4, %v1726_v4, %v4375_v57  ;;  %v1511_v63 = vadd.s32 3, %v1507_v26  ;;  %v1920_v49 = vsub.s32 4, %v5862_v55  ;;  %v1313_v47 = vsel %vm1302_vm6, nan, %v1312_v45  ;;  %v7787_v4 = vld [vmem:[#allocation36_spill] sm:$0xff] }
 0x268   :  { %v1728_v30 = vsel %vm1721_vm10, %v1724_v23, %v1727_v7  ;;  %v1518_v24 = vxor.u32 2147483648, %v5715_v21  ;;  %v1200_v51 = vand.u32 3, %v7782_v43  ;;  %v1203_v57 = vxor.u32 2147483648, %v5619_v18 }
 0x269   :  { %v1729_v58 = vsel %vm1718_vm1, nan, %v1728_v30  ;;  %v1512_v19 = vand.u32 3, %v1511_v63  ;;  %v1921_v59 = vsel %vm1836_vm7, %v1920_v49, %v5862_v55  ;;  %vm1510_vm15 = vweird.f32 %v5362_v62 }
 0x26a   :  { %v4151_v41 = vpack.c.bf16 %v1729_v58, %v1313_v47  ;;  %v1923_v35 = vsel %vm5929_vm9, 0, %v1921_v59  ;;  %vm1202_vm7 = vcmp.eq.s32.totalorder %v1200_v51, 0  ;;  %v1206_v36 = vxor.u32 2147483648, %v7783_v11  ;;  %v1938_v47 = vld [vmem:[%s7549_s3] sm:$0xff] }
 0x26b   :  { %vm1514_vm11 = vcmp.eq.s32.totalorder %v1512_v19, 0  ;;  %vm1517_vm2 = vcmp.eq.s32.totalorder %v1512_v19, 2  ;;  %v1927_v48 = vadd.s32 3, %v1923_v35  ;;  %v4379_v38 = vpop.eup %4378  ;;  %vm1513_vm3 = vcmp.lt.s32.totalorder %v1512_v19, 2 }
 0x26c   :  { %4152 = vmatprep.subr.bf16.mxu0 %v4151_v41  ;;  %v1516_v55 = vsel %vm1514_vm11, %v5715_v21, %v1515_v56  ;;  %v1519_v25 = vsel %vm1517_vm2, %v1518_v24, %v5718_v32  ;;  %v4381_v29 = vpop.eup %4380  ;;  %v1934_v37 = vxor.u32 2147483648, %v4379_v38  ;;  %v1204_v9 = vsel %vm1202_vm7, %v7783_v11, %v1203_v57  ;;  %v7789_v24 = vld [vmem:[#allocation20_spill] sm:$0xff]  ;;  %v1941_v57 = vld [vmem:[%s7549_s3 + $0x18] sm:$0xff]  ;;  %v6055_v41 = vpop.permute.xlu0 %1948 }
 0x26d   :  { %v1928_v39 = vand.u32 3, %v1927_v48  ;;  %v1520_v28 = vsel %vm1513_vm3, %v1516_v55, %v1519_v25  ;;  %v1931_v20 = vxor.u32 2147483648, %v4381_v29  ;;  %vm1205_vm9 = vcmp.eq.s32.totalorder %v1200_v51, 2  ;;  %v4383_v62 = vpop.eup %4382 }
 0x26e   :  { %v1616_v31 = vand.u32 3, %v7784_v17  ;;  %vm1198_vm12 = vweird.f32 %v7785_v22  ;;  %v1207_v21 = vsel %vm1205_vm9, %v1206_v36, %v5619_v18  ;;  %vm1201_vm13 = vcmp.lt.s32.totalorder %v1200_v51, 2 }
 0x26f   :  { %vm1930_vm6 = vcmp.eq.s32.totalorder %v1928_v39, 0  ;;  %vm1933_vm1 = vcmp.eq.s32.totalorder %v1928_v39, 2  ;;  %vm1929_vm8 = vcmp.lt.s32.totalorder %v1928_v39, 2  ;;  %v1521_v10 = vsel %vm1510_vm15, nan, %v1520_v28 }
 0x270   :  { %v1932_v32 = vsel %vm1930_vm6, %v4379_v38, %v1931_v20  ;;  %v1935_v15 = vsel %vm1933_vm1, %v1934_v37, %v4381_v29  ;;  %v1208_v40 = vsel %vm1201_vm13, %v1204_v9, %v1207_v21  ;;  %v1619_v5 = vxor.u32 2147483648, %v5860_v34 }
 0x271   :  { %v1936_v61 = vsel %vm1929_vm8, %v1932_v32, %v1935_v15  ;;  %vm1618_vm5 = vcmp.eq.s32.totalorder %v1616_v31, 0  ;;  %vm1621_vm14 = vcmp.eq.s32.totalorder %v1616_v31, 2  ;;  %v1622_v60 = vxor.u32 2147483648, %v5853_v50 }
 0x272   :  { %v1937_v13 = vsel %vm1926_vm0, nan, %v1936_v61  ;;  %v1620_v18 = vsel %vm1618_vm5, %v5853_v50, %v1619_v5  ;;  %v1408_v33 = vand.u32 3, %v7786_v12  ;;  %v1411_v1 = vxor.u32 2147483648, %v7787_v4 }
 0x273   :  { %v4159_v14 = vpack.c.bf16 %v1937_v13, %v1521_v10  ;;  %vm1617_vm4 = vcmp.lt.s32.totalorder %v1616_v31, 2  ;;  %v1623_v56 = vsel %vm1621_vm14, %v1622_v60, %v5860_v34  ;;  %v1414_v53 = vxor.u32 2147483648, %v7788_v16 }
 0x274   :  { %v1824_v46 = vand.u32 3, %v5944_v3  ;;  %vm1614_vm10 = vweird.f32 %v5422_v6  ;;  %v1624_v45 = vsel %vm1617_vm4, %v1620_v18, %v1623_v56  ;;  %vm1410_vm15 = vcmp.eq.s32.totalorder %v1408_v33, 0 }
 0x275   :  { %4160 = vmatprep.subr.bf16.mxu1 %v4159_v14  ;;  %vm1413_vm11 = vcmp.eq.s32.totalorder %v1408_v33, 2  ;;  %v1209_v50 = vsel %vm1198_vm12, nan, %v1208_v40  ;;  %v1625_v23 = vsel %vm1614_vm10, nan, %v1624_v45  ;;  %v1412_v26 = vsel %vm1410_vm15, %v7788_v16, %v1411_v1 }
 0x276   :  { %v1415_v7 = vsel %vm1413_vm11, %v1414_v53, %v7787_v4  ;;  %v4153_v63 = vpack.c.bf16 %v1625_v23, %v1209_v50  ;;  %v1827_v34 = vxor.u32 2147483648, %v4383_v62  ;;  %vm1409_vm2 = vcmp.lt.s32.totalorder %v1408_v33, 2 }
 0x277   :  { %vm1826_vm0 = vcmp.eq.s32.totalorder %v1824_v46, 0  ;;  %v1830_v3 = vxor.u32 2147483648, %v5977_v0  ;;  %v1416_v49 = vsel %vm1409_vm2, %v1412_v26, %v1415_v7  ;;  %vm1829_vm3 = vcmp.eq.s32.totalorder %v1824_v46, 2 }
 0x278   :  { %4154 = vmatpush1.bf16.msra.mxu0 %v4153_v63  ;;  %v1828_v6 = vsel %vm1826_vm0, %v5977_v0, %v1827_v34  ;;  %vm7641_vm7 = vcmask 261120   ;;  %vm1825_vm9 = vcmp.lt.s32.totalorder %v1824_v46, 2  ;;  %vm1406_vm6 = vweird.f32 %v7789_v24  ;;  %v1939_v0 = vld [vmem:[%s7549_s3 + $0x8] sm:$0xff] }
 0x279   :  { %v1831_v30 = vsel %vm1829_vm3, %v1830_v3, %v4383_v62  ;;  %vm1822_vm1 = vweird.f32 %v5429_v44  ;;  %v1417_v51 = vsel %vm1406_vm6, nan, %v1416_v49  ;;  %v7790_v59 = vmov 0.0   ;;  %v1940_v44 = vld [vmem:[%s7549_s3 + $0x10] sm:$0xff] }
 0x27a   :  { %v1832_v43 = vsel %vm1825_vm9, %v1828_v6, %v1831_v30 }
 0x27b   :  { %v1833_v58 = vsel %vm1822_vm1, nan, %v1832_v43  ;;  %4073 = vmatmul.mubr.msk.f32.vlgmr.msra.gmra.mrb[8].mxu0 %vm7641_vm7, %v1938_v47 }
 0x27c   :  { %v4161_v19 = vpack.c.bf16 %v1833_v58, %v1417_v51  ;;  %2049 = vmatprep.mubr.f32.mxu0 %v7790_v59 }
 0x27e   :  { %4162 = vmatpush1.bf16.msra.mxu1 %v4161_v19 }
 0x27f   :  { %4074 = vmatmul.mubr.msk.f32.gmra.mrb[10].mxu0 %vm7641_vm7, %v1939_v0 }
 0x280   :  { %2055 = vmatprep.mubr.f32.mxu0 %v7790_v59 }
 0x281   :  { %4077 = vmatmul.mubr.msk.f32.vlgmr.msra.gmra.mrb[8].mxu1 %vm7641_vm7, %v1938_v47 }
 0x282   :  { %2138 = vmatprep.mubr.f32.mxu1 %v7790_v59 }
 0x283   :  { %4075 = vmatmul.mubr.msk.f32.gmra.mrb[12].mxu0 %vm7641_vm7, %v1940_v44 }
 0x284   :  { %2061 = vmatprep.mubr.f32.mxu0 %v7790_v59 }
 0x285   :  { %4078 = vmatmul.mubr.msk.f32.gmra.mrb[10].mxu1 %vm7641_vm7, %v1939_v0 }
 0x286   :  { %2144 = vmatprep.mubr.f32.mxu1 %v7790_v59 }
 0x287   :  { %4076 = vmatmul.mubr.msk.f32.gmra.mrb[14].mxu0 %vm7641_vm7, %v1941_v57 }
 0x288   :  { %3895 = vmatprep.mubr.f32.mxu0 %v7790_v59 }
 0x289   :  { %4079 = vmatmul.mubr.msk.f32.gmra.mrb[12].mxu1 %vm7641_vm7, %v1940_v44 }
 0x28a   :  { %2150 = vmatprep.mubr.f32.mxu1 %v7790_v59 }
 0x28d   :  { %4080 = vmatmul.mubr.msk.f32.gmra.mrb[14].mxu1 %vm7641_vm7, %v1941_v57 }
 0x28e   :  { %3966 = vmatprep.mubr.f32.mxu1 %v7790_v59 }
 0x34e   :  { %v2045_v35 = vpop.f32.mrb[8].mxu0 }
 0x34f   :  { %v6058_v48 = vadd.f32 %v2045_v35, %v6055_v41  ;;  %v2047_v38 = vpop.f32.mrb[9].mxu0 }
 0x350   :  { %v6061_v55 = vadd.f32 %v2047_v38, %v6055_v41 }
 0x351   :  { %7791 = vst [vmem:[#allocation7_spill] sm:$0xff] %v6058_v48  ;;  %v2157_v25 = vand.u32 2147483647, %v6058_v48  ;;  %v2160_v29 = vand.u32 2139095040, %v6058_v48 }
 0x352   :  { %v2264_v39 = vand.u32 2139095040, %v6061_v55  ;;  %v6066_v37 = vpop.f32.mrb[10].mxu0  ;;  %v7617_v40 = vand.u32 2147483647, %v6061_v55 }
 0x353   :  { %v2161_v11 = vshrl.u32 %v2160_v29, 23  ;;  %v6068_v9 = vpop.f32.mrb[11].mxu0  ;;  %v2164_v36 = vand.u32 8388607, %v2157_v25 }
 0x354   :  { %v2134_v28 = vpop.f32.mrb[8].mxu1  ;;  %v2265_v20 = vshrl.u32 %v2264_v39, 23  ;;  %v6090_v56 = vand.u32 8388607, %v7617_v40 }
 0x355   :  { %v4081_v17 = vadd.s32 4294967169, %v2161_v11  ;;  %v6073_v31 = vadd.f32 %v2134_v28, %v6055_v41  ;;  %v6075_v22 = vpop.f32.mrb[9].mxu1  ;;  %v2165_v10 = vor.u32 8388608, %v2164_v36 }
 0x356   :  { %v4085_v21 = vadd.s32 4294967169, %v2265_v20  ;;  %v6105_v38 = vpop.f32.mrb[12].mxu0 }
 0x357   :  { %7792 = vst [vmem:[#allocation21_spill] sm:$0xff] %v6073_v31  ;;  %v2167_v32 = vadd.s32 1, %v4081_v17  ;;  %v2365_v15 = vand.u32 2147483647, %v6073_v31  ;;  %v2368_v61 = vand.u32 2139095040, %v6073_v31  ;;  %v6086_v62 = vshll.u32 %v2165_v10, 8 }
 0x358   :  { %v2271_v5 = vadd.s32 1, %v4085_v21  ;;  %v6080_v13 = vpop.f32.mrb[10].mxu1 }
 0x359   :  { %vm2168_vm12 = vcmp.gt.s32.totalorder %v2167_v32, 0  ;;  %v2372_v60 = vand.u32 8388607, %v2365_v15  ;;  %v2369_v18 = vshrl.u32 %v2368_v61, 23  ;;  %v6084_v12 = vpop.f32.mrb[11].mxu1 }
 0x35a   :  { %v2169_v14 = vsel %vm2168_vm12, %v2167_v32, 0  ;;  %vm2272_vm8 = vcmp.gt.s32.totalorder %v2271_v5, 0 }
 0x35b   :  { %v2171_v33 = vand.u32 31, %v2169_v14  ;;  %v2273_v4 = vsel %vm2272_vm8, %v2271_v5, 0  ;;  %v2170_v1 = vshrl.u32 %v2169_v14, 5  ;;  %v4089_v53 = vadd.s32 4294967169, %v2369_v18 }
 0x35c   :  { %v2373_v46 = vor.u32 8388608, %v2372_v60  ;;  %v6092_v45 = vand.u32 31, %v2273_v4 }
 0x35d   :  { %v2172_v16 = vsub.s32 32, %v2171_v33  ;;  %v2174_v50 = vshll.u32 %v7699_v54, %v2171_v33  ;;  %v2177_v23 = vshll.u32 %v7695_v2, %v2171_v33  ;;  %v2180_v26 = vshll.u32 %v7696_v42, %v2171_v33 }
 0x35e   :  { %v2183_v7 = vshll.u32 %v7697_v8, %v2171_v33  ;;  %v2186_v49 = vshll.u32 %v7684_v27, %v2171_v33  ;;  %vm2189_vm13 = vcmp.lt.s32.totalorder %v2170_v1, 1  ;;  %v2375_v58 = vadd.s32 1, %v4089_v53 }
 0x35f   :  { %v2175_v63 = vshrl.u32 %v7695_v2, %v2172_v16  ;;  %v2178_v34 = vshrl.u32 %v7696_v42, %v2172_v16  ;;  %v2181_v3 = vshrl.u32 %v7697_v8, %v2172_v16  ;;  %v2173_v6 = vshrl.u32 %v7699_v54, %v2172_v16 }
 0x360   :  { %v2184_v47 = vshrl.u32 %v7684_v27, %v2172_v16  ;;  %v2187_v30 = vshrl.u32 %v7685_v52, %v2172_v16  ;;  %vm2191_vm5 = vcmp.lt.s32.totalorder %v2170_v1, 3  ;;  %vm2192_vm14 = vcmp.lt.s32.totalorder %v2170_v1, 4 }
 0x361   :  { %v2176_v24 = vor.u32 %v2175_v63, %v2174_v50  ;;  %v2179_v43 = vor.u32 %v2178_v34, %v2177_v23  ;;  %v2182_v51 = vor.u32 %v2181_v3, %v2180_v26  ;;  %vm2376_vm4 = vcmp.gt.s32.totalorder %v2375_v58, 0 }
 0x362   :  { %v2185_v19 = vor.u32 %v2184_v47, %v2183_v7  ;;  %v2188_v59 = vor.u32 %v2187_v30, %v2186_v49  ;;  %vm2190_vm10 = vcmp.lt.s32.totalorder %v2170_v1, 2  ;;  %v2377_v20 = vsel %vm2376_vm4, %v2375_v58, 0 }
 0x363   :  { %v2193_v0 = vsel %vm2189_vm13, %v2173_v6, %v2176_v24  ;;  %v2194_v44 = vsel %vm2192_vm14, %v2182_v51, 2102212464  ;;  %v2197_v57 = vsel %vm2189_vm13, %v2176_v24, %v2179_v43  ;;  %v2201_v35 = vsel %vm2189_vm13, %v2179_v43, %v2182_v51 }
 0x364   :  { %v2195_v29 = vsel %vm2191_vm5, %v2179_v43, %v2194_v44  ;;  %v2198_v39 = vsel %vm2192_vm14, %v2185_v19, 920167782  ;;  %v2202_v11 = vsel %vm2192_vm14, %v2188_v59, 1326507024  ;;  %v2378_v10 = vshrl.u32 %v2377_v20, 5 }
 0x365   :  { %v2199_v36 = vsel %vm2191_vm5, %v2182_v51, %v2198_v39  ;;  %v2203_v28 = vsel %vm2191_vm5, %v2185_v19, %v2202_v11  ;;  %v2196_v17 = vsel %vm2190_vm10, %v2193_v0, %v2195_v29  ;;  %v2379_v18 = vand.u32 31, %v2377_v20  ;;  %v6147_v29 = vpop.f32.mrb[12].mxu1 }
 0x366   :  { %v2200_v21 = vsel %vm2190_vm10, %v2197_v57, %v2199_v36  ;;  %v2204_v32 = vsel %vm2190_vm10, %v2201_v35, %v2203_v28  ;;  %v2269_v33 = vor.u32 8388608, %v6090_v56  ;;  %v6117_v1 = vshrl.u32 %v2273_v4, 5 }
 0x367   :  { %v6108_v61 = vmul.u32.u64.low %v6086_v62, %v2204_v32  ;;  %v6109_v5 = vmul.u32.u64.high %v6086_v62, %v2204_v32, %v6108_v61  ;;  %v6112_v60 = vmul.u32.u64.low %v6086_v62, %v2200_v21  ;;  %v6113_v14 = vmul.u32.u64.high %v6086_v62, %v2200_v21, %v6112_v60 }
 0x368   :  { %v6121_v16 = vadd.f32 %v6075_v22, %v6055_v41  ;;  %v2212_v53 = vmul.u32 %v6086_v62, %v2196_v17  ;;  %vm2397_vm15 = vcmp.lt.s32.totalorder %v2378_v10, 1  ;;  %v6124_v50 = vshll.u32 %v2373_v46, 8 }
 0x369   :  { %v6127_v23 = vsub.s32 32, %v6092_v45  ;;  %v2380_v26 = vsub.s32 32, %v2379_v18  ;;  %v2382_v7 = vshll.u32 %v7699_v54, %v2379_v18  ;;  %vm2398_vm11 = vcmp.lt.s32.totalorder %v2378_v10, 2 }
 0x36a   :  { %7793 = vst [vmem:[#allocation16_spill] sm:$0xff] %v6121_v16  ;;  %vm2399_vm2 = vcmp.lt.s32.totalorder %v2378_v10, 3  ;;  %vm2214_vm0 = vc.u32 %v6109_v5, %v6112_v60  ;;  %v2215_v4 = vadd.s32 1, %v6113_v14  ;;  %v2385_v41 = vshll.u32 %v7695_v2, %v2379_v18 }
 0x36b   :  { %v2388_v22 = vshll.u32 %v7696_v42, %v2379_v18  ;;  %v2383_v62 = vshrl.u32 %v7695_v2, %v2380_v26  ;;  %v2386_v46 = vshrl.u32 %v7696_v42, %v2380_v26  ;;  %v2389_v63 = vshrl.u32 %v7697_v8, %v2380_v26 }
 0x36c   :  { %v2391_v34 = vshll.u32 %v7697_v8, %v2379_v18  ;;  %v2216_v3 = vsel %vm2214_vm0, %v2215_v4, %v6113_v14  ;;  %v2392_v49 = vshrl.u32 %v7684_v27, %v2380_v26  ;;  %v2394_v6 = vshll.u32 %v7684_v27, %v2379_v18 }
 0x36d   :  { %v2395_v47 = vshrl.u32 %v7685_v52, %v2380_v26  ;;  %v2217_v30 = vadd.s32 %v2216_v3, %v2212_v53  ;;  %v2384_v24 = vor.u32 %v2383_v62, %v2382_v7  ;;  %v2387_v43 = vor.u32 %v2386_v46, %v2385_v41 }
 0x36e   :  { %v2390_v51 = vor.u32 %v2389_v63, %v2388_v22  ;;  %v2381_v58 = vshrl.u32 %v7699_v54, %v2380_v26  ;;  %v2393_v19 = vor.u32 %v2392_v49, %v2391_v34  ;;  %vm2400_vm3 = vcmp.lt.s32.totalorder %v2378_v10, 4 }
 0x36f   :  { %v2396_v59 = vor.u32 %v2395_v47, %v2394_v6  ;;  %v2218_v0 = vadd.s32 536870912, %v2217_v30  ;;  %v2405_v57 = vsel %vm2397_vm15, %v2384_v24, %v2387_v43  ;;  %v2279_v35 = vshrl.u32 %v7695_v2, %v6127_v23 }
 0x370   :  { %v2402_v44 = vsel %vm2400_vm3, %v2390_v51, 2102212464  ;;  %v2401_v39 = vsel %vm2397_vm15, %v2381_v58, %v2384_v24  ;;  %v2406_v11 = vsel %vm2400_vm3, %v2393_v19, 920167782  ;;  %v2409_v36 = vsel %vm2397_vm15, %v2387_v43, %v2390_v51 }
 0x371   :  { %v2410_v28 = vsel %vm2400_vm3, %v2396_v59, 1326507024  ;;  %v6151_v20 = vshrl.u32 %v2218_v0, 30  ;;  %v2403_v17 = vsel %vm2399_vm2, %v2387_v43, %v2402_v44  ;;  %v2407_v21 = vsel %vm2399_vm2, %v2390_v51, %v2406_v11 }
 0x372   :  { %v2411_v32 = vsel %vm2399_vm2, %v2393_v19, %v2410_v28  ;;  %v2408_v61 = vsel %vm2398_vm11, %v2405_v57, %v2407_v21  ;;  %v2278_v18 = vshll.u32 %v7699_v54, %v6092_v45  ;;  %v2282_v53 = vshrl.u32 %v7696_v42, %v6127_v23 }
 0x373   :  { %v2412_v14 = vsel %vm2398_vm11, %v2409_v36, %v2411_v32  ;;  %v2220_v26 = vshll.u32 %v6151_v20, 30  ;;  %v2281_v41 = vshll.u32 %v7695_v2, %v6092_v45  ;;  %v2404_v22 = vsel %vm2398_vm11, %v2401_v39, %v2403_v17 }
 0x374   :  { %v6164_v7 = vmul.u32.u64.low %v6124_v50, %v2412_v14  ;;  %v6165_v4 = vmul.u32.u64.high %v6124_v50, %v2412_v14, %v6164_v7  ;;  %v6171_v62 = vmul.u32.u64.low %v6124_v50, %v2408_v61  ;;  %v6172_v46 = vmul.u32.u64.high %v6124_v50, %v2408_v61, %v6171_v62 }
 0x375   :  { %v2280_v63 = vor.u32 %v2279_v35, %v2278_v18  ;;  %v6175_v34 = vsub.s32 %v2217_v30, %v2220_v26  ;;  %v2283_v3 = vor.u32 %v2282_v53, %v2281_v41  ;;  %v2284_v49 = vshll.u32 %v7696_v42, %v6092_v45 }
 0x376   :  { %v2285_v6 = vshrl.u32 %v7697_v8, %v6127_v23  ;;  %v2287_v47 = vshll.u32 %v7697_v8, %v6092_v45  ;;  %v2288_v10 = vshrl.u32 %v7684_v27, %v6127_v23  ;;  %v2290_v24 = vshll.u32 %v7684_v27, %v6092_v45 }
 0x377   :  { %v2291_v30 = vshrl.u32 %v7685_v52, %v6127_v23  ;;  %v2223_v43 = vsub.s32 0, %v6175_v34  ;;  %vm2422_vm9 = vc.u32 %v6165_v4, %v6171_v62  ;;  %v2309_v51 = vshll.u32 %v2269_v33, 8 }
 0x378   :  { %v2472_v58 = vand.u32 2139095040, %v6121_v16  ;;  %v2423_v19 = vadd.s32 1, %v6172_v46  ;;  %v2286_v59 = vor.u32 %v2285_v6, %v2284_v49  ;;  %v2289_v0 = vor.u32 %v2288_v10, %v2287_v47 }
 0x379   :  { %v2292_v44 = vor.u32 %v2291_v30, %v2290_v24  ;;  %v4082_v45 = vmin.u32 %v2223_v43, %v6175_v34  ;;  %v2420_v57 = vmul.u32 %v6124_v50, %v2404_v22  ;;  %v2277_v35 = vshrl.u32 %v7699_v54, %v6127_v23 }
 0x37a   :  { %vm2293_vm6 = vcmp.lt.s32.totalorder %v6117_v1, 1  ;;  %v2424_v39 = vsel %vm2422_vm9, %v2423_v19, %v6172_v46  ;;  %vm2295_vm1 = vcmp.lt.s32.totalorder %v6117_v1, 3  ;;  %vm2296_vm12 = vcmp.lt.s32.totalorder %v6117_v1, 4 }
 0x37b   :  { %v2301_v56 = vsel %vm2293_vm6, %v2280_v63, %v2283_v3  ;;  %v2225_v33 = vclz %v4082_v45  ;;  %v2425_v11 = vadd.s32 %v2424_v39, %v2420_v57  ;;  %v2298_v36 = vsel %vm2296_vm12, %v2286_v59, 2102212464  ;;  %v6235_v45 = vpop.f32.mrb[13].mxu0 }
 0x37c   :  { %v2302_v28 = vsel %vm2296_vm12, %v2289_v0, 920167782  ;;  %vm2294_vm8 = vcmp.lt.s32.totalorder %v6117_v1, 2  ;;  %v2305_v17 = vsel %vm2293_vm6, %v2283_v3, %v2286_v59  ;;  %v2306_v23 = vsel %vm2296_vm12, %v2292_v44, 1326507024 }
 0x37d   :  { %v2303_v50 = vsel %vm2295_vm1, %v2286_v59, %v2302_v28  ;;  %v4083_v21 = vadd.s32 4294967294, %v2225_v33  ;;  %v2426_v32 = vadd.s32 536870912, %v2425_v11  ;;  %v2297_v61 = vsel %vm2293_vm6, %v2277_v35, %v2280_v63 }
 0x37e   :  { %v2304_v14 = vsel %vm2294_vm8, %v2301_v56, %v2303_v50  ;;  %v2299_v18 = vsel %vm2295_vm1, %v2283_v3, %v2298_v36  ;;  %v2307_v53 = vsel %vm2295_vm1, %v2289_v0, %v2306_v23  ;;  %v2473_v46 = vshrl.u32 %v2472_v58, 23 }
 0x37f   :  { %v6213_v26 = vmul.u32.u64.low %v2309_v51, %v2304_v14  ;;  %v6214_v7 = vmul.u32.u64.high %v2309_v51, %v2304_v14, %v6213_v26  ;;  %vm4084_vm13 = vcmp.lt.s32.totalorder %v4083_v21, 0  ;;  %v6217_v41 = vshrl.u32 %v2426_v32, 30 }
 0x380   :  { %v2308_v22 = vsel %vm2294_vm8, %v2305_v17, %v2307_v53  ;;  %v2228_v63 = vsel %vm4084_vm13, 0, %v4083_v21  ;;  %v7613_v24 = vand.u32 2147483647, %v6121_v16  ;;  %v2300_v30 = vsel %vm2294_vm8, %v2297_v61, %v2299_v18 }
 0x381   :  { %v6221_v49 = vmul.u32.u64.low %v2309_v51, %v2308_v22  ;;  %v6222_v6 = vmul.u32.u64.high %v2309_v51, %v2308_v22, %v6221_v49  ;;  %v2229_v47 = vsub.s32 32, %v2228_v63  ;;  %v2233_v3 = vsub.s32 4294967266, %v2228_v63 }
 0x382   :  { %v2428_v10 = vshll.u32 %v6217_v41, 30  ;;  %v2319_v43 = vadd.s32 1, %v6214_v7  ;;  %v4093_v19 = vadd.s32 4294967169, %v2473_v46  ;;  %v2213_v59 = vadd.s32 %v6112_v60, %v6109_v5  ;;  %v6241_v5 = vpop.permute.xlu1 %1953 }
 0x383   :  { %v2234_v58 = vadd.s32 127, %v2233_v3  ;;  %vm2318_vm5 = vc.u32 %v6222_v6, %v6213_v26  ;;  %v2316_v1 = vmul.u32 %v2309_v51, %v2300_v30  ;;  %v2476_v39 = vand.u32 8388607, %v7613_v24 }
 0x384   :  { %v6231_v0 = vsub.s32 %v2425_v11, %v2428_v10  ;;  %v2479_v44 = vadd.s32 1, %v4093_v19  ;;  %v2231_v57 = vshrl.u32 %v2213_v59, %v2229_v47  ;;  %v2320_v56 = vsel %vm2318_vm5, %v2319_v43, %v6214_v7 }
 0x385   :  { %v2230_v60 = vshll.u32 %v6175_v34, %v2228_v63  ;;  %v2235_v33 = vshll.u32 %v2234_v58, 23  ;;  %v2321_v36 = vadd.s32 %v2320_v56, %v2316_v1  ;;  %v6247_v50 = vadd.f32 %v6066_v37, %v6241_v5 }
 0x386   :  { %v2431_v35 = vsub.s32 0, %v6231_v0  ;;  %vm2480_vm14 = vcmp.gt.s32.totalorder %v2479_v44, 0  ;;  %v2477_v21 = vor.u32 8388608, %v2476_v39  ;;  %v2421_v34 = vadd.s32 %v6171_v62, %v6165_v4 }
 0x387   :  { %v2481_v28 = vsel %vm2480_vm14, %v2479_v44, 0  ;;  %7794 = vst [vmem:[#allocation23_spill] sm:$0xff] %v6247_v50  ;;  %v6249_v51 = vor.u32 %v2231_v57, %v2230_v60  ;;  %v2322_v23 = vadd.s32 536870912, %v2321_v36  ;;  %v6251_v61 = vor.u32 4788187, %v2235_v33 }
 0x388   :  { %v4090_v11 = vmin.u32 %v2431_v35, %v6231_v0  ;;  %v2483_v32 = vand.u32 31, %v2481_v28  ;;  %v7614_v7 = vand.u32 2147483647, %v6247_v50  ;;  %v6260_v46 = vshll.u32 %v2477_v21, 8 }
 0x389   :  { %v6253_v18 = vshrl.u32 %v2322_v23, 30  ;;  %v2239_v37 = vcvt.s32.f32 %v6249_v51  ;;  %v2576_v3 = vand.u32 2139095040, %v6247_v50  ;;  %v2237_v10 = vand.u32 2147483647, %v6251_v61 }
 0x38a   :  { %v2433_v17 = vclz %v4090_v11  ;;  %v2484_v53 = vsub.s32 32, %v2483_v32  ;;  %v2486_v30 = vshll.u32 %v7699_v54, %v2483_v32  ;;  %v2482_v19 = vshrl.u32 %v2481_v28, 5 }
 0x38b   :  { %v2324_v22 = vshll.u32 %v6253_v18, 30  ;;  %v2489_v59 = vshll.u32 %v7695_v2, %v2483_v32  ;;  %v2492_v58 = vshll.u32 %v7696_v42, %v2483_v32  ;;  %v2495_v1 = vshll.u32 %v7697_v8, %v2483_v32 }
 0x38c   :  { %v4091_v14 = vadd.s32 4294967294, %v2433_v17  ;;  %v2487_v49 = vshrl.u32 %v7695_v2, %v2484_v53  ;;  %v2490_v47 = vshrl.u32 %v7696_v42, %v2484_v53  ;;  %v2493_v35 = vshrl.u32 %v7697_v8, %v2484_v53 }
 0x38d   :  { %v6267_v43 = vsub.s32 %v2321_v36, %v2324_v22  ;;  %v2496_v33 = vshrl.u32 %v7684_v27, %v2484_v53  ;;  %v2498_v36 = vshll.u32 %v7684_v27, %v2483_v32  ;;  %v2499_v28 = vshrl.u32 %v7685_v52, %v2484_v53 }
 0x38e   :  { %vm4092_vm4 = vcmp.lt.s32.totalorder %v4091_v14, 0  ;;  %v2488_v57 = vor.u32 %v2487_v49, %v2486_v30  ;;  %v2491_v60 = vor.u32 %v2490_v47, %v2489_v59  ;;  %v2494_v11 = vor.u32 %v2493_v35, %v2492_v58 }
 0x38f   :  { %v2436_v63 = vsel %vm4092_vm4, 0, %v4091_v14  ;;  %v2327_v56 = vsub.s32 0, %v6267_v43  ;;  %v2577_v51 = vshrl.u32 %v2576_v3, 23  ;;  %v2497_v61 = vor.u32 %v2496_v33, %v2495_v1 }
 0x390   :  { %v2437_v4 = vsub.s32 32, %v2436_v63  ;;  %v2441_v62 = vsub.s32 4294967266, %v2436_v63  ;;  %v2438_v17 = vshll.u32 %v6231_v0, %v2436_v63  ;;  %v2485_v14 = vshrl.u32 %v7699_v54, %v2484_v53 }
 0x391   :  { %v4086_v21 = vmin.u32 %v2327_v56, %v6267_v43  ;;  %vm2501_vm10 = vcmp.lt.s32.totalorder %v2482_v19, 1  ;;  %vm2504_vm15 = vcmp.lt.s32.totalorder %v2482_v19, 4  ;;  %vm2502_vm11 = vcmp.lt.s32.totalorder %v2482_v19, 2 }
 0x392   :  { %v2442_v44 = vadd.s32 127, %v2441_v62  ;;  %v2439_v39 = vshrl.u32 %v2421_v34, %v2437_v4  ;;  %v2500_v34 = vor.u32 %v2499_v28, %v2498_v36  ;;  %v2506_v47 = vsel %vm2504_vm15, %v2494_v11, 2102212464 }
 0x393   :  { %v2329_v49 = vclz %v4086_v21  ;;  %v2509_v4 = vsel %vm2501_vm10, %v2488_v57, %v2491_v60  ;;  %vm2503_vm2 = vcmp.lt.s32.totalorder %v2482_v19, 3  ;;  %v2510_v32 = vsel %vm2504_vm15, %v2497_v61, 920167782 }
 0x394   :  { %v2443_v23 = vshll.u32 %v2442_v44, 23  ;;  %v2440_v22 = vor.u32 %v2439_v39, %v2438_v17  ;;  %v2513_v62 = vsel %vm2501_vm10, %v2491_v60, %v2494_v11  ;;  %v2511_v0 = vsel %vm2503_vm2, %v2494_v11, %v2510_v32 }
 0x395   :  { %v4087_v30 = vadd.s32 4294967294, %v2329_v49  ;;  %v2514_v63 = vsel %vm2504_vm15, %v2500_v34, 1326507024  ;;  %v2505_v59 = vsel %vm2501_vm10, %v2485_v14, %v2488_v57  ;;  %v2507_v58 = vsel %vm2503_vm2, %v2491_v60, %v2506_v47  ;;  %v6301_v49 = vpop.f32.mrb[13].mxu1 }
 0x396   :  { %v2444_v3 = vor.u32 4788187, %v2443_v23  ;;  %v2512_v44 = vsel %vm2502_vm11, %v2509_v4, %v2511_v0  ;;  %v2515_v53 = vsel %vm2503_vm2, %v2497_v61, %v2514_v63  ;;  %v2240_v11 = vmul.f32 %v2239_v37, %v2237_v10 }
 0x397   :  { %vm4088_vm0 = vcmp.lt.s32.totalorder %v4087_v30, 0  ;;  %v2516_v35 = vsel %vm2502_vm11, %v2513_v62, %v2515_v53  ;;  %v6283_v1 = vmul.u32.u64.low %v6260_v46, %v2512_v44  ;;  %v6284_v39 = vmul.u32.u64.high %v6260_v46, %v2512_v44, %v6283_v1 }
 0x398   :  { %v6287_v56 = vsel %vm4088_vm0, 0, %v4087_v30  ;;  %v6290_v33 = vmul.u32.u64.low %v6260_v46, %v2516_v35  ;;  %v6291_v36 = vmul.u32.u64.high %v6260_v46, %v2516_v35, %v6290_v33  ;;  %v2445_v57 = vand.u32 2147483647, %v2444_v3 }
 0x399   :  { %v2508_v60 = vsel %vm2502_vm11, %v2505_v59, %v2507_v58  ;;  %v4097_v28 = vadd.s32 4294967169, %v2577_v51  ;;  %vm2159_vm3 = vcmp.lt.s32.totalorder %v6058_v48, 0  ;;  %v2243_v17 = vsub.s32 4, %v6151_v20 }
 0x39a   :  { %v2337_v23 = vsub.s32 4294967266, %v6287_v56  ;;  %v2447_v21 = vcvt.s32.f32 %v2440_v22  ;;  %v2451_v61 = vsub.s32 4, %v6217_v41  ;;  %v2527_v14 = vadd.s32 1, %v6284_v39 }
 0x39b   :  { %v2580_v34 = vand.u32 8388607, %v7614_v7  ;;  %v2524_v37 = vmul.u32 %v6260_v46, %v2508_v60  ;;  %vm2526_vm9 = vc.u32 %v6291_v36, %v6283_v1  ;;  %v2583_v10 = vadd.s32 1, %v4097_v28 }
 0x39c   :  { %v6308_v19 = vadd.f32 %v6080_v13, %v6241_v5  ;;  %v2241_v51 = vxor.u32 2147483648, %v2240_v11  ;;  %v6310_v22 = vmul.f32 %v2447_v21, %v2445_v57  ;;  %v2333_v47 = vsub.s32 32, %v6287_v56 }
 0x39d   :  { %v2528_v4 = vsel %vm2526_vm9, %v2527_v14, %v6284_v39  ;;  %v2338_v32 = vadd.s32 127, %v2337_v23  ;;  %vm2584_vm6 = vcmp.gt.s32.totalorder %v2583_v10, 0  ;;  %v6316_v46 = vadd.f32 %v6068_v9, %v6241_v5 }
 0x39e   :  { %7795 = vst [vmem:[#allocation22_spill] sm:$0xff] %v6308_v19  ;;  %v2529_v62 = vadd.s32 %v2528_v4, %v2524_v37  ;;  %v6321_v3 = vsel %vm2159_vm3, %v2243_v17, %v6151_v20  ;;  %vm2367_vm1 = vcmp.lt.s32.totalorder %v6073_v31, 0  ;;  %v2317_v13 = vadd.s32 %v6213_v26, %v6222_v6 }
 0x39f   :  { %v2585_v30 = vsel %vm2584_vm6, %v2583_v10, 0  ;;  %v6329_v0 = vsel %vm2367_vm1, %v2451_v61, %v6217_v41  ;;  %v2581_v59 = vor.u32 8388608, %v2580_v34  ;;  %v2242_v58 = vsel %vm2159_vm3, %v2241_v51, %v2240_v11 }
 0x3a0   :  { %v2530_v63 = vadd.s32 536870912, %v2529_v62  ;;  %v2587_v9 = vand.u32 31, %v2585_v30  ;;  %v2449_v20 = vxor.u32 2147483648, %v6310_v22  ;;  %v2335_v44 = vshrl.u32 %v2317_v13, %v2333_v47 }
 0x3a1   :  { %v7616_v53 = vand.u32 2147483647, %v6308_v19  ;;  %v2339_v35 = vshll.u32 %v2338_v32, 23  ;;  %v2784_v6 = vand.u32 2139095040, %v6308_v19  ;;  %v2586_v33 = vshrl.u32 %v2585_v30, 5 }
 0x3a2   :  { %v6335_v39 = vshrl.u32 %v2530_v63, 30  ;;  %v2588_v26 = vsub.s32 32, %v2587_v9  ;;  %v2590_v41 = vshll.u32 %v7699_v54, %v2587_v9  ;;  %v2593_v57 = vshll.u32 %v7695_v2, %v2587_v9 }
 0x3a3   :  { %v2596_v60 = vshll.u32 %v7696_v42, %v2587_v9  ;;  %v2599_v23 = vshll.u32 %v7697_v8, %v2587_v9  ;;  %v2602_v14 = vshll.u32 %v7684_v27, %v2587_v9  ;;  %vm6351_vm12 = vcmp.le.f32.partialorder %v2157_v25, 0.7853982 }
 0x3a4   :  { %v2532_v11 = vshll.u32 %v6335_v39, 30  ;;  %v2591_v28 = vshrl.u32 %v7695_v2, %v2588_v26  ;;  %v2594_v17 = vshrl.u32 %v7696_v42, %v2588_v26  ;;  %v2597_v21 = vshrl.u32 %v7697_v8, %v2588_v26 }
 0x3a5   :  { %v2600_v61 = vshrl.u32 %v7684_v27, %v2588_v26  ;;  %v2603_v34 = vshrl.u32 %v7685_v52, %v2588_v26  ;;  %v2334_v10 = vshll.u32 %v6267_v43, %v6287_v56  ;;  %v2621_v63 = vshll.u32 %v2581_v59, 8 }
 0x3a6   :  { %v6357_v51 = vsub.s32 %v2529_v62, %v2532_v11  ;;  %v2592_v47 = vor.u32 %v2591_v28, %v2590_v41  ;;  %v2595_v4 = vor.u32 %v2594_v17, %v2593_v57  ;;  %v2598_v32 = vor.u32 %v2597_v21, %v2596_v60 }
 0x3a7   :  { %v2601_v13 = vor.u32 %v2600_v61, %v2599_v23  ;;  %v2604_v30 = vor.u32 %v2603_v34, %v2602_v14  ;;  %vm6361_vm8 = vcmp.le.f32.partialorder %v2365_v15, 0.7853982  ;;  %v2336_v25 = vor.u32 %v2335_v44, %v2334_v10 }
 0x3a8   :  { %v2340_v24 = vor.u32 4788187, %v2339_v35  ;;  %v2535_v7 = vsub.s32 0, %v6357_v51  ;;  %vm2605_vm13 = vcmp.lt.s32.totalorder %v2586_v33, 1  ;;  %v2589_v43 = vshrl.u32 %v7699_v54, %v2588_v26 }
 0x3a9   :  { %vm2608_vm5 = vcmp.lt.s32.totalorder %v2586_v33, 4  ;;  %v2613_v56 = vsel %vm2605_vm13, %v2592_v47, %v2595_v4  ;;  %v2785_v62 = vshrl.u32 %v2784_v6, 23  ;;  %vm2607_vm14 = vcmp.lt.s32.totalorder %v2586_v33, 3 }
 0x3aa   :  { %v4094_v41 = vmin.u32 %v2535_v7, %v6357_v51  ;;  %v2610_v59 = vsel %vm2608_vm5, %v2598_v32, 2102212464  ;;  %v2614_v57 = vsel %vm2608_vm5, %v2601_v13, 920167782  ;;  %vm2606_vm4 = vcmp.lt.s32.totalorder %v2586_v33, 2 }
 0x3ab   :  { %v2615_v15 = vsel %vm2607_vm14, %v2598_v32, %v2614_v57  ;;  %v2617_v60 = vsel %vm2605_vm13, %v2595_v4, %v2598_v32  ;;  %v2618_v11 = vsel %vm2608_vm5, %v2604_v30, 1326507024  ;;  %v2609_v44 = vsel %vm2605_vm13, %v2589_v43, %v2592_v47 }
 0x3ac   :  { %v2537_v28 = vclz %v4094_v41  ;;  %v2616_v35 = vsel %vm2606_vm4, %v2613_v56, %v2615_v15  ;;  %v2619_v17 = vsel %vm2607_vm14, %v2601_v13, %v2618_v11  ;;  %v2611_v23 = vsel %vm2607_vm14, %v2595_v4, %v2610_v59  ;;  %v6388_v56 = vpop.f32.mrb[14].mxu0 }
 0x3ad   :  { %v2620_v26 = vsel %vm2606_vm4, %v2617_v60, %v2619_v17  ;;  %v6370_v21 = vmul.u32.u64.low %v2621_v63, %v2616_v35  ;;  %v6371_v61 = vmul.u32.u64.high %v2621_v63, %v2616_v35, %v6370_v21  ;;  %v4105_v34 = vadd.s32 4294967169, %v2785_v62 }
 0x3ae   :  { %v4095_v7 = vadd.s32 4294967294, %v2537_v28  ;;  %v6374_v6 = vmul.u32.u64.low %v2621_v63, %v2620_v26  ;;  %v6375_v14 = vmul.u32.u64.high %v2621_v63, %v2620_v26, %v6374_v6  ;;  %v2245_v10 = vsel %vm6351_vm12, %v6058_v48, %v2242_v58 }
 0x3af   :  { %v2246_v47 = vsel %vm6351_vm12, 0, %v6321_v3  ;;  %v2450_v4 = vsel %vm2367_vm1, %v2449_v20, %v6310_v22  ;;  %v2341_v32 = vand.u32 2147483647, %v2340_v24  ;;  %v2612_v13 = vsel %vm2606_vm4, %v2609_v44, %v2611_v23 }
 0x3b0   :  { %vm4096_vm10 = vcmp.lt.s32.totalorder %v4095_v7, 0  ;;  %v2791_v30 = vadd.s32 1, %v4105_v34  ;;  %v2680_v43 = vand.u32 2139095040, %v6316_v46  ;;  %v2454_v58 = vsel %vm6361_vm8, 0, %v6329_v0 }
 0x3b1   :  { %v2343_v62 = vcvt.s32.f32 %v2336_v25  ;;  %v6393_v37 = vsel %vm4096_vm10, 0, %v4095_v7  ;;  %v2631_v3 = vadd.s32 1, %v6371_v61  ;;  %4384 = vcosq.f32 %v2245_v10 }
 0x3b2   :  { %v6399_v24 = vsel %vm6361_vm8, %v6073_v31, %v2450_v4  ;;  %v2788_v22 = vand.u32 8388607, %v7616_v53  ;;  %v7615_v20 = vand.u32 2147483647, %v6316_v46  ;;  %v2628_v41 = vmul.u32 %v2621_v63, %v2612_v13 }
 0x3b3   :  { %v2344_v33 = vmul.f32 %v2343_v62, %v2341_v32  ;;  %vm2630_vm15 = vc.u32 %v6375_v14, %v6370_v21  ;;  %vm2792_vm11 = vcmp.gt.s32.totalorder %v2791_v30, 0  ;;  %v2545_v0 = vsub.s32 4294967266, %v6393_v37 }
 0x3b4   :  { %v2632_v25 = vsel %vm2630_vm15, %v2631_v3, %v6371_v61  ;;  %v2793_v59 = vsel %vm2792_vm11, %v2791_v30, 0  ;;  %v2681_v57 = vshrl.u32 %v2680_v43, 23  ;;  %4386 = vsinq.f32 %v2245_v10 }
 0x3b5   :  { %vm2263_vm2 = vcmp.lt.s32.totalorder %v6061_v55, 0  ;;  %v2633_v9 = vadd.s32 %v2632_v25, %v2628_v41  ;;  %v2795_v15 = vand.u32 31, %v2793_v59  ;;  %v6409_v60 = vadd.s32 3, %v2246_v47 }
 0x3b6   :  { %4388 = vcosq.f32 %v6399_v24  ;;  %v6412_v63 = vadd.s32 3, %v2454_v58  ;;  %v2789_v11 = vor.u32 8388608, %v2788_v22  ;;  %v2345_v28 = vxor.u32 2147483648, %v2344_v33 }
 0x3b7   :  { %7800 = vst [vmem:[#allocation14_spill] sm:$0xff] %v6409_v60  ;;  %v2634_v44 = vadd.s32 536870912, %v2633_v9  ;;  %v2796_v35 = vsub.s32 32, %v2795_v15  ;;  %v6416_v17 = vand.u32 8388607, %v7615_v20  ;;  %v2541_v23 = vsub.s32 32, %v6393_v37 }
 0x3b8   :  { %7801 = vst [vmem:[#allocation26_spill] sm:$0xff] %v6412_v63  ;;  %v2546_v26 = vadd.s32 127, %v2545_v0  ;;  %v2798_v61 = vshll.u32 %v7699_v54, %v2795_v15  ;;  %v4101_v7 = vadd.s32 4294967169, %v2681_v57  ;;  %v2801_v10 = vshll.u32 %v7695_v2, %v2795_v15 }
 0x3b9   :  { %v6420_v6 = vshrl.u32 %v2634_v44, 30  ;;  %v2799_v34 = vshrl.u32 %v7695_v2, %v2796_v35  ;;  %v2802_v47 = vshrl.u32 %v7696_v42, %v2796_v35  ;;  %v2804_v4 = vshll.u32 %v7696_v42, %v2795_v15 }
 0x3ba   :  { %v2805_v32 = vshrl.u32 %v7697_v8, %v2796_v35  ;;  %v2807_v13 = vshll.u32 %v7697_v8, %v2795_v15  ;;  %v2808_v30 = vshrl.u32 %v7684_v27, %v2796_v35  ;;  %v2525_v43 = vadd.s32 %v6283_v1, %v6291_v36 }
 0x3bb   :  { %v2636_v58 = vshll.u32 %v6420_v6, 30  ;;  %v2794_v62 = vshrl.u32 %v2793_v59, 5  ;;  %v2800_v3 = vor.u32 %v2799_v34, %v2798_v61  ;;  %v6432_v22 = vpop.eup %4384  ;;  %v2803_v41 = vor.u32 %v2802_v47, %v2801_v10 }
 0x3bc   :  { %7802 = vst [vmem:[#allocation31_spill] sm:$0xff] %v6432_v22  ;;  %v2806_v0 = vor.u32 %v2805_v32, %v2804_v4  ;;  %v2809_v25 = vor.u32 %v2808_v30, %v2807_v13  ;;  %v2811_v57 = vshrl.u32 %v7685_v52, %v2796_v35  ;;  %v2346_v44 = vsel %vm2263_vm2, %v2345_v28, %v2344_v33 }
 0x3bd   :  { %v6437_v20 = vsub.s32 %v2633_v9, %v2636_v58  ;;  %v2810_v53 = vshll.u32 %v7684_v27, %v2795_v15  ;;  %v6440_v40 = vshll.u32 %v2789_v11, 8  ;;  %v7803_v1 = vand.u32 2147483647, %v6061_v55 }
 0x3be   :  { %v2543_v59 = vshrl.u32 %v2525_v43, %v2541_v23  ;;  %v2547_v61 = vshll.u32 %v2546_v26, 23  ;;  %v2685_v34 = vor.u32 8388608, %v6416_v17  ;;  %v2687_v10 = vadd.s32 1, %v4101_v7  ;;  %v6449_v47 = vpop.eup %4386 }
 0x3bf   :  { %vm6444_vm0 = vcmp.le.f32.partialorder %v7803_v1, 0.7853982  ;;  %7806 = vst [vmem:[#allocation5_spill] sm:$0xff] %v6449_v47  ;;  %v2639_v33 = vsub.s32 0, %v6437_v20  ;;  %v2812_v9 = vor.u32 %v2811_v57, %v2810_v53  ;;  %vm2813_vm3 = vcmp.lt.s32.totalorder %v2794_v62, 1 }
 0x3c0   :  { %vm2816_vm9 = vcmp.lt.s32.totalorder %v2794_v62, 4  ;;  %v6452_v15 = vpop.eup %4388  ;;  %vm2815_vm6 = vcmp.lt.s32.totalorder %v2794_v62, 3  ;;  %v2821_v28 = vsel %vm2813_vm3, %v2800_v3, %v2803_v41  ;;  %v2797_v17 = vshrl.u32 %v7699_v54, %v2796_v35 }
 0x3c1   :  { %7807 = vst [vmem:[#allocation10_spill] sm:$0xff] %v6452_v15  ;;  %v2818_v11 = vsel %vm2816_vm9, %v2806_v0, 2102212464  ;;  %v2822_v23 = vsel %vm2816_vm9, %v2809_v25, 920167782  ;;  %v4098_v26 = vmin.u32 %v2639_v33, %v6437_v20  ;;  %vm2814_vm1 = vcmp.lt.s32.totalorder %v2794_v62, 2 }
 0x3c2   :  { %v2823_v7 = vsel %vm2815_vm6, %v2806_v0, %v2822_v23  ;;  %v2542_v53 = vshll.u32 %v6357_v51, %v6393_v37  ;;  %v2548_v4 = vor.u32 4788187, %v2547_v61  ;;  %v2825_v13 = vsel %vm2813_vm3, %v2803_v41, %v2806_v0  ;;  %v6473_v51 = vpop.f32.mrb[14].mxu1 }
 0x3c3   :  { %v2824_v32 = vsel %vm2814_vm1, %v2821_v28, %v2823_v7  ;;  %v2641_v30 = vclz %v4098_v26  ;;  %v2817_v43 = vsel %vm2813_vm3, %v2797_v17, %v2800_v3  ;;  %v2819_v58 = vsel %vm2815_vm6, %v2803_v41, %v2818_v11 }
 0x3c4   :  { %v2826_v57 = vsel %vm2816_vm9, %v2812_v9, 1326507024  ;;  %v6469_v1 = vmul.u32.u64.low %v6440_v40, %v2824_v32  ;;  %v6470_v33 = vmul.u32.u64.high %v6440_v40, %v2824_v32, %v6469_v1  ;;  %vm2688_vm12 = vcmp.gt.s32.totalorder %v2687_v10, 0 }
 0x3c5   :  { %v2827_v35 = vsel %vm2815_vm6, %v2809_v25, %v2826_v57  ;;  %v2544_v37 = vor.u32 %v2543_v59, %v2542_v53  ;;  %v4099_v61 = vadd.s32 4294967294, %v2641_v30  ;;  %v2689_v28 = vsel %vm2688_vm12, %v2687_v10, 0 }
 0x3c6   :  { %v2828_v0 = vsel %vm2814_vm1, %v2825_v13, %v2827_v35  ;;  %4390 = vsinq.f32 %v6399_v24  ;;  %v2691_v25 = vand.u32 31, %v2689_v28  ;;  %v6484_v9 = vsel %vm6444_vm0, %v6061_v55, %v2346_v44  ;;  %v6492_v24 = vpop.permute.xlu0 %1958 }
 0x3c7   :  { %v6478_v3 = vmul.u32.u64.low %v6440_v40, %v2828_v0  ;;  %v6479_v41 = vmul.u32.u64.high %v6440_v40, %v2828_v0, %v6478_v3  ;;  %vm2575_vm8 = vcmp.lt.s32.totalorder %v6247_v50, 0  ;;  %vm4100_vm13 = vcmp.lt.s32.totalorder %v4099_v61, 0 }
 0x3c8   :  { %v2820_v59 = vsel %vm2814_vm1, %v2817_v43, %v2819_v58  ;;  %v6490_v10 = vadd.f32 %v6084_v12, %v6241_v5  ;;  %v2549_v11 = vand.u32 2147483647, %v2548_v4  ;;  %v6494_v23 = vsel %vm4100_vm13, 0, %v4099_v61 }
 0x3c9   :  { %v2839_v26 = vadd.s32 1, %v6470_v33  ;;  %v2692_v17 = vsub.s32 32, %v2691_v25  ;;  %v2551_v7 = vcvt.s32.f32 %v2544_v37  ;;  %v2629_v44 = vadd.s32 %v6370_v21, %v6375_v14 }
 0x3ca   :  { %v6499_v53 = vshll.u32 %v2685_v34, 8  ;;  %v6503_v62 = vadd.f32 %v6105_v38, %v6492_v24  ;;  %v2659_v12 = vsub.s32 4, %v6420_v6  ;;  %v2836_v5 = vmul.u32 %v6440_v40, %v2820_v59 }
 0x3cb   :  { %vm2838_vm5 = vc.u32 %v6479_v41, %v6469_v1  ;;  %v2695_v4 = vshrl.u32 %v7695_v2, %v2692_v17  ;;  %v2649_v32 = vsub.s32 4294967266, %v6494_v23  ;;  %v2694_v21 = vshll.u32 %v7699_v54, %v2691_v25 }
 0x3cc   :  { %7808 = vst [vmem:[#allocation12_spill] sm:$0xff] %v6503_v62  ;;  %v2840_v13 = vsel %vm2838_vm5, %v2839_v26, %v6470_v33  ;;  %v2698_v14 = vshrl.u32 %v7696_v42, %v2692_v17  ;;  %v2552_v34 = vmul.f32 %v2551_v7, %v2549_v11  ;;  %v2697_v30 = vshll.u32 %v7695_v2, %v2691_v25 }
 0x3cd   :  { %v2841_v38 = vadd.s32 %v2840_v13, %v2836_v5  ;;  %v2701_v43 = vshrl.u32 %v7697_v8, %v2692_v17  ;;  %v2690_v40 = vshrl.u32 %v2689_v28, 5  ;;  %v2696_v58 = vor.u32 %v2695_v4, %v2694_v21 }
 0x3ce   :  { %v2700_v57 = vshll.u32 %v7696_v42, %v2691_v25  ;;  %v2699_v61 = vor.u32 %v2698_v14, %v2697_v30  ;;  %v2703_v33 = vshll.u32 %v7697_v8, %v2691_v25  ;;  %v2704_v0 = vshrl.u32 %v7684_v27, %v2692_v17 }
 0x3cf   :  { %v2842_v37 = vadd.s32 536870912, %v2841_v38  ;;  %v2650_v3 = vadd.s32 127, %v2649_v32  ;;  %v2706_v11 = vshll.u32 %v7684_v27, %v2691_v25  ;;  %v2707_v26 = vshrl.u32 %v7685_v52, %v2692_v17 }
 0x3d0   :  { %v2702_v59 = vor.u32 %v2701_v43, %v2700_v57  ;;  %v6522_v7 = vpop.eup %4390  ;;  %v2553_v28 = vxor.u32 2147483648, %v2552_v34  ;;  %v6527_v5 = vsel %vm2575_vm8, %v2659_v12, %v6420_v6  ;;  %v2705_v13 = vor.u32 %v2704_v0, %v2703_v33 }
 0x3d1   :  { %7809 = vst [vmem:[#allocation11_spill] sm:$0xff] %v6522_v7  ;;  %v6529_v4 = vshrl.u32 %v2842_v37, 30  ;;  %vm7656_vm14 = vcmp.lt.s32.totalorder %v6121_v16, 0  ;;  %v7810_v32 = vand.u32 2147483647, %v6247_v50  ;;  %v2645_v25 = vsub.s32 32, %v6494_v23 }
 0x3d2   :  { %v2708_v14 = vor.u32 %v2707_v26, %v2706_v11  ;;  %vm2709_vm10 = vcmp.lt.s32.totalorder %v2690_v40, 1  ;;  %v2888_v30 = vand.u32 2139095040, %v6490_v10  ;;  %v2693_v12 = vshrl.u32 %v7699_v54, %v2692_v17 }
 0x3d3   :  { %vm6534_vm4 = vcmp.le.f32.partialorder %v7810_v32, 0.7853982  ;;  %v2844_v6 = vshll.u32 %v6529_v4, 30  ;;  %vm2712_vm15 = vcmp.lt.s32.totalorder %v2690_v40, 4  ;;  %v2717_v43 = vsel %vm2709_vm10, %v2696_v58, %v2699_v61 }
 0x3d4   :  { %v2651_v57 = vshll.u32 %v2650_v3, 23  ;;  %vm2711_vm11 = vcmp.lt.s32.totalorder %v2690_v40, 3  ;;  %v2714_v37 = vsel %vm2712_vm15, %v2702_v59, 2102212464  ;;  %v2718_v33 = vsel %vm2712_vm15, %v2705_v13, 920167782 }
 0x3d5   :  { %v6543_v0 = vsub.s32 %v2841_v38, %v2844_v6  ;;  %vm2710_vm3 = vcmp.lt.s32.totalorder %v2690_v40, 2  ;;  %v2719_v32 = vsel %vm2711_vm11, %v2702_v59, %v2718_v33  ;;  %v2721_v11 = vsel %vm2709_vm10, %v2699_v61, %v2702_v59 }
 0x3d6   :  { %v7813_v26 = vand.u32 2147483647, %v6121_v16  ;;  %v7814_v35 = vmov 0  ;;  %v2646_v17 = vshll.u32 %v6437_v20, %v6494_v23  ;;  %v2647_v31 = vshrl.u32 %v2629_v44, %v2645_v25 }
 0x3d7   :  { %v2720_v3 = vsel %vm2710_vm3, %v2717_v43, %v2719_v32  ;;  %v2722_v15 = vsel %vm2712_vm15, %v2708_v14, 1326507024  ;;  %v2847_v38 = vsub.s32 0, %v6543_v0  ;;  %v2713_v6 = vsel %vm2709_vm10, %v2693_v12, %v2696_v58  ;;  %v6577_v12 = vpop.f32.mrb[15].mxu0 }
 0x3d8   :  { %vm6548_vm9 = vcmp.le.f32.partialorder %v7813_v26, 0.7853982  ;;  %v2715_v33 = vsel %vm2711_vm11, %v2699_v61, %v2714_v37  ;;  %v2723_v7 = vsel %vm2711_vm11, %v2705_v13, %v2722_v15  ;;  %v2652_v59 = vor.u32 4788187, %v2651_v57 }
 0x3d9   :  { %v7815_v35 = vsel %vm6548_vm9, 4294967295, %v7814_v35  ;;  %v2724_v63 = vsel %vm2710_vm3, %v2721_v11, %v2723_v7  ;;  %v6559_v26 = vmul.u32.u64.low %v6499_v53, %v2720_v3  ;;  %v6560_v48 = vmul.u32.u64.high %v6499_v53, %v2720_v3, %v6559_v26 }
 0x3da   :  { %7816 = vst [vmem:[#allocation18_spill] sm:$0xff] %v7815_v35  ;;  %4392 = vcosq.f32 %v6484_v9  ;;  %v4106_v20 = vmin.u32 %v2847_v38, %v6543_v0  ;;  %v6566_v23 = vmul.u32.u64.low %v6499_v53, %v2724_v63  ;;  %v6567_v44 = vmul.u32.u64.high %v6499_v53, %v2724_v63, %v6566_v23 }
 0x3db   :  { %4394 = vsinq.f32 %v6484_v9  ;;  %v2648_v58 = vor.u32 %v2647_v31, %v2646_v17  ;;  %v2716_v15 = vsel %vm2710_vm3, %v2713_v6, %v2715_v33  ;;  %v2889_v61 = vshrl.u32 %v2888_v30, 23 }
 0x3dc   :  { %v2554_v7 = vsel %vm7656_vm14, %v2553_v28, %v2552_v34  ;;  %v2662_v13 = vsel %vm6534_vm4, 0, %v6527_v5  ;;  %v2849_v25 = vclz %v4106_v20  ;;  %v2992_v14 = vand.u32 2139095040, %v6503_v62 }
 0x3dd   :  { %v2653_v63 = vand.u32 2147483647, %v2652_v59  ;;  %v2735_v43 = vadd.s32 1, %v6560_v48  ;;  %v4109_v9 = vadd.s32 4294967169, %v2889_v61  ;;  %v7817_v31 = vand.u32 2147483647, %v6490_v10 }
 0x3de   :  { %v4107_v30 = vadd.s32 4294967294, %v2849_v25  ;;  %v2732_v57 = vmul.u32 %v6499_v53, %v2716_v15  ;;  %vm2734_vm6 = vc.u32 %v6567_v44, %v6559_v26  ;;  %v7622_v34 = vand.u32 2147483647, %v6503_v62 }
 0x3df   :  { %v2892_v40 = vand.u32 8388607, %v7817_v31  ;;  %v2655_v28 = vcvt.s32.f32 %v2648_v58  ;;  %v2736_v5 = vsel %vm2734_vm6, %v2735_v43, %v6560_v48  ;;  %v2895_v37 = vadd.s32 1, %v4109_v9 }
 0x3e0   :  { %v2993_v32 = vshrl.u32 %v2992_v14, 23  ;;  %v6590_v11 = vsel %vm6548_vm9, %v6121_v16, %v2554_v7  ;;  %v2837_v17 = vadd.s32 %v6469_v1, %v6479_v41  ;;  %vm4108_vm1 = vcmp.lt.s32.totalorder %v4107_v30, 0 }
 0x3e1   :  { %v2737_v53 = vadd.s32 %v2736_v5, %v2732_v57  ;;  %v6594_v3 = vmul.f32 %v2655_v28, %v2653_v63  ;;  %v2852_v38 = vsel %vm4108_vm1, 0, %v4107_v30  ;;  %v2893_v6 = vor.u32 8388608, %v2892_v40 }
 0x3e2   :  { %vm2896_vm12 = vcmp.gt.s32.totalorder %v2895_v37, 0  ;;  %v2853_v33 = vsub.s32 32, %v2852_v38  ;;  %v2857_v59 = vsub.s32 4294967266, %v2852_v38  ;;  %v6598_v20 = vand.u32 8388607, %v7622_v34 }
 0x3e3   :  { %v2738_v48 = vadd.s32 536870912, %v2737_v53  ;;  %v6600_v23 = vadd.s32 3, %v2662_v13  ;;  %v2897_v58 = vsel %vm2896_vm12, %v2895_v37, 0  ;;  %v4113_v15 = vadd.s32 4294967169, %v2993_v32 }
 0x3e4   :  { %v6604_v1 = vadd.f32 %v6147_v29, %v6492_v24  ;;  %v6606_v41 = vpop.eup %4392  ;;  %4396 = vcosq.f32 %v6590_v11  ;;  %v2855_v61 = vshrl.u32 %v2837_v17, %v2853_v33  ;;  %v2858_v7 = vadd.s32 127, %v2857_v59 }
 0x3e5   :  { %7818 = vst [vmem:[#allocation8_spill] sm:$0xff] %v6600_v23  ;;  %v6609_v25 = vshrl.u32 %v2738_v48, 30  ;;  %v6611_v14 = vpop.eup %4394  ;;  %v2854_v13 = vshll.u32 %v6543_v0, %v2852_v38  ;;  %v2867_v43 = vsub.s32 4, %v6529_v4  ;;  %v2899_v9 = vand.u32 31, %v2897_v58 }
 0x3e6   :  { %7819 = vst [vmem:[#allocation25_spill] sm:$0xff] %v6604_v1  ;;  %v2859_v31 = vshll.u32 %v2858_v7, 23  ;;  %v6617_v40 = vshll.u32 %v2893_v6, 8  ;;  %v2898_v28 = vshrl.u32 %v2897_v58, 5  ;;  %v2999_v37 = vadd.s32 1, %v4113_v15 }
 0x3e7   :  { %v2740_v29 = vshll.u32 %v6609_v25, 30  ;;  %v2856_v57 = vor.u32 %v2855_v61, %v2854_v13  ;;  %v2900_v5 = vsub.s32 32, %v2899_v9  ;;  %v2902_v33 = vshll.u32 %v7699_v54, %v2899_v9 }
 0x3e8   :  { %v2860_v32 = vor.u32 4788187, %v2859_v31  ;;  %v2905_v0 = vshll.u32 %v7695_v2, %v2899_v9  ;;  %v2908_v6 = vshll.u32 %v7696_v42, %v2899_v9  ;;  %vm2783_vm13 = vcmp.lt.s32.totalorder %v6308_v19, 0 }
 0x3e9   :  { %v6620_v17 = vsub.s32 %v2737_v53, %v2740_v29  ;;  %v2903_v38 = vshrl.u32 %v7695_v2, %v2900_v5  ;;  %v2906_v59 = vshrl.u32 %v7696_v42, %v2900_v5  ;;  %v2909_v48 = vshrl.u32 %v7697_v8, %v2900_v5 }
 0x3ea   :  { %v2911_v15 = vshll.u32 %v7697_v8, %v2899_v9  ;;  %v2912_v53 = vshrl.u32 %v7684_v27, %v2900_v5  ;;  %v2914_v61 = vshll.u32 %v7684_v27, %v2899_v9  ;;  %v2915_v29 = vshrl.u32 %v7685_v52, %v2900_v5 }
 0x3eb   :  { %v2743_v58 = vsub.s32 0, %v6620_v17  ;;  %v2904_v7 = vor.u32 %v2903_v38, %v2902_v33  ;;  %v2907_v13 = vor.u32 %v2906_v59, %v2905_v0  ;;  %v2910_v31 = vor.u32 %v2909_v48, %v2908_v6 }
 0x3ec   :  { %v2861_v34 = vand.u32 2147483647, %v2860_v32  ;;  %v2913_v63 = vor.u32 %v2912_v53, %v2911_v15  ;;  %vm3000_vm5 = vcmp.gt.s32.totalorder %v2999_v37, 0  ;;  %v2863_v23 = vcvt.s32.f32 %v2856_v57 }
 0x3ed   :  { %v4102_v30 = vmin.u32 %v2743_v58, %v6620_v17  ;;  %v2916_v22 = vor.u32 %v2915_v29, %v2914_v61  ;;  %vm2917_vm10 = vcmp.lt.s32.totalorder %v2898_v28, 1  ;;  %vm2920_vm15 = vcmp.lt.s32.totalorder %v2898_v28, 4 }
 0x3ee   :  { %v6635_v47 = vpop.eup %4396  ;;  %v2901_v35 = vshrl.u32 %v7699_v54, %v2900_v5  ;;  %vm2919_vm11 = vcmp.lt.s32.totalorder %v2898_v28, 3  ;;  %v2922_v9 = vsel %vm2920_vm15, %v2910_v31, 2102212464  ;;  %v2925_v33 = vsel %vm2917_vm10, %v2904_v7, %v2907_v13  ;;  %v6644_v5 = vpop.f32.mrb[15].mxu1 }
 0x3ef   :  { %7820 = vst [vmem:[#allocation24_spill] sm:$0xff] %v6635_v47  ;;  %v2745_v60 = vclz %v4102_v30  ;;  %v2926_v0 = vsel %vm2920_vm15, %v2913_v63, 920167782  ;;  %v2929_v32 = vsel %vm2917_vm10, %v2907_v13, %v2910_v31  ;;  %v2930_v38 = vsel %vm2920_vm15, %v2916_v22, 1326507024 }
 0x3f0   :  { %v6640_v59 = vmul.f32 %v2863_v23, %v2861_v34  ;;  %v2927_v57 = vsel %vm2919_vm11, %v2910_v31, %v2926_v0  ;;  %v3200_v48 = vand.u32 2139095040, %v6604_v1  ;;  %vm2918_vm3 = vcmp.lt.s32.totalorder %v2898_v28, 2 }
 0x3f1   :  { %v4103_v6 = vadd.s32 4294967294, %v2745_v60  ;;  %v2921_v58 = vsel %vm2917_vm10, %v2901_v35, %v2904_v7  ;;  %v2923_v30 = vsel %vm2919_vm11, %v2907_v13, %v2922_v9  ;;  %v2931_v15 = vsel %vm2919_vm11, %v2913_v63, %v2930_v38 }
 0x3f2   :  { %v2928_v53 = vsel %vm2918_vm3, %v2925_v33, %v2927_v57  ;;  %v2932_v61 = vsel %vm2918_vm3, %v2929_v32, %v2931_v15  ;;  %v3001_v29 = vsel %vm3000_vm5, %v2999_v37, 0  ;;  %v6650_v22 = vsel %vm2783_vm13, %v2867_v43, %v6529_v4 }
 0x3f3   :  { %vm4104_vm6 = vcmp.lt.s32.totalorder %v4103_v6, 0  ;;  %v6653_v34 = vmul.u32.u64.low %v6617_v40, %v2932_v61  ;;  %v6654_v23 = vmul.u32.u64.high %v6617_v40, %v2932_v61, %v6653_v34  ;;  %v7821_v35 = vxor.u32 2147483648, %v6594_v3 }
 0x3f4   :  { %v2748_v60 = vsel %vm4104_vm6, 0, %v4103_v6  ;;  %v2924_v7 = vsel %vm2918_vm3, %v2921_v58, %v2923_v30  ;;  %v3201_v37 = vshrl.u32 %v3200_v48, 23  ;;  %v2733_v13 = vadd.s32 %v6559_v26, %v6567_v44 }
 0x3f5   :  { %v6661_v63 = vsel %vm2575_vm8, %v7821_v35, %v6594_v3  ;;  %v2753_v28 = vsub.s32 4294967266, %v2748_v60  ;;  %v6666_v4 = vmul.u32.u64.low %v6617_v40, %v2928_v53  ;;  %v6667_v43 = vmul.u32.u64.high %v6617_v40, %v2928_v53, %v6666_v4 }
 0x3f6   :  { %v3003_v31 = vand.u32 31, %v3001_v29  ;;  %v7822_v0 = vor.u32 8388608, %v6598_v20  ;;  %v2749_v38 = vsub.s32 32, %v2748_v60  ;;  %v2750_v6 = vshll.u32 %v6620_v17, %v2748_v60 }
 0x3f7   :  { %v2754_v33 = vadd.s32 127, %v2753_v28  ;;  %v2940_v26 = vmul.u32 %v6617_v40, %v2924_v7  ;;  %vm2942_vm8 = vc.u32 %v6654_v23, %v6666_v4  ;;  %v3002_v57 = vshrl.u32 %v3001_v29, 5 }
 0x3f8   :  { %v6673_v32 = vshll.u32 %v7822_v0, 8  ;;  %v3004_v44 = vsub.s32 32, %v3003_v31  ;;  %v3006_v48 = vshll.u32 %v7699_v54, %v3003_v31  ;;  %v4121_v58 = vadd.s32 4294967169, %v3201_v37 }
 0x3f9   :  { %v2943_v30 = vadd.s32 1, %v6667_v43  ;;  %v3009_v15 = vshll.u32 %v7695_v2, %v3003_v31  ;;  %v2755_v61 = vshll.u32 %v2754_v33, 23  ;;  %v3012_v17 = vshll.u32 %v7696_v42, %v3003_v31 }
 0x3fa   :  { %v3007_v20 = vshrl.u32 %v7695_v2, %v3004_v44  ;;  %v3010_v53 = vshrl.u32 %v7696_v42, %v3004_v44  ;;  %v3013_v40 = vshrl.u32 %v7697_v8, %v3004_v44  ;;  %v3015_v60 = vshll.u32 %v7697_v8, %v3003_v31 }
 0x3fb   :  { %v2944_v29 = vsel %vm2942_vm8, %v2943_v30, %v6667_v43  ;;  %v3016_v28 = vshrl.u32 %v7684_v27, %v3004_v44  ;;  %v2751_v7 = vshrl.u32 %v2733_v13, %v2749_v38  ;;  %vm3021_vm1 = vcmp.lt.s32.totalorder %v3002_v57, 1 }
 0x3fc   :  { %v3008_v34 = vor.u32 %v3007_v20, %v3006_v48  ;;  %v3011_v35 = vor.u32 %v3010_v53, %v3009_v15  ;;  %v2945_v37 = vadd.s32 %v2944_v29, %v2940_v26  ;;  %v3014_v0 = vor.u32 %v3013_v40, %v3012_v17 }
 0x3fd   :  { %v7823_v9 = vand.u32 2147483647, %v6308_v19  ;;  %v3005_v3 = vshrl.u32 %v7699_v54, %v3004_v44  ;;  %v3017_v47 = vor.u32 %v3016_v28, %v3015_v60  ;;  %v3018_v16 = vshll.u32 %v7684_v27, %v3003_v31 }
 0x3fe   :  { %v3019_v43 = vshrl.u32 %v7685_v52, %v3004_v44  ;;  %v2756_v48 = vor.u32 4788187, %v2755_v61  ;;  %v2946_v30 = vadd.s32 536870912, %v2945_v37  ;;  %vm3023_vm5 = vcmp.lt.s32.totalorder %v3002_v57, 3 }
 0x3ff   :  { %vm6692_vm12 = vcmp.le.f32.partialorder %v7823_v9, 0.7853982  ;;  %vm3024_vm10 = vcmp.lt.s32.totalorder %v3002_v57, 4  ;;  %v3029_v26 = vsel %vm3021_vm1, %v3008_v34, %v3011_v35  ;;  %v2752_v9 = vor.u32 %v2751_v7, %v2750_v6 }
 0x400   :  { %v3020_v13 = vor.u32 %v3019_v43, %v3018_v16  ;;  %v3026_v38 = vsel %vm3024_vm10, %v3014_v0, 2102212464  ;;  %v3030_v20 = vsel %vm3024_vm10, %v3017_v47, 920167782  ;;  %v6700_v15 = vshrl.u32 %v2946_v30, 30 }
 0x401   :  { %vm3022_vm15 = vcmp.lt.s32.totalorder %v3002_v57, 2  ;;  %v3031_v53 = vsel %vm3023_vm5, %v3014_v0, %v3030_v20  ;;  %v3025_v17 = vsel %vm3021_vm1, %v3005_v3, %v3008_v34  ;;  %v3033_v44 = vsel %vm3021_vm1, %v3011_v35, %v3014_v0 }
 0x402   :  { %7826 = vst [vmem:[#allocation17_spill] sm:$0xff] %v6700_v15  ;;  %v3032_v31 = vsel %vm3022_vm15, %v3029_v26, %v3031_v53  ;;  %v3034_v61 = vsel %vm3024_vm10, %v3020_v13, 1326507024  ;;  %v2948_v40 = vshll.u32 %v6700_v15, 30  ;;  %v3027_v16 = vsel %vm3023_vm5, %v3011_v35, %v3026_v38 }
 0x403   :  { %v3035_v60 = vsel %vm3023_vm5, %v3017_v47, %v3034_v61  ;;  %v3207_v29 = vadd.s32 1, %v4121_v58  ;;  %v2757_v6 = vand.u32 2147483647, %v2756_v48  ;;  %4398 = vsinq.f32 %v6590_v11 }
 0x404   :  { %v3036_v28 = vsel %vm3022_vm15, %v3033_v44, %v3035_v60  ;;  %v6711_v7 = vmul.u32.u64.low %v6673_v32, %v3032_v31  ;;  %v6712_v43 = vmul.u32.u64.high %v6673_v32, %v3032_v31, %v6711_v7  ;;  %v6716_v3 = vsub.s32 %v2945_v37, %v2948_v40 }
 0x405   :  { %v6719_v34 = vmul.u32.u64.low %v6673_v32, %v3036_v28  ;;  %v6720_v0 = vmul.u32.u64.high %v6673_v32, %v3036_v28, %v6719_v34  ;;  %v2661_v47 = vsel %vm6534_vm4, %v6247_v50, %v6661_v63  ;;  %v2759_v58 = vcvt.s32.f32 %v2752_v9 }
 0x406   :  { %v3028_v35 = vsel %vm3022_vm15, %v3025_v17, %v3027_v16  ;;  %vm3208_vm11 = vcmp.gt.s32.totalorder %v3207_v29, 0  ;;  %v2870_v48 = vsel %vm6692_vm12, 0, %v6650_v22  ;;  %v2951_v11 = vsub.s32 0, %v6716_v3 }
 0x407   :  { %v7827_v37 = vand.u32 2147483647, %v6604_v1  ;;  %v3209_v13 = vsel %vm3208_vm11, %v3207_v29, 0  ;;  %v7828_v38 = vxor.u32 2147483648, %v6640_v59  ;;  %v2760_v63 = vmul.f32 %v2759_v58, %v2757_v6 }
 0x408   :  { %v3047_v57 = vadd.s32 1, %v6712_v43  ;;  %v3211_v26 = vand.u32 31, %v3209_v13  ;;  %4400 = vcosq.f32 %v2661_v47  ;;  %vm2679_vm4 = vcmp.lt.s32.totalorder %v6316_v46, 0 }
 0x409   :  { %v3204_v30 = vand.u32 8388607, %v7827_v37  ;;  %v2866_v21 = vsel %vm2783_vm13, %v7828_v38, %v6640_v59  ;;  %v4110_v22 = vmin.u32 %v2951_v11, %v6716_v3  ;;  %v3044_v20 = vmul.u32 %v6673_v32, %v3028_v35 }
 0x40a   :  { %vm3046_vm3 = vc.u32 %v6720_v0, %v6711_v7  ;;  %4402 = vsinq.f32 %v2661_v47  ;;  %v6744_v9 = vadd.s32 3, %v2870_v48  ;;  %v3212_v59 = vsub.s32 32, %v3211_v26 }
 0x40b   :  { %v3048_v53 = vsel %vm3046_vm3, %v3047_v57, %v6712_v43  ;;  %v6750_v17 = vsel %vm6692_vm12, %v6308_v19, %v2866_v21  ;;  %v2953_v31 = vclz %v4110_v22  ;;  %v3205_v61 = vor.u32 8388608, %v3204_v30 }
 0x40c   :  { %7829 = vst [vmem:[#allocation15_spill] sm:$0xff] %v6744_v9  ;;  %v3049_v44 = vadd.s32 %v3048_v53, %v3044_v20  ;;  %v2761_v40 = vxor.u32 2147483648, %v2760_v63  ;;  %v6752_v16 = vshrl.u32 %v3209_v13, 5  ;;  %v3215_v32 = vshrl.u32 %v7695_v2, %v3212_v59 }
 0x40d   :  { %v3218_v60 = vshrl.u32 %v7696_v42, %v3212_v59  ;;  %v4111_v29 = vadd.s32 4294967294, %v2953_v31  ;;  %v3221_v28 = vshrl.u32 %v7697_v8, %v3212_v59  ;;  %v3224_v43 = vshrl.u32 %v7684_v27, %v3212_v59  ;;  %v6762_v35 = vpop.eup %4398 }
 0x40e   :  { %v3050_v6 = vadd.s32 536870912, %v3049_v44  ;;  %v3214_v33 = vshll.u32 %v7699_v54, %v3211_v26  ;;  %v3217_v34 = vshll.u32 %v7695_v2, %v3211_v26  ;;  %v3223_v47 = vshll.u32 %v7697_v8, %v3211_v26  ;;  %7830 = vst [vmem:[#allocation13_spill] sm:$0xff] %v6762_v35 }
 0x40f   :  { %v3227_v58 = vshrl.u32 %v7685_v52, %v3212_v59  ;;  %vm4112_vm13 = vcmp.lt.s32.totalorder %v4111_v29, 0  ;;  %v3220_v11 = vshll.u32 %v7696_v42, %v3211_v26  ;;  %v3226_v37 = vshll.u32 %v7684_v27, %v3211_v26 }
 0x410   :  { %v6764_v48 = vshrl.u32 %v3050_v6, 30  ;;  %v2956_v30 = vsel %vm4112_vm13, 0, %v4111_v29  ;;  %v3216_v13 = vor.u32 %v3215_v32, %v3214_v33  ;;  %v3219_v38 = vor.u32 %v3218_v60, %v3217_v34 }
 0x411   :  { %v3225_v21 = vor.u32 %v3224_v43, %v3223_v47  ;;  %4404 = vcosq.f32 %v6750_v17  ;;  %v2961_v57 = vsub.s32 4294967266, %v2956_v30  ;;  %v3222_v20 = vor.u32 %v3221_v28, %v3220_v11 }
 0x412   :  { %v3052_v22 = vshll.u32 %v6764_v48, 30  ;;  %v7831_v53 = vand.u32 2147483647, %v6316_v46  ;;  %v2762_v6 = vsel %vm2679_vm4, %v2761_v40, %v2760_v63  ;;  %v2941_v26 = vadd.s32 %v6666_v4, %v6654_v23  ;;  %v6782_v29 = vpop.eup %4400 }
 0x413   :  { %v3228_v32 = vor.u32 %v3227_v58, %v3226_v37  ;;  %v6780_v60 = vshll.u32 %v3205_v61, 8  ;;  %7834 = vst [vmem:[#allocation27_spill] sm:$0xff] %v6782_v29  ;;  %v2962_v43 = vadd.s32 127, %v2961_v57  ;;  %vm3229_vm8 = vcmp.lt.s32.totalorder %v6752_v16, 1 }
 0x414   :  { %vm6772_vm6 = vcmp.le.f32.partialorder %v7831_v53, 0.7853982  ;;  %v6784_v33 = vsub.s32 %v3049_v44, %v3052_v22  ;;  %vm3232_vm1 = vcmp.lt.s32.totalorder %v6752_v16, 4  ;;  %v6788_v28 = vpop.eup %4402  ;;  %v2957_v34 = vsub.s32 32, %v2956_v30 }
 0x415   :  { %7835 = vst [vmem:[#allocation30_spill] sm:$0xff] %v6788_v28  ;;  %v3237_v63 = vsel %vm3229_vm8, %v3216_v13, %v3219_v38  ;;  %v3238_v40 = vsel %vm3232_vm1, %v3225_v21, 920167782  ;;  %v6794_v23 = vadd.f32 %v6235_v45, %v6492_v24  ;;  %vm3230_vm12 = vcmp.lt.s32.totalorder %v6752_v16, 2  ;;  %v7889_v28 = vld [vmem:[#allocation31_spill] sm:$0xff] }
 0x416   :  { %v3055_v4 = vsub.s32 0, %v6784_v33  ;;  %vm3231_vm5 = vcmp.lt.s32.totalorder %v6752_v16, 3  ;;  %v3234_v44 = vsel %vm3232_vm1, %v3222_v20, 2102212464  ;;  %v2963_v61 = vshll.u32 %v2962_v43, 23 }
 0x417   :  { %v3239_v47 = vsel %vm3231_vm5, %v3222_v20, %v3238_v40  ;;  %v3241_v58 = vsel %vm3229_vm8, %v3219_v38, %v3222_v20  ;;  %v3242_v11 = vsel %vm3232_vm1, %v3228_v32, 1326507024  ;;  %v2958_v37 = vshll.u32 %v6716_v3, %v2956_v30 }
 0x418   :  { %v4114_v57 = vmin.u32 %v3055_v4, %v6784_v33  ;;  %v3213_v45 = vshrl.u32 %v7699_v54, %v3212_v59  ;;  %v3240_v22 = vsel %vm3230_vm12, %v3237_v63, %v3239_v47  ;;  %v2959_v53 = vshrl.u32 %v2941_v26, %v2957_v34 }
 0x419   :  { %v3243_v19 = vsel %vm3231_vm5, %v3225_v21, %v3242_v11  ;;  %v6807_v9 = vmul.u32.u64.low %v6780_v60, %v3240_v22  ;;  %v6808_v29 = vmul.u32.u64.high %v6780_v60, %v3240_v22, %v6807_v9  ;;  %v3235_v32 = vsel %vm3231_vm5, %v3219_v38, %v3234_v44 }
 0x41a   :  { %v3057_v43 = vclz %v4114_v57  ;;  %v3233_v20 = vsel %vm3229_vm8, %v3213_v45, %v3216_v13  ;;  %v3244_v3 = vsel %vm3230_vm12, %v3241_v58, %v3243_v19  ;;  %v2964_v30 = vor.u32 4788187, %v2963_v61 }
 0x41b   :  { %v6816_v59 = vmul.u32.u64.low %v6780_v60, %v3244_v3  ;;  %v6817_v40 = vmul.u32.u64.high %v6780_v60, %v3244_v3, %v6816_v59  ;;  %v3096_v21 = vand.u32 2139095040, %v6794_v23  ;;  %v6820_v26 = vpop.eup %4404  ;;  %4406 = vsinq.f32 %v6750_v17 }
 0x41c   :  { %7836 = vst [vmem:[#allocation6_spill] sm:$0xff] %v6820_v26  ;;  %v2765_v34 = vsel %vm6772_vm6, %v6316_v46, %v2762_v6  ;;  %vm2991_vm10 = vcmp.lt.s32.totalorder %v6503_v62, 0  ;;  %v4115_v13 = vadd.s32 4294967294, %v3057_v43  ;;  %v2960_v38 = vor.u32 %v2959_v53, %v2958_v37 }
 0x41d   :  { %v3236_v19 = vsel %vm3230_vm12, %v3233_v20, %v3235_v32  ;;  %v3255_v63 = vadd.s32 1, %v6808_v29  ;;  %v3097_v4 = vshrl.u32 %v3096_v21, 23  ;;  %v3075_v44 = vsub.s32 4, %v6764_v48 }
 0x41e   :  { %vm4116_vm15 = vcmp.lt.s32.totalorder %v4115_v13, 0  ;;  %v7632_v61 = vand.u32 2147483647, %v6794_v23  ;;  %v6834_v17 = vadd.f32 %v6301_v49, %v6492_v24  ;;  %v2965_v6 = vand.u32 2147483647, %v2964_v30 }
 0x41f   :  { %v3060_v47 = vsel %vm4116_vm15, 0, %v4115_v13  ;;  %vm3254_vm11 = vc.u32 %v6817_v40, %v6807_v9  ;;  %v4117_v58 = vadd.s32 4294967169, %v3097_v4  ;;  %4408 = vcosq.f32 %v2765_v34 }
 0x420   :  { %7837 = vst [vmem:[#allocation29_spill] sm:$0xff] %v6834_v17  ;;  %v3061_v16 = vsub.s32 32, %v3060_v47  ;;  %v3065_v11 = vsub.s32 4294967266, %v3060_v47  ;;  %v3252_v37 = vmul.u32 %v6780_v60, %v3236_v19  ;;  %v2967_v57 = vcvt.s32.f32 %v2960_v38 }
 0x421   :  { %v3045_v45 = vadd.s32 %v6711_v7, %v6720_v0  ;;  %v3256_v22 = vsel %vm3254_vm11, %v3255_v63, %v6808_v29  ;;  %v3103_v53 = vadd.s32 1, %v4117_v58  ;;  %vm7655_vm3 = vcmp.lt.s32.totalorder %v6490_v10, 0  ;;  %v6852_v0 = vpop.permute.xlu1 %1963 }
 0x422   :  { %v3066_v49 = vadd.s32 127, %v3065_v11  ;;  %v6846_v24 = vsel %vm2991_vm10, %v3075_v44, %v6764_v48  ;;  %v3257_v43 = vadd.s32 %v3256_v22, %v3252_v37  ;;  %v3100_v20 = vand.u32 8388607, %v7632_v61 }
 0x423   :  { %v2968_v60 = vmul.f32 %v2967_v57, %v2965_v6  ;;  %vm3104_vm13 = vcmp.gt.s32.totalorder %v3103_v53, 0  ;;  %v7631_v32 = vand.u32 2147483647, %v6834_v17  ;;  %v3304_v7 = vand.u32 2139095040, %v6834_v17 }
 0x424   :  { %v3063_v29 = vshrl.u32 %v3045_v45, %v3061_v16  ;;  %v3067_v3 = vshll.u32 %v3066_v49, 23  ;;  %v3258_v30 = vadd.s32 536870912, %v3257_v43  ;;  %v3105_v59 = vsel %vm3104_vm13, %v3103_v53, 0 }
 0x425   :  { %4410 = vsinq.f32 %v2765_v34  ;;  %v7838_v48 = vand.u32 2147483647, %v6503_v62  ;;  %v3107_v13 = vand.u32 31, %v3105_v59  ;;  %v6862_v38 = vadd.f32 %v6388_v56, %v6852_v0  ;;  %v6864_v19 = vpop.eup %4406 }
 0x426   :  { %7841 = vst [vmem:[#allocation32_spill] sm:$0xff] %v6864_v19  ;;  %v3062_v63 = vshll.u32 %v6784_v33, %v3060_v47  ;;  %v6870_v34 = vshrl.u32 %v3258_v30, 30  ;;  %v3101_v44 = vor.u32 8388608, %v3100_v20  ;;  %v2969_v6 = vxor.u32 2147483648, %v2968_v60 }
 0x427   :  { %vm6856_vm8 = vcmp.le.f32.partialorder %v7838_v48, 0.7853982  ;;  %v3068_v58 = vor.u32 4788187, %v3067_v3  ;;  %v3108_v16 = vsub.s32 32, %v3107_v13  ;;  %v6878_v37 = vadd.s32 %v6807_v9, %v6817_v40 }
 0x428   :  { %v6874_v11 = vand.u32 8388607, %v7631_v32  ;;  %v3064_v56 = vor.u32 %v3063_v29, %v3062_v63  ;;  %v3260_v33 = vshll.u32 %v6870_v34, 30  ;;  %v3305_v47 = vshrl.u32 %v3304_v7, 23 }
 0x429   :  { %v3110_v57 = vshll.u32 %v7699_v54, %v3107_v13  ;;  %v3111_v45 = vshrl.u32 %v7695_v2, %v3108_v16  ;;  %v3114_v22 = vshrl.u32 %v7696_v42, %v3108_v16  ;;  %v3117_v53 = vshrl.u32 %v7697_v8, %v3108_v16  ;;  %v6885_v49 = vpop.eup %4408 }
 0x42a   :  { %v6887_v20 = vsub.s32 %v3257_v43, %v3260_v33  ;;  %v3113_v29 = vshll.u32 %v7695_v2, %v3107_v13  ;;  %v3116_v9 = vshll.u32 %v7696_v42, %v3107_v13  ;;  %v3120_v40 = vshrl.u32 %v7684_v27, %v3108_v16 }
 0x42b   :  { %v2970_v7 = vsel %vm7655_vm3, %v2969_v6, %v2968_v60  ;;  %v3069_v3 = vand.u32 2147483647, %v3068_v58  ;;  %v3106_v30 = vshrl.u32 %v3105_v59, 5  ;;  %v3119_v48 = vshll.u32 %v7697_v8, %v3107_v13 }
 0x42c   :  { %v3263_v63 = vsub.s32 0, %v6887_v20  ;;  %v3112_v32 = vor.u32 %v3111_v45, %v3110_v57  ;;  %v3115_v61 = vor.u32 %v3114_v22, %v3113_v29  ;;  %v3118_v4 = vor.u32 %v3117_v53, %v3116_v9 }
 0x42d   :  { %v3121_v43 = vor.u32 %v3120_v40, %v3119_v48  ;;  %v3122_v33 = vshll.u32 %v7684_v27, %v3107_v13  ;;  %v3123_v26 = vshrl.u32 %v7685_v52, %v3108_v16  ;;  %v3141_v19 = vshll.u32 %v3101_v44, 8 }
 0x42e   :  { %v7842_v50 = vand.u32 2147483647, %v6490_v10  ;;  %v3071_v60 = vcvt.s32.f32 %v3064_v56  ;;  %v4122_v59 = vmin.u32 %v3263_v63, %v6887_v20  ;;  %v4125_v6 = vadd.s32 4294967169, %v3305_v47 }
 0x42f   :  { %v3309_v58 = vor.u32 8388608, %v6874_v11  ;;  %v6906_v57 = vpop.eup %4410  ;;  %v3109_v45 = vshrl.u32 %v7699_v54, %v3108_v16  ;;  %v3124_v13 = vor.u32 %v3123_v26, %v3122_v33  ;;  %vm3125_vm12 = vcmp.lt.s32.totalorder %v3106_v30, 1 }
 0x430   :  { %vm6900_vm1 = vcmp.le.f32.partialorder %v7842_v50, 0.7853982  ;;  %vm3128_vm5 = vcmp.lt.s32.totalorder %v3106_v30, 4  ;;  %v3072_v44 = vmul.f32 %v3071_v60, %v3069_v3  ;;  %v3265_v22 = vclz %v4122_v59 }
 0x431   :  { %v3130_v53 = vsel %vm3128_vm5, %v3118_v4, 2102212464  ;;  %v3133_v50 = vsel %vm3125_vm12, %v3112_v32, %v3115_v61  ;;  %vm3126_vm15 = vcmp.lt.s32.totalorder %v3106_v30, 2  ;;  %vm3127_vm11 = vcmp.lt.s32.totalorder %v3106_v30, 3 }
 0x432   :  { %v3134_v29 = vsel %vm3128_vm5, %v3121_v43, 920167782  ;;  %v3137_v56 = vsel %vm3125_vm12, %v3115_v61, %v3118_v4  ;;  %v4123_v9 = vadd.s32 4294967294, %v3265_v22  ;;  %v3129_v40 = vsel %vm3125_vm12, %v3109_v45, %v3112_v32 }
 0x433   :  { %v3135_v47 = vsel %vm3127_vm11, %v3118_v4, %v3134_v29  ;;  %v3138_v48 = vsel %vm3128_vm5, %v3124_v13, 1326507024  ;;  %v3131_v11 = vsel %vm3127_vm11, %v3115_v61, %v3130_v53  ;;  %v3311_v16 = vadd.s32 1, %v4125_v6 }
 0x434   :  { %v3136_v63 = vsel %vm3126_vm15, %v3133_v50, %v3135_v47  ;;  %v3139_v15 = vsel %vm3127_vm11, %v3121_v43, %v3138_v48  ;;  %vm4124_vm13 = vcmp.lt.s32.totalorder %v4123_v9, 0  ;;  %v3132_v61 = vsel %vm3126_vm15, %v3129_v40, %v3131_v11 }
 0x435   :  { %v3140_v26 = vsel %vm3126_vm15, %v3137_v56, %v3139_v15  ;;  %v6911_v3 = vmul.u32.u64.low %v3141_v19, %v3136_v63  ;;  %v6912_v33 = vmul.u32.u64.high %v3141_v19, %v3136_v63, %v6911_v3  ;;  %v3268_v60 = vsel %vm4124_vm13, 0, %v4123_v9 }
 0x436   :  { %v6915_v59 = vmul.u32.u64.low %v3141_v19, %v3140_v26  ;;  %v6916_v35 = vmul.u32.u64.high %v3141_v19, %v3140_v26, %v6915_v59  ;;  %vm3312_vm7 = vcmp.gt.s32.totalorder %v3311_v16, 0  ;;  %v3269_v32 = vsub.s32 32, %v3268_v60 }
 0x437   :  { %v3273_v4 = vsub.s32 4294967266, %v3268_v60  ;;  %v3313_v45 = vsel %vm3312_vm7, %v3311_v16, 0  ;;  %v6922_v43 = vsel %vm6900_vm1, %v6490_v10, %v2970_v7  ;;  %v6924_v6 = vshll.u32 %v3309_v58, 8 }
 0x438   :  { %v3315_v15 = vand.u32 31, %v3313_v45  ;;  %v7642_v13 = vand.u32 2147483647, %v6862_v38  ;;  %v3270_v22 = vshll.u32 %v6887_v20, %v3268_v60  ;;  %v3271_v53 = vshrl.u32 %v6878_v37, %v3269_v32 }
 0x439   :  { %v3274_v50 = vadd.s32 127, %v3273_v4  ;;  %v3151_v29 = vadd.s32 1, %v6912_v33  ;;  %v3073_v30 = vxor.u32 2147483648, %v3072_v44  ;;  %v3148_v56 = vmul.u32 %v3141_v19, %v3132_v61 }
 0x43a   :  { %vm3150_vm7 = vc.u32 %v6916_v35, %v6911_v3  ;;  %v3316_v9 = vsub.s32 32, %v3315_v15  ;;  %v3272_v7 = vor.u32 %v3271_v53, %v3270_v22  ;;  %v3318_v47 = vshll.u32 %v7699_v54, %v3315_v15 }
 0x43b   :  { %v3275_v40 = vshll.u32 %v3274_v50, 23  ;;  %v3152_v58 = vsel %vm3150_vm7, %v3151_v29, %v6912_v33  ;;  %v3321_v37 = vshll.u32 %v7695_v2, %v3315_v15  ;;  %v3314_v16 = vshrl.u32 %v3313_v45, 5 }
 0x43c   :  { %v3153_v48 = vadd.s32 %v3152_v58, %v3148_v56  ;;  %v3319_v20 = vshrl.u32 %v7695_v2, %v3316_v9  ;;  %v3322_v11 = vshrl.u32 %v7696_v42, %v3316_v9  ;;  %v3324_v19 = vshll.u32 %v7696_v42, %v3315_v15 }
 0x43d   :  { %v3276_v63 = vor.u32 4788187, %v3275_v40  ;;  %v3325_v26 = vshrl.u32 %v7697_v8, %v3316_v9  ;;  %v3279_v60 = vcvt.s32.f32 %v3272_v7  ;;  %v3327_v22 = vshll.u32 %v7697_v8, %v3315_v15 }
 0x43e   :  { %v3154_v59 = vadd.s32 536870912, %v3153_v48  ;;  %v3320_v32 = vor.u32 %v3319_v20, %v3318_v47  ;;  %v3323_v4 = vor.u32 %v3322_v11, %v3321_v37  ;;  %v3328_v53 = vshrl.u32 %v7684_v27, %v3316_v9 }
 0x43f   :  { %v3277_v33 = vand.u32 2147483647, %v3276_v63  ;;  %v3326_v61 = vor.u32 %v3325_v26, %v3324_v19  ;;  %v3074_v50 = vsel %vm2991_vm10, %v3073_v30, %v3072_v44  ;;  %v3330_v45 = vshll.u32 %v7684_v27, %v3315_v15 }
 0x440   :  { %v6943_v29 = vshrl.u32 %v3154_v59, 30  ;;  %v3331_v56 = vshrl.u32 %v7685_v52, %v3316_v9  ;;  %vm3199_vm12 = vcmp.lt.s32.totalorder %v6604_v1, 0  ;;  %v3317_v40 = vshrl.u32 %v7699_v54, %v3316_v9 }
 0x441   :  { %v3280_v7 = vmul.f32 %v3279_v60, %v3277_v33  ;;  %v3329_v58 = vor.u32 %v3328_v53, %v3327_v22  ;;  %v3408_v47 = vand.u32 2139095040, %v6862_v38  ;;  %vm3333_vm5 = vcmp.lt.s32.totalorder %v3314_v16, 1 }
 0x442   :  { %7845 = vst [vmem:[#allocation9_spill] sm:$0xff] %v6943_v29  ;;  %v3156_v20 = vshll.u32 %v6943_v29, 30  ;;  %v3332_v37 = vor.u32 %v3331_v56, %v3330_v45  ;;  %vm3336_vm15 = vcmp.lt.s32.totalorder %v3314_v16, 4  ;;  %vm3335_vm10 = vcmp.lt.s32.totalorder %v3314_v16, 3 }
 0x443   :  { %v3338_v44 = vsel %vm3336_vm15, %v3326_v61, 2102212464  ;;  %v3341_v30 = vsel %vm3333_vm5, %v3320_v32, %v3323_v4  ;;  %v3342_v11 = vsel %vm3336_vm15, %v3329_v58, 920167782  ;;  %vm3334_vm11 = vcmp.lt.s32.totalorder %v3314_v16, 2 }
 0x444   :  { %v6951_v15 = vsub.s32 %v3153_v48, %v3156_v20  ;;  %v3343_v63 = vsel %vm3335_vm10, %v3326_v61, %v3342_v11  ;;  %v3345_v19 = vsel %vm3333_vm5, %v3323_v4, %v3326_v61  ;;  %v7846_v26 = vand.u32 2147483647, %v6604_v1 }
 0x445   :  { %v7847_v9 = vmov 0  ;;  %v3281_v60 = vxor.u32 2147483648, %v3280_v7  ;;  %v3337_v59 = vsel %vm3333_vm5, %v3317_v40, %v3320_v32  ;;  %v3344_v33 = vsel %vm3334_vm11, %v3341_v30, %v3343_v63 }
 0x446   :  { %vm6955_vm13 = vcmp.le.f32.partialorder %v7846_v26, 0.7853982  ;;  %v3346_v22 = vsel %vm3336_vm15, %v3332_v37, 1326507024  ;;  %v3159_v53 = vsub.s32 0, %v6951_v15  ;;  %v3339_v45 = vsel %vm3335_vm10, %v3323_v4, %v3338_v44 }
 0x447   :  { %v7848_v9 = vsel %vm6955_vm13, 4294967295, %v7847_v9  ;;  %v3347_v56 = vsel %vm3335_vm10, %v3329_v58, %v3346_v22  ;;  %v3409_v48 = vshrl.u32 %v3408_v47, 23  ;;  %v3412_v26 = vand.u32 8388607, %v7642_v13 }
 0x448   :  { %7849 = vst [vmem:[#allocation28_spill] sm:$0xff] %v7848_v9  ;;  %v3348_v20 = vsel %vm3334_vm11, %v3345_v19, %v3347_v56  ;;  %v6963_v61 = vmul.u32.u64.low %v6924_v6, %v3344_v33  ;;  %v6964_v11 = vmul.u32.u64.high %v6924_v6, %v3344_v33, %v6963_v61  ;;  %v3283_v32 = vsub.s32 4, %v6870_v34 }
 0x449   :  { %v4118_v40 = vmin.u32 %v3159_v53, %v6951_v15  ;;  %v6972_v37 = vmul.u32.u64.low %v6924_v6, %v3348_v20  ;;  %v6973_v30 = vmul.u32.u64.high %v6924_v6, %v3348_v20, %v6972_v37  ;;  %4412 = vcosq.f32 %v6922_v43 }
 0x44a   :  { %v7850_v4 = vsel %vm6856_vm8, 0, %v6846_v24  ;;  %v3340_v47 = vsel %vm3334_vm11, %v3337_v59, %v3339_v45  ;;  %v4129_v44 = vadd.s32 4294967169, %v3409_v48  ;;  %4414 = vsinq.f32 %v6922_v43 }
 0x44b   :  { %v6980_v58 = vadd.s32 3, %v7850_v4  ;;  %v6987_v63 = vsel %vm6856_vm8, %v6503_v62, %v3074_v50  ;;  %v3282_v19 = vsel %vm3199_vm12, %v3281_v60, %v3280_v7  ;;  %v3161_v33 = vclz %v4118_v40 }
 0x44c   :  { %v3359_v22 = vadd.s32 1, %v6964_v11  ;;  %v3413_v53 = vor.u32 8388608, %v3412_v26  ;;  %v3415_v24 = vadd.s32 1, %v4129_v44  ;;  %v6994_v16 = vadd.f32 %v6473_v51, %v6852_v0 }
 0x44d   :  { %7851 = vst [vmem:[#allocation34_spill] sm:$0xff] %v6980_v58  ;;  %v6999_v43 = vsel %vm3199_vm12, %v3283_v32, %v6870_v34  ;;  %v4119_v21 = vadd.s32 4294967294, %v3161_v33  ;;  %v3356_v50 = vmul.u32 %v6924_v6, %v3340_v47  ;;  %vm3358_vm8 = vc.u32 %v6973_v30, %v6963_v61 }
 0x44e   :  { %7852 = vst [vmem:[#allocation37_spill] sm:$0xff] %v6999_v43  ;;  %4416 = vcosq.f32 %v6987_v63  ;;  %v3149_v7 = vadd.s32 %v6911_v3, %v6916_v35  ;;  %v3360_v60 = vsel %vm3358_vm8, %v3359_v22, %v6964_v11  ;;  %vm3416_vm7 = vcmp.gt.s32.totalorder %v3415_v24, 0 }
 0x44f   :  { %v7011_v51 = vsel %vm6955_vm13, %v6604_v1, %v3282_v19  ;;  %vm4120_vm12 = vcmp.lt.s32.totalorder %v4119_v21, 0  ;;  %v3361_v34 = vadd.s32 %v3360_v60, %v3356_v50  ;;  %v3417_v59 = vsel %vm3416_vm7, %v3415_v24, 0 }
 0x450   :  { %v3164_v6 = vsel %vm4120_vm12, 0, %v4119_v21  ;;  %v3419_v45 = vand.u32 31, %v3417_v59  ;;  %v7013_v56 = vshll.u32 %v3413_v53, 8  ;;  %v3616_v48 = vand.u32 2139095040, %v6994_v16 }
 0x451   :  { %v3165_v20 = vsub.s32 32, %v3164_v6  ;;  %v3169_v26 = vsub.s32 4294967266, %v3164_v6  ;;  %v3362_v35 = vadd.s32 536870912, %v3361_v34  ;;  %v7016_v3 = vshrl.u32 %v3417_v59, 5 }
 0x452   :  { %v3166_v11 = vshll.u32 %v6951_v15, %v3164_v6  ;;  %v3420_v32 = vsub.s32 32, %v3419_v45  ;;  %v3422_v40 = vshll.u32 %v7699_v54, %v3419_v45  ;;  %v3425_v37 = vshll.u32 %v7695_v2, %v3419_v45 }
 0x453   :  { %v3167_v4 = vshrl.u32 %v3149_v7, %v3165_v20  ;;  %v3170_v47 = vadd.s32 127, %v3169_v26  ;;  %v7021_v44 = vshrl.u32 %v3362_v35, 30  ;;  %v3428_v19 = vshll.u32 %v7696_v42, %v3419_v45  ;;  %v7024_v33 = vpop.eup %4412 }
 0x454   :  { %7853 = vst [vmem:[#allocation19_spill] sm:$0xff] %v7024_v33  ;;  %v3423_v22 = vshrl.u32 %v7695_v2, %v3420_v32  ;;  %v3426_v53 = vshrl.u32 %v7696_v42, %v3420_v32  ;;  %v3429_v24 = vshrl.u32 %v7697_v8, %v3420_v32  ;;  %v3431_v15 = vshll.u32 %v7697_v8, %v3419_v45  ;;  %v7030_v21 = vpop.eup %4414 }
 0x455   :  { %v3168_v50 = vor.u32 %v3167_v4, %v3166_v11  ;;  %v3171_v60 = vshll.u32 %v3170_v47, 23  ;;  %v3364_v7 = vshll.u32 %v7021_v44, 30  ;;  %v3432_v59 = vshrl.u32 %v7684_v27, %v3420_v32 }
 0x456   :  { %v3424_v6 = vor.u32 %v3423_v22, %v3422_v40  ;;  %v3427_v20 = vor.u32 %v3426_v53, %v3425_v37  ;;  %v3430_v26 = vor.u32 %v3429_v24, %v3428_v19  ;;  %v3617_v35 = vshrl.u32 %v3616_v48, 23 }
 0x457   :  { %v3172_v13 = vor.u32 4788187, %v3171_v60  ;;  %v7034_v1 = vsub.s32 %v3361_v34, %v3364_v7  ;;  %v3421_v62 = vshrl.u32 %v7699_v54, %v3420_v32  ;;  %v3433_v58 = vor.u32 %v3432_v59, %v3431_v15 }
 0x458   :  { %v7037_v29 = vpop.eup %4416  ;;  %v3175_v33 = vcvt.s32.f32 %v3168_v50  ;;  %v3434_v11 = vshll.u32 %v7684_v27, %v3419_v45  ;;  %v3435_v4 = vshrl.u32 %v7685_v52, %v3420_v32  ;;  %vm3437_vm5 = vcmp.lt.s32.totalorder %v7016_v3, 1 }
 0x459   :  { %7854 = vst [vmem:[#allocation33_spill] sm:$0xff] %v7037_v29  ;;  %v3173_v47 = vand.u32 2147483647, %v3172_v13  ;;  %v3367_v40 = vsub.s32 0, %v7034_v1  ;;  %vm3439_vm15 = vcmp.lt.s32.totalorder %v7016_v3, 3  ;;  %vm3440_vm10 = vcmp.lt.s32.totalorder %v7016_v3, 4 }
 0x45a   :  { %vm7654_vm11 = vcmp.lt.s32.totalorder %v6794_v23, 0  ;;  %v3436_v34 = vor.u32 %v3435_v4, %v3434_v11  ;;  %v3442_v48 = vsel %vm3440_vm10, %v3430_v26, 2102212464  ;;  %v3445_v37 = vsel %vm3437_vm5, %v3424_v6, %v3427_v20 }
 0x45b   :  { %v3446_v19 = vsel %vm3440_vm10, %v3433_v58, 920167782  ;;  %v3176_v45 = vmul.f32 %v3175_v33, %v3173_v47  ;;  %v4126_v32 = vmin.u32 %v3367_v40, %v7034_v1  ;;  %vm3438_vm8 = vcmp.lt.s32.totalorder %v7016_v3, 2 }
 0x45c   :  { %v3447_v13 = vsel %vm3439_vm15, %v3430_v26, %v3446_v19  ;;  %v3449_v53 = vsel %vm3437_vm5, %v3427_v20, %v3430_v26  ;;  %v3450_v24 = vsel %vm3440_vm10, %v3436_v34, 1326507024  ;;  %v7649_v15 = vand.u32 2147483647, %v6994_v16 }
 0x45d   :  { %v3448_v22 = vsel %vm3438_vm8, %v3445_v37, %v3447_v13  ;;  %v3369_v50 = vclz %v4126_v32  ;;  %v3441_v33 = vsel %vm3437_vm5, %v3421_v62, %v3424_v6  ;;  %v3443_v60 = vsel %vm3439_vm15, %v3427_v20, %v3442_v48 }
 0x45e   :  { %v3451_v7 = vsel %vm3439_vm15, %v3433_v58, %v3450_v24  ;;  %v7066_v11 = vmul.u32.u64.low %v7013_v56, %v3448_v22  ;;  %v7067_v4 = vmul.u32.u64.high %v7013_v56, %v3448_v22, %v7066_v11  ;;  %v4137_v26 = vadd.s32 4294967169, %v3617_v35 }
 0x45f   :  { %v3452_v59 = vsel %vm3438_vm8, %v3449_v53, %v3451_v7  ;;  %v3177_v47 = vxor.u32 2147483648, %v3176_v45  ;;  %v4127_v40 = vadd.s32 4294967294, %v3369_v50  ;;  %4418 = vsinq.f32 %v6987_v63 }
 0x460   :  { %v7071_v34 = vmul.u32.u64.low %v7013_v56, %v3452_v59  ;;  %v7072_v62 = vmul.u32.u64.high %v7013_v56, %v3452_v59, %v7071_v34  ;;  %v7855_v6 = vand.u32 2147483647, %v6794_v23  ;;  %v3623_v48 = vadd.s32 1, %v4137_v26 }
 0x461   :  { %4420 = vcosq.f32 %v7011_v51  ;;  %vm4128_vm12 = vcmp.lt.s32.totalorder %v4127_v40, 0  ;;  %v3444_v35 = vsel %vm3438_vm8, %v3441_v33, %v3443_v60  ;;  %v7089_v63 = vadd.f32 %v6577_v12, %v6852_v0 }
 0x462   :  { %vm7080_vm7 = vcmp.le.f32.partialorder %v7855_v6, 0.7853982  ;;  %v3357_v37 = vadd.s32 %v6963_v61, %v6973_v30  ;;  %v3372_v19 = vsel %vm4128_vm12, 0, %v4127_v40  ;;  %v3463_v32 = vadd.s32 1, %v7067_v4 }
 0x463   :  { %vm3624_vm5 = vcmp.gt.s32.totalorder %v3623_v48, 0  ;;  %v3178_v13 = vsel %vm7654_vm11, %v3177_v47, %v3176_v45  ;;  %v3373_v22 = vsub.s32 32, %v3372_v19  ;;  %v3377_v53 = vsub.s32 4294967266, %v3372_v19 }
 0x464   :  { %v3620_v3 = vand.u32 8388607, %v7649_v15  ;;  %4422 = vsinq.f32 %v7011_v51  ;;  %v3460_v12 = vmul.u32 %v7013_v56, %v3444_v35  ;;  %vm3462_vm15 = vc.u32 %v7072_v62, %v7066_v11 }
 0x465   :  { %v3625_v61 = vsel %vm3624_vm5, %v3623_v48, 0  ;;  %v3374_v30 = vshll.u32 %v7034_v1, %v3372_v19  ;;  %v3375_v24 = vshrl.u32 %v3357_v37, %v3373_v22  ;;  %v3378_v50 = vadd.s32 127, %v3377_v53 }
 0x466   :  { %v3464_v33 = vsel %vm3462_vm15, %v3463_v32, %v7067_v4  ;;  %v7107_v45 = vsel %vm7080_vm7, %v6794_v23, %v3178_v13  ;;  %v3627_v7 = vand.u32 31, %v3625_v61  ;;  %v7111_v51 = vadd.f32 %v6644_v5, %v6852_v0 }
 0x467   :  { %v3465_v60 = vadd.s32 %v3464_v33, %v3460_v12  ;;  %v3376_v56 = vor.u32 %v3375_v24, %v3374_v30  ;;  %v3379_v59 = vshll.u32 %v3378_v50, 23  ;;  %v3621_v26 = vor.u32 8388608, %v3620_v3 }
 0x468   :  { %v7114_v40 = vshrl.u32 %v3625_v61, 5  ;;  %v3628_v4 = vsub.s32 32, %v3627_v7  ;;  %v3512_v34 = vand.u32 2139095040, %v7089_v63  ;;  %vm7661_vm10 = vcmp.lt.s32.totalorder %v6834_v17, 0 }
 0x469   :  { %v3466_v47 = vadd.s32 536870912, %v3465_v60  ;;  %v3380_v6 = vor.u32 4788187, %v3379_v59  ;;  %v3383_v48 = vcvt.s32.f32 %v3376_v56  ;;  %v3630_v35 = vshll.u32 %v7699_v54, %v3627_v7  ;;  %v7120_v0 = vpop.eup %4418 }
 0x46a   :  { %v3633_v5 = vshll.u32 %v7695_v2, %v3627_v7  ;;  %7858 = vst [vmem:[#allocation36_spill] sm:$0xff] %v7120_v0  ;;  %vm3407_vm8 = vcmp.lt.s32.totalorder %v6862_v38, 0  ;;  %v3631_v19 = vshrl.u32 %v7695_v2, %v3628_v4  ;;  %v3634_v32 = vshrl.u32 %v7696_v42, %v3628_v4 }
 0x46b   :  { %v3467_v37 = vshrl.u32 %v3466_v47, 30  ;;  %v3636_v13 = vshll.u32 %v7696_v42, %v3627_v7  ;;  %v7126_v22 = vpop.eup %4420  ;;  %v3381_v53 = vand.u32 2147483647, %v3380_v6  ;;  %v3637_v3 = vshrl.u32 %v7697_v8, %v3628_v4 }
 0x46c   :  { %7859 = vst [vmem:[#allocation35_spill] sm:$0xff] %v7126_v22  ;;  %v3639_v12 = vshll.u32 %v7697_v8, %v3627_v7  ;;  %v3640_v61 = vshrl.u32 %v7684_v27, %v3628_v4  ;;  %v7860_v30 = vand.u32 2147483647, %v6834_v17  ;;  %v7861_v24 = vmov 0 }
 0x46d   :  { %v3468_v50 = vshll.u32 %v3467_v37, 30  ;;  %v3632_v33 = vor.u32 %v3631_v19, %v3630_v35  ;;  %v3635_v56 = vor.u32 %v3634_v32, %v3633_v5  ;;  %v3642_v59 = vshll.u32 %v7684_v27, %v3627_v7  ;;  %v7921_v35 = vld [vmem:[#allocation12_spill] sm:$0xff] }
 0x46e   :  { %vm7133_vm12 = vcmp.le.f32.partialorder %v7860_v30, 0.7853982  ;;  %v3384_v47 = vmul.f32 %v3383_v48, %v3381_v53  ;;  %v3638_v58 = vor.u32 %v3637_v3, %v3636_v13  ;;  %v3641_v6 = vor.u32 %v3640_v61, %v3639_v12  ;;  %v7139_v1 = vpop.eup %4422 }
 0x46f   :  { %v7862_v24 = vsel %vm7133_vm12, 4294967295, %v7861_v24  ;;  %v3643_v15 = vshrl.u32 %v7685_v52, %v3628_v4  ;;  %7864 = vst [vmem:[#allocation38_spill] sm:$0xff] %v7139_v1  ;;  %4424 = vcosq.f32 %v7107_v45  ;;  %v7142_v22 = vsub.s32 %v3465_v60, %v3468_v50 }
 0x470   :  { %7863 = vst [vmem:[#allocation20_spill] sm:$0xff] %v7862_v24  ;;  %v3661_v30 = vshll.u32 %v3621_v26, 8  ;;  %v3513_v29 = vshrl.u32 %v3512_v34, 23  ;;  %v3385_v0 = vxor.u32 2147483648, %v3384_v47  ;;  %v7865_v43 = vand.u32 2147483647, %v6862_v38 }
 0x471   :  { %v3491_v7 = vsub.s32 4, %v3467_v37  ;;  %v3644_v48 = vor.u32 %v3643_v15, %v3642_v59  ;;  %vm3645_vm15 = vcmp.lt.s32.totalorder %v7114_v40, 1  ;;  %v3471_v5 = vsub.s32 0, %v7142_v22 }
 0x472   :  { %vm7146_vm5 = vcmp.le.f32.partialorder %v7865_v43, 0.7853982  ;;  %vm3646_vm11 = vcmp.lt.s32.totalorder %v7114_v40, 2  ;;  %vm3648_vm3 = vcmp.lt.s32.totalorder %v7114_v40, 4  ;;  %v3653_v60 = vsel %vm3645_vm15, %v3632_v33, %v3635_v56 }
 0x473   :  { %v3629_v26 = vshrl.u32 %v7699_v54, %v3628_v4  ;;  %vm3647_vm14 = vcmp.lt.s32.totalorder %v7114_v40, 3  ;;  %v3650_v34 = vsel %vm3648_vm3, %v3638_v58, 2102212464  ;;  %v3654_v43 = vsel %vm3648_vm3, %v3641_v6, 920167782 }
 0x474   :  { %v3386_v19 = vsel %vm7661_vm10, %v3385_v0, %v3384_v47  ;;  %v4130_v15 = vmin.u32 %v3471_v5, %v7142_v22  ;;  %v3655_v32 = vsel %vm3647_vm14, %v3638_v58, %v3654_v43  ;;  %v3657_v13 = vsel %vm3645_vm15, %v3635_v56, %v3638_v58 }
 0x475   :  { %v7161_v53 = vsel %vm3407_vm8, %v3491_v7, %v3467_v37  ;;  %v3649_v3 = vsel %vm3645_vm15, %v3629_v26, %v3632_v33  ;;  %v3656_v12 = vsel %vm3646_vm11, %v3653_v60, %v3655_v32  ;;  %v3658_v4 = vsel %vm3648_vm3, %v3644_v48, 1326507024 }
 0x476   :  { %7868 = vst [vmem:[#allocation39_spill] sm:$0xff] %v7161_v53  ;;  %v3473_v61 = vclz %v4130_v15  ;;  %v3651_v50 = vsel %vm3647_vm14, %v3635_v56, %v3650_v34  ;;  %v3659_v59 = vsel %vm3647_vm14, %v3641_v6, %v3658_v4  ;;  %v4133_v1 = vadd.s32 4294967169, %v3513_v29 }
 0x477   :  { %v3389_v0 = vsel %vm7133_vm12, %v6834_v17, %v3386_v19  ;;  %v3660_v58 = vsel %vm3646_vm11, %v3657_v13, %v3659_v59  ;;  %v7170_v47 = vmul.u32.u64.low %v3661_v30, %v3656_v12  ;;  %v7171_v5 = vmul.u32.u64.high %v3661_v30, %v3656_v12, %v7170_v47 }
 0x478   :  { %v4131_v37 = vadd.s32 4294967294, %v3473_v61  ;;  %v7174_v33 = vmul.u32.u64.low %v3661_v30, %v3660_v58  ;;  %v7175_v7 = vmul.u32.u64.high %v3661_v30, %v3660_v58, %v7174_v33  ;;  %v3519_v48 = vadd.s32 1, %v4133_v1 }
 0x479   :  { %4426 = vsinq.f32 %v7107_v45  ;;  %v3652_v29 = vsel %vm3646_vm11, %v3649_v3, %v3651_v50  ;;  %v7869_v56 = vand.u32 2147483647, %v7089_v63  ;;  %v2347_v60 = vsub.s32 4, %v6253_v18  ;;  %v7183_v26 = vpop.eup %4424 }
 0x47a   :  { %v3461_v34 = vadd.s32 %v7066_v11, %v7072_v62  ;;  %vm4132_vm14 = vcmp.lt.s32.totalorder %v4131_v37, 0  ;;  %vm3520_vm3 = vcmp.gt.s32.totalorder %v3519_v48, 0  ;;  %4428 = vcosq.f32 %v3389_v0 }
 0x47b   :  { %v3516_v6 = vand.u32 8388607, %v7869_v56  ;;  %v3476_v45 = vsel %vm4132_vm14, 0, %v4131_v37  ;;  %v3671_v40 = vadd.s32 1, %v7171_v5  ;;  %v3521_v43 = vsel %vm3520_vm3, %v3519_v48, 0 }
 0x47c   :  { %4430 = vsinq.f32 %v3389_v0  ;;  %v3477_v19 = vsub.s32 32, %v3476_v45  ;;  %v3481_v15 = vsub.s32 4294967266, %v3476_v45  ;;  %v3668_v32 = vmul.u32 %v3661_v30, %v3652_v29 }
 0x47d   :  { %vm3670_vm11 = vc.u32 %v7175_v7, %v7170_v47  ;;  %v3517_v13 = vor.u32 8388608, %v3516_v6  ;;  %v3523_v11 = vand.u32 31, %v3521_v43  ;;  %v3478_v3 = vshll.u32 %v7142_v22, %v3476_v45 }
 0x47e   :  { %v3479_v12 = vshrl.u32 %v3461_v34, %v3477_v19  ;;  %v3482_v4 = vadd.s32 127, %v3481_v15  ;;  %v3672_v61 = vsel %vm3670_vm11, %v3671_v40, %v7171_v5  ;;  %v7196_v59 = vshrl.u32 %v3521_v43, 5 }
 0x47f   :  { %v3673_v50 = vadd.s32 %v3672_v61, %v3668_v32  ;;  %v3524_v0 = vsub.s32 32, %v3523_v11  ;;  %v3720_v58 = vand.u32 2139095040, %v7111_v51  ;;  %v3526_v33 = vshll.u32 %v7699_v54, %v3523_v11 }
 0x480   :  { %v3480_v30 = vor.u32 %v3479_v12, %v3478_v3  ;;  %v3483_v37 = vshll.u32 %v3482_v4, 23  ;;  %v3529_v48 = vshll.u32 %v7695_v2, %v3523_v11  ;;  %v3532_v6 = vshll.u32 %v7696_v42, %v3523_v11 }
 0x481   :  { %v3674_v29 = vadd.s32 536870912, %v3673_v50  ;;  %v3527_v56 = vshrl.u32 %v7695_v2, %v3524_v0  ;;  %v3530_v22 = vshrl.u32 %v7696_v42, %v3524_v0  ;;  %v3533_v34 = vshrl.u32 %v7697_v8, %v3524_v0 }
 0x482   :  { %v3484_v5 = vor.u32 4788187, %v3483_v37  ;;  %v3535_v45 = vshll.u32 %v7697_v8, %v3523_v11  ;;  %v3536_v40 = vshrl.u32 %v7684_v27, %v3524_v0  ;;  %v3487_v19 = vcvt.s32.f32 %v3480_v30 }
 0x483   :  { %v7207_v43 = vpop.eup %4426  ;;  %vm3615_vm15 = vcmp.lt.s32.totalorder %v6994_v16, 0  ;;  %v3675_v15 = vshrl.u32 %v3674_v29, 30  ;;  %v3528_v32 = vor.u32 %v3527_v56, %v3526_v33  ;;  %v3531_v3 = vor.u32 %v3530_v22, %v3529_v48 }
 0x484   :  { %v3485_v12 = vand.u32 2147483647, %v3484_v5  ;;  %v3534_v4 = vor.u32 %v3533_v34, %v3532_v6  ;;  %v3538_v61 = vshll.u32 %v7684_v27, %v3523_v11  ;;  %v3539_v37 = vshrl.u32 %v7685_v52, %v3524_v0  ;;  %v7212_v1 = vpop.eup %4428 }
 0x485   :  { %7870 = vst [vmem:[#allocation40_spill] sm:$0xff] %v7212_v1  ;;  %v3676_v62 = vshll.u32 %v3675_v15, 30  ;;  %v3537_v53 = vor.u32 %v3536_v40, %v3535_v45  ;;  %v3557_v9 = vshll.u32 %v3517_v13, 8  ;;  %v2348_v30 = vsel %vm2263_vm2, %v2347_v60, %v6253_v18 }
 0x486   :  { %v7217_v24 = vpop.eup %4430  ;;  %v3488_v29 = vmul.f32 %v3487_v19, %v3485_v12  ;;  %v7872_v33 = vand.u32 2147483647, %v6994_v16  ;;  %v3540_v11 = vor.u32 %v3539_v37, %v3538_v61  ;;  %v3721_v56 = vshrl.u32 %v3720_v58, 23 }
 0x487   :  { %7871 = vst [vmem:[#allocation41_spill] sm:$0xff] %v7217_v24  ;;  %v7875_v22 = vand.u32 2147483647, %v7111_v51  ;;  %v7227_v5 = vsub.s32 %v3673_v50, %v3676_v62  ;;  %v3525_v13 = vshrl.u32 %v7699_v54, %v3524_v0  ;;  %vm3541_vm2 = vcmp.lt.s32.totalorder %v7196_v59, 1 }
 0x488   :  { %vm7221_vm14 = vcmp.le.f32.partialorder %v7872_v33, 0.7853982  ;;  %vm3544_vm3 = vcmp.lt.s32.totalorder %v7196_v59, 4  ;;  %v3699_v18 = vsub.s32 4, %v3675_v15  ;;  %vm3542_vm11 = vcmp.lt.s32.totalorder %v7196_v59, 2 }
 0x489   :  { %v3724_v6 = vand.u32 8388607, %v7875_v22  ;;  %v3546_v60 = vsel %vm3544_vm3, %v3534_v4, 2102212464  ;;  %v3549_v34 = vsel %vm3541_vm2, %v3528_v32, %v3531_v3  ;;  %v3489_v45 = vxor.u32 2147483648, %v3488_v29 }
 0x48a   :  { %v3679_v40 = vsub.s32 0, %v7227_v5  ;;  %vm3543_vm10 = vcmp.lt.s32.totalorder %v7196_v59, 3  ;;  %v3550_v58 = vsel %vm3544_vm3, %v3537_v53, 920167782  ;;  %v3545_v19 = vsel %vm3541_vm2, %v3525_v13, %v3528_v32 }
 0x48b   :  { %v3551_v62 = vsel %vm3543_vm10, %v3534_v4, %v3550_v58  ;;  %v3553_v50 = vsel %vm3541_vm2, %v3531_v3, %v3534_v4  ;;  %v3554_v12 = vsel %vm3544_vm3, %v3540_v11, 1326507024  ;;  %v3547_v61 = vsel %vm3543_vm10, %v3531_v3, %v3546_v60 }
 0x48c   :  { %v4138_v0 = vmin.u32 %v3679_v40, %v7227_v5  ;;  %v3552_v37 = vsel %vm3542_vm11, %v3549_v34, %v3551_v62  ;;  %v3555_v33 = vsel %vm3543_vm10, %v3537_v53, %v3554_v12  ;;  %v7240_v22 = vsel %vm3615_vm15, %v3699_v18, %v3675_v15 }
 0x48d   :  { %v3556_v1 = vsel %vm3542_vm11, %v3553_v50, %v3555_v33  ;;  %v7244_v24 = vmul.u32.u64.low %v3557_v9, %v3552_v37  ;;  %v7245_v17 = vmul.u32.u64.high %v3557_v9, %v3552_v37, %v7244_v24  ;;  %v3490_v32 = vsel %vm3407_vm8, %v3489_v45, %v3488_v29 }
 0x48e   :  { %v3681_v4 = vclz %v4138_v0  ;;  %v7250_v3 = vmul.u32.u64.low %v3557_v9, %v3556_v1  ;;  %v7251_v11 = vmul.u32.u64.high %v3557_v9, %v3556_v1, %v7250_v3  ;;  %v3548_v53 = vsel %vm3542_vm11, %v3545_v19, %v3547_v61 }
 0x48f   :  { %v4141_v13 = vadd.s32 4294967169, %v3721_v56  ;;  %v2350_v15 = vsel %vm6444_vm0, 0, %v2348_v30  ;;  %v2358_v18 = vxor.u32 2147483648, %v6611_v14  ;;  %v3669_v60 = vadd.s32 %v7170_v47, %v7175_v7 }
 0x490   :  { %v4139_v34 = vadd.s32 4294967294, %v3681_v4  ;;  %v3702_v29 = vsel %vm7221_vm14, 0, %v7240_v22  ;;  %v2354_v45 = vadd.s32 3, %v2350_v15  ;;  %v3493_v1 = vsel %vm7146_vm5, %v6862_v38, %v3490_v32 }
 0x491   :  { %v3567_v59 = vadd.s32 1, %v7245_v17  ;;  %v3725_v56 = vor.u32 8388608, %v3724_v6  ;;  %v3727_v36 = vadd.s32 1, %v4141_v13  ;;  %v3564_v30 = vmul.u32 %v3557_v9, %v3548_v53 }
 0x492   :  { %vm4140_vm0 = vcmp.lt.s32.totalorder %v4139_v34, 0  ;;  %vm3566_vm10 = vc.u32 %v7251_v11, %v7244_v24  ;;  %v2763_v47 = vsub.s32 4, %v6609_v25  ;;  %v7271_v58 = vand.u32 3, %v2354_v45 }
 0x493   :  { %v3684_v7 = vsel %vm4140_vm0, 0, %v4139_v34  ;;  %v3568_v40 = vsel %vm3566_vm10, %v3567_v59, %v7245_v17  ;;  %vm3728_vm8 = vcmp.gt.s32.totalorder %v3727_v36, 0  ;;  %4432 = vcosq.f32 %v3493_v1 }
 0x494   :  { %v3685_v19 = vsub.s32 32, %v3684_v7  ;;  %v3689_v62 = vsub.s32 4294967266, %v3684_v7  ;;  %v3569_v50 = vadd.s32 %v3568_v40, %v3564_v30  ;;  %4434 = vsinq.f32 %v3493_v1 }
 0x495   :  { %v3729_v6 = vsel %vm3728_vm8, %v3727_v36, 0  ;;  %v7273_v12 = vshll.u32 %v3725_v56, 8  ;;  %v2361_v9 = vxor.u32 2147483648, %v6606_v41  ;;  %v3686_v0 = vshll.u32 %v7227_v5, %v3684_v7 }
 0x496   :  { %v3687_v61 = vshrl.u32 %v3669_v60, %v3685_v19  ;;  %v3690_v37 = vadd.s32 127, %v3689_v62  ;;  %v3570_v33 = vadd.s32 536870912, %v3569_v50  ;;  %v3730_v32 = vshrl.u32 %v3729_v6, 5 }
 0x497   :  { %v3731_v17 = vand.u32 31, %v3729_v6  ;;  %vm2357_vm2 = vcmp.eq.s32.totalorder %v7271_v58, 0  ;;  %v7281_v4 = vsel %vm2679_vm4, %v2763_v47, %v6609_v25  ;;  %vm2360_vm3 = vcmp.eq.s32.totalorder %v7271_v58, 2 }
 0x498   :  { %v3688_v3 = vor.u32 %v3687_v61, %v3686_v0  ;;  %v3691_v53 = vshll.u32 %v3690_v37, 23  ;;  %v7283_v13 = vshrl.u32 %v3570_v33, 30  ;;  %v2359_v15 = vsel %vm2357_vm2, %v6606_v41, %v2358_v18 }
 0x499   :  { %v3732_v34 = vsub.s32 32, %v3731_v17  ;;  %v3734_v5 = vshll.u32 %v7699_v54, %v3731_v17  ;;  %v3737_v60 = vshll.u32 %v7695_v2, %v3731_v17  ;;  %v3740_v45 = vshll.u32 %v7696_v42, %v3731_v17 }
 0x49a   :  { %v3692_v1 = vor.u32 4788187, %v3691_v53  ;;  %v3695_v59 = vcvt.s32.f32 %v3688_v3  ;;  %v3572_v25 = vshll.u32 %v7283_v13, 30  ;;  %v3743_v56 = vshll.u32 %v7697_v8, %v3731_v17 }
 0x49b   :  { %v3733_v36 = vshrl.u32 %v7699_v54, %v3732_v34  ;;  %v3735_v30 = vshrl.u32 %v7695_v2, %v3732_v34  ;;  %v3738_v41 = vshrl.u32 %v7696_v42, %v3732_v34  ;;  %v3741_v18 = vshrl.u32 %v7697_v8, %v3732_v34 }
 0x49c   :  { %v3693_v47 = vand.u32 2147483647, %v3692_v1  ;;  %v7296_v7 = vsub.s32 %v3569_v50, %v3572_v25  ;;  %v3744_v40 = vshrl.u32 %v7684_v27, %v3732_v34  ;;  %v3746_v19 = vshll.u32 %v7684_v27, %v3731_v17 }
 0x49d   :  { %v3736_v62 = vor.u32 %v3735_v30, %v3734_v5  ;;  %v3739_v6 = vor.u32 %v3738_v41, %v3737_v60  ;;  %v3742_v0 = vor.u32 %v3741_v18, %v3740_v45  ;;  %v3747_v61 = vshrl.u32 %v7685_v52, %v3732_v34  ;;  %v7301_v37 = vpop.eup %4432 }
 0x49e   :  { %v3696_v54 = vmul.f32 %v3695_v59, %v3693_v47  ;;  %v3575_v2 = vsub.s32 0, %v7296_v7  ;;  %v3745_v42 = vor.u32 %v3744_v40, %v3743_v56  ;;  %vm3749_vm4 = vcmp.lt.s32.totalorder %v3730_v32, 1  ;;  %v7304_v8 = vpop.eup %4434 }
 0x49f   :  { %v3748_v50 = vor.u32 %v3747_v61, %v3746_v19  ;;  %vm3751_vm11 = vcmp.lt.s32.totalorder %v3730_v32, 3  ;;  %vm3752_vm0 = vcmp.lt.s32.totalorder %v3730_v32, 4  ;;  %v3753_v33 = vsel %vm3749_vm4, %v3733_v36, %v3736_v62 }
 0x4a0   :  { %v3697_v3 = vxor.u32 2147483648, %v3696_v54  ;;  %v4134_v27 = vmin.u32 %v3575_v2, %v7296_v7  ;;  %v3754_v17 = vsel %vm3752_vm0, %v3742_v0, 2102212464  ;;  %v3757_v53 = vsel %vm3749_vm4, %v3736_v62, %v3739_v6 }
 0x4a1   :  { %vm2353_vm10 = vweird.f32 %v6061_v55  ;;  %v3755_v52 = vsel %vm3751_vm11, %v3739_v6, %v3754_v17  ;;  %v3758_v34 = vsel %vm3752_vm0, %v3745_v42, 920167782  ;;  %v3761_v5 = vsel %vm3749_vm4, %v3739_v6, %v3742_v0  ;;  %v7888_v17 = vld [vmem:[#allocation5_spill] sm:$0xff] }
 0x4a2   :  { %v3762_v60 = vsel %vm3752_vm0, %v3748_v50, 1326507024  ;;  %v3577_v45 = vclz %v4134_v27  ;;  %vm3750_vm8 = vcmp.lt.s32.totalorder %v3730_v32, 2  ;;  %v3759_v1 = vsel %vm3751_vm11, %v3742_v0, %v3758_v34 }
 0x4a3   :  { %v2362_v59 = vsel %vm2360_vm3, %v2361_v9, %v6611_v14  ;;  %v3760_v25 = vsel %vm3750_vm8, %v3757_v53, %v3759_v1  ;;  %v3763_v56 = vsel %vm3751_vm11, %v3745_v42, %v3762_v60  ;;  %vm2356_vm2 = vcmp.lt.s32.totalorder %v7271_v58, 2  ;;  %v7876_v42 = vld [vmem:[#allocation16_spill] sm:$0xff] }
 0x4a4   :  { %v2766_v36 = vsel %vm6772_vm6, 0, %v7281_v4  ;;  %v3698_v30 = vsel %vm3615_vm15, %v3697_v3, %v3696_v54  ;;  %v4135_v41 = vadd.s32 4294967294, %v3577_v45  ;;  %v3756_v18 = vsel %vm3750_vm8, %v3753_v33, %v3755_v52  ;;  %v7879_v45 = vld [vmem:[#allocation13_spill] sm:$0xff] }
 0x4a5   :  { %v3764_v47 = vsel %vm3750_vm8, %v3761_v5, %v3763_v56  ;;  %v3565_v40 = vadd.s32 %v7244_v24, %v7251_v11  ;;  %v2363_v32 = vsel %vm2356_vm2, %v2359_v15, %v2362_v59  ;;  %vm2769_vm6 = vweird.f32 %v6316_v46  ;;  %v7880_v56 = vld [vmem:[#allocation24_spill] sm:$0xff] }
 0x4a6   :  { %v7323_v14 = vmul.u32.u64.low %v7273_v12, %v3764_v47  ;;  %v7324_v9 = vmul.u32.u64.high %v7273_v12, %v3764_v47, %v7323_v14  ;;  %vm4136_vm3 = vcmp.lt.s32.totalorder %v4135_v41, 0  ;;  %v2770_v31 = vadd.s32 3, %v2766_v36 }
 0x4a7   :  { %v7327_v58 = vmul.u32.u64.low %v7273_v12, %v3760_v25  ;;  %v7328_v19 = vmul.u32.u64.high %v7273_v12, %v3760_v25, %v7327_v58  ;;  %v7334_v4 = vsel %vm7221_vm14, %v6994_v16, %v3698_v30  ;;  %v3580_v62 = vsel %vm4136_vm3, 0, %v4135_v41  ;;  %v7881_v30 = vld [vmem:[#allocation17_spill] sm:$0xff] }
 0x4a8   :  { %v3772_v24 = vmul.u32 %v7273_v12, %v3756_v18  ;;  %v2555_v11 = vsub.s32 4, %v6335_v39  ;;  %v3581_v6 = vsub.s32 32, %v3580_v62  ;;  %v3585_v15 = vsub.s32 4294967266, %v3580_v62 }
 0x4a9   :  { %v2771_v0 = vand.u32 3, %v2770_v31  ;;  %v2774_v61 = vxor.u32 2147483648, %v6906_v57  ;;  %vm3774_vm15 = vc.u32 %v7324_v9, %v7327_v58  ;;  %v2364_v54 = vsel %vm2353_vm10, nan, %v2363_v32 }
 0x4aa   :  { %v2777_v2 = vxor.u32 2147483648, %v6885_v49  ;;  %vm7877_vm4 = vcmp.lt.s32.totalorder %v7876_v42, 0  ;;  %v3582_v12 = vshll.u32 %v7296_v7, %v3580_v62  ;;  %v3583_v33 = vshrl.u32 %v3565_v40, %v3581_v6 }
 0x4ab   :  { %v2556_v50 = vsel %vm7877_vm4, %v2555_v11, %v6335_v39  ;;  %v3586_v3 = vadd.s32 127, %v3585_v15  ;;  %v3775_v27 = vadd.s32 1, %v7328_v19  ;;  %vm2772_vm11 = vcmp.lt.s32.totalorder %v2771_v0, 2 }
 0x4ac   :  { %vm2773_vm0 = vcmp.eq.s32.totalorder %v2771_v0, 0  ;;  %vm2776_vm8 = vcmp.eq.s32.totalorder %v2771_v0, 2  ;;  %v2558_v53 = vsel %vm6548_vm9, 0, %v2556_v50  ;;  %v3584_v55 = vor.u32 %v3583_v33, %v3582_v12  ;;  %v7887_v12 = vld [vmem:[#allocation14_spill] sm:$0xff] }
 0x4ad   :  { %v3587_v52 = vshll.u32 %v3586_v3, 23  ;;  %v3776_v34 = vsel %vm3774_vm15, %v3775_v27, %v7328_v19  ;;  %v2775_v5 = vsel %vm2773_vm0, %v6885_v49, %v2774_v61  ;;  %vm3511_vm10 = vcmp.lt.s32.totalorder %v7089_v63, 0 }
 0x4ae   :  { %v3777_v39 = vadd.s32 %v3776_v34, %v3772_v24  ;;  %v2778_v7 = vsel %vm2776_vm8, %v2777_v2, %v6906_v57  ;;  %v2562_v60 = vadd.s32 3, %v2558_v53  ;;  %v2566_v1 = vxor.u32 2147483648, %v7879_v45  ;;  %v7886_v2 = vld [vmem:[#allocation19_spill] sm:$0xff] }
 0x4af   :  { %v3588_v59 = vor.u32 4788187, %v3587_v52  ;;  %v2779_v25 = vsel %vm2772_vm11, %v2775_v5, %v2778_v7  ;;  %v2569_v36 = vxor.u32 2147483648, %v7880_v56  ;;  %v2971_v41 = vsub.s32 4, %v7881_v30 }
 0x4b0   :  { %v7882_v18 = vand.u32 2147483647, %v7089_v63  ;;  %v7364_v49 = vadd.s32 %v7327_v58, %v7324_v9  ;;  %v3778_v40 = vadd.s32 536870912, %v3777_v39  ;;  %v2780_v57 = vsel %vm2769_vm6, nan, %v2779_v25  ;;  %v7890_v25 = vld [vmem:[#allocation7_spill] sm:$0xff] }
 0x4b1   :  { %v2563_v14 = vand.u32 3, %v2562_v60  ;;  %v3589_v32 = vand.u32 2147483647, %v3588_v59  ;;  %v3591_v19 = vcvt.s32.f32 %v3584_v55  ;;  %v4163_v31 = vpack.c.bf16 %v2780_v57, %v2364_v54 }
 0x4b2   :  { %vm7359_vm9 = vcmp.le.f32.partialorder %v7882_v18, 0.7853982  ;;  %vm7885_vm2 = vcmp.lt.s32.totalorder %v6490_v10, 0  ;;  %v7371_v24 = vshrl.u32 %v3778_v40, 30  ;;  %vm2561_vm6 = vweird.f32 %v7876_v42  ;;  %v7892_v40 = vld [vmem:[#allocation30_spill] sm:$0xff] }
 0x4b3   :  { %v2972_v62 = vsel %vm7885_vm2, %v2971_v41, %v7881_v30  ;;  %vm2564_vm3 = vcmp.lt.s32.totalorder %v2563_v14, 2  ;;  %vm2565_vm15 = vcmp.eq.s32.totalorder %v2563_v14, 0  ;;  %vm2568_vm4 = vcmp.eq.s32.totalorder %v2563_v14, 2  ;;  %4164 = vmatprep.subr.bf16.mxu0 %v4163_v31  ;;  %v7894_v31 = vld [vmem:[#allocation27_spill] sm:$0xff] }
 0x4b4   :  { %v3592_v11 = vmul.f32 %v3591_v19, %v3589_v32  ;;  %v2567_v9 = vsel %vm2565_vm15, %v7880_v56, %v2566_v1  ;;  %v2570_v46 = vsel %vm2568_vm4, %v2569_v36, %v7879_v45  ;;  %v2974_v58 = vsel %vm6900_vm1, 0, %v2972_v62  ;;  %v7891_v36 = vld [vmem:[#allocation8_spill] sm:$0xff]  ;;  %v7893_v32 = vld [vmem:[#allocation23_spill] sm:$0xff] }
 0x4b5   :  { %v3780_v6 = vshll.u32 %v7371_v24, 30  ;;  %v2571_v15 = vsel %vm2564_vm3, %v2567_v9, %v2570_v46  ;;  %v2978_v0 = vadd.s32 3, %v2974_v58  ;;  %v2982_v54 = vxor.u32 2147483648, %v7030_v21  ;;  %v7895_v9 = vld [vmem:[#allocation26_spill] sm:$0xff] }
 0x4b6   :  { %v3593_v61 = vxor.u32 2147483648, %v3592_v11  ;;  %v2985_v50 = vxor.u32 2147483648, %v7886_v2  ;;  %v2251_v33 = vand.u32 3, %v7887_v12  ;;  %v2254_v53 = vxor.u32 2147483648, %v7888_v17  ;;  %v7899_v12 = vld [vmem:[#allocation32_spill] sm:$0xff] }
 0x4b7   :  { %v7382_v3 = vsub.s32 %v3777_v39, %v3780_v6  ;;  %v2979_v27 = vand.u32 3, %v2978_v0  ;;  %v2257_v55 = vxor.u32 2147483648, %v7889_v28  ;;  %v2572_v42 = vsel %vm2561_vm6, nan, %v2571_v15  ;;  %v7897_v15 = vld [vmem:[#allocation10_spill] sm:$0xff] }
 0x4b8   :  { %v3594_v52 = vsel %vm3511_vm10, %v3593_v61, %v3592_v11  ;;  %vm2977_vm1 = vweird.f32 %v6490_v10  ;;  %vm2252_vm11 = vcmp.lt.s32.totalorder %v2251_v33, 2  ;;  %vm2253_vm8 = vcmp.eq.s32.totalorder %v2251_v33, 0  ;;  %v7896_v10 = vld [vmem:[#allocation11_spill] sm:$0xff] }
 0x4b9   :  { %v3783_v34 = vsub.s32 0, %v7382_v3  ;;  %vm2981_vm0 = vcmp.eq.s32.totalorder %v2979_v27, 0  ;;  %vm2256_vm2 = vcmp.eq.s32.totalorder %v2251_v33, 2  ;;  %v3597_v5 = vsel %vm7359_vm9, %v7089_v63, %v3594_v52  ;;  %v7898_v61 = vld [vmem:[#allocation15_spill] sm:$0xff] }
 0x4ba   :  { %v2983_v39 = vsel %vm2981_vm0, %v7886_v2, %v2982_v54  ;;  %vm2984_vm3 = vcmp.eq.s32.totalorder %v2979_v27, 2  ;;  %v2255_v7 = vsel %vm2253_vm8, %v7889_v28, %v2254_v53  ;;  %vm2980_vm15 = vcmp.lt.s32.totalorder %v2979_v27, 2 }
 0x4bb   :  { %v4142_v60 = vmin.u32 %v3783_v34, %v7382_v3  ;;  %v2986_v45 = vsel %vm2984_vm3, %v2985_v50, %v7030_v21  ;;  %v2258_v1 = vsel %vm2256_vm2, %v2257_v55, %v7888_v17  ;;  %vm2249_vm4 = vweird.f32 %v7890_v25  ;;  %v7901_v25 = vld [vmem:[#allocation9_spill] sm:$0xff] }
 0x4bc   :  { %v2987_v59 = vsel %vm2980_vm15, %v2983_v39, %v2986_v45  ;;  %v2259_v56 = vsel %vm2252_vm11, %v2255_v7, %v2258_v1  ;;  %v2667_v30 = vand.u32 3, %v7891_v36  ;;  %4436 = vcosq.f32 %v3597_v5  ;;  %v7900_v7 = vld [vmem:[#allocation6_spill] sm:$0xff]  ;;  %v7902_v36 = vld [vmem:[#allocation21_spill] sm:$0xff] }
 0x4bd   :  { %v3785_v41 = vclz %v4142_v60  ;;  %v2988_v18 = vsel %vm2977_vm1, nan, %v2987_v59  ;;  %v2670_v57 = vxor.u32 2147483648, %v7892_v40  ;;  %4438 = vsinq.f32 %v3597_v5 }
 0x4be   :  { %v4171_v14 = vpack.c.bf16 %v2988_v18, %v2572_v42  ;;  %vm2665_vm6 = vweird.f32 %v7893_v32  ;;  %vm2669_vm0 = vcmp.eq.s32.totalorder %v2667_v30, 0  ;;  %v2260_v19 = vsel %vm2249_vm4, nan, %v2259_v56 }
 0x4bf   :  { %v4143_v21 = vadd.s32 4294967294, %v3785_v41  ;;  %v2671_v62 = vsel %vm2669_vm0, %v7894_v31, %v2670_v57  ;;  %v2673_v11 = vxor.u32 2147483648, %v7894_v31  ;;  %vm2668_vm11 = vcmp.lt.s32.totalorder %v2667_v30, 2  ;;  %v7906_v57 = vld [vmem:[#allocation22_spill] sm:$0xff] }
 0x4c0   :  { %4172 = vmatprep.subr.bf16.mxu1 %v4171_v14  ;;  %vm2672_vm8 = vcmp.eq.s32.totalorder %v2667_v30, 2  ;;  %v2459_v46 = vand.u32 3, %v7895_v9  ;;  %v2462_v58 = vxor.u32 2147483648, %v7896_v10  ;;  %v2465_v0 = vxor.u32 2147483648, %v7897_v15 }
 0x4c1   :  { %vm4144_vm1 = vcmp.lt.s32.totalorder %v4143_v21, 0  ;;  %v2674_v6 = vsel %vm2672_vm8, %v2673_v11, %v7892_v40  ;;  %v2875_v54 = vand.u32 3, %v7898_v61  ;;  %v2878_v33 = vxor.u32 2147483648, %v7899_v12 }
 0x4c2   :  { %v3788_v2 = vsel %vm4144_vm1, 0, %v4143_v21  ;;  %v2675_v50 = vsel %vm2668_vm11, %v2671_v62, %v2674_v6  ;;  %vm2460_vm2 = vcmp.lt.s32.totalorder %v2459_v46, 2  ;;  %vm2461_vm3 = vcmp.eq.s32.totalorder %v2459_v46, 0 }
 0x4c3   :  { %v3789_v27 = vsub.s32 32, %v3788_v2  ;;  %v3793_v17 = vsub.s32 4294967266, %v3788_v2  ;;  %v2676_v53 = vsel %vm2665_vm6, nan, %v2675_v50  ;;  %v3790_v28 = vshll.u32 %v7382_v3, %v3788_v2 }
 0x4c4   :  { %v4165_v55 = vpack.c.bf16 %v2676_v53, %v2260_v19  ;;  %v2463_v52 = vsel %vm2461_vm3, %v7897_v15, %v2462_v58  ;;  %vm2464_vm15 = vcmp.eq.s32.totalorder %v2459_v46, 2  ;;  %vm2877_vm4 = vcmp.eq.s32.totalorder %v2875_v54, 0 }
 0x4c5   :  { %v3791_v42 = vshrl.u32 %v7364_v49, %v3789_v27  ;;  %v3794_v34 = vadd.s32 127, %v3793_v17  ;;  %v2466_v5 = vsel %vm2464_vm15, %v2465_v0, %v7896_v10  ;;  %4440 = vcosq.f32 %v7334_v4  ;;  %v7910_v17 = vld [vmem:[#allocation41_spill] sm:$0xff] }
 0x4c6   :  { %4166 = vmatpush1.bf16.msra.mxu0 %v4165_v55  ;;  %v2467_v39 = vsel %vm2460_vm2, %v2463_v52, %v2466_v5  ;;  %v2879_v60 = vsel %vm2877_vm4, %v7900_v7, %v2878_v33  ;;  %v2881_v45 = vxor.u32 2147483648, %v7900_v7  ;;  %v7422_v3 = vpop.eup %4436  ;;  %vm2880_vm6 = vcmp.eq.s32.totalorder %v2875_v54, 2 }
 0x4c7   :  { %v3792_v1 = vor.u32 %v3791_v42, %v3790_v28  ;;  %v3795_v59 = vshll.u32 %v3794_v34, 23  ;;  %v3179_v49 = vsub.s32 4, %v7901_v25  ;;  %v4439_v56 = vpop.eup %4438  ;;  %4442 = vsinq.f32 %v7334_v4  ;;  %v7923_v42 = vld [vmem:[#allocation35_spill] sm:$0xff] }
 0x4c8   :  { %vm3719_vm0 = vcmp.lt.s32.totalorder %v7111_v51, 0  ;;  %vm2457_vm11 = vweird.f32 %v7902_v36  ;;  %vm2876_vm8 = vcmp.lt.s32.totalorder %v2875_v54, 2  ;;  %v2882_v30 = vsel %vm2880_vm6, %v2881_v45, %v7899_v12  ;;  %v7908_v12 = vld [vmem:[#allocation29_spill] sm:$0xff] }
 0x4c9   :  { %v7903_v41 = vand.u32 2147483647, %v7111_v51  ;;  %v3796_v40 = vor.u32 4788187, %v3795_v59  ;;  %vm2873_vm2 = vweird.f32 %v7906_v57  ;;  %v2883_v14 = vsel %vm2876_vm8, %v2879_v60, %v2882_v30  ;;  %v7912_v60 = vld [vmem:[#allocation40_spill] sm:$0xff] }
 0x4ca   :  { %vm7907_vm3 = vcmp.lt.s32.totalorder %v6794_v23, 0  ;;  %v2468_v32 = vsel %vm2457_vm11, nan, %v2467_v39  ;;  %v2884_v21 = vsel %vm2873_vm2, nan, %v2883_v14  ;;  %v3595_v31 = vsub.s32 4, %v7283_v13 }
 0x4cb   :  { %vm7431_vm1 = vcmp.le.f32.partialorder %v7903_v41, 0.7853982  ;;  %v3180_v4 = vsel %vm7907_vm3, %v3179_v49, %v7901_v25  ;;  %v3797_v62 = vand.u32 2147483647, %v3796_v40  ;;  %v3799_v11 = vcvt.s32.f32 %v3792_v1 }
 0x4cc   :  { %v3182_v19 = vsel %vm7080_vm7, 0, %v3180_v4  ;;  %v4173_v9 = vpack.c.bf16 %v2884_v21, %v2468_v32  ;;  %vm3185_vm15 = vweird.f32 %v6794_v23  ;;  %v3190_v10 = vxor.u32 2147483648, %v7207_v43  ;;  %v7916_v23 = vld [vmem:[#allocation39_spill] sm:$0xff] }
 0x4cd   :  { %v3186_v46 = vadd.s32 3, %v3182_v19  ;;  %v3193_v58 = vxor.u32 2147483648, %v7183_v26  ;;  %v3596_v6 = vsel %vm3511_vm10, %v3595_v31, %v7283_v13  ;;  %v3387_v15 = vsub.s32 4, %v7021_v44  ;;  %v7918_v19 = vld [vmem:[#allocation34_spill] sm:$0xff] }
 0x4ce   :  { %v3800_v20 = vmul.f32 %v3799_v11, %v3797_v62  ;;  %4174 = vmatpush1.bf16.msra.mxu1 %v4173_v9  ;;  %v3598_v61 = vsel %vm7359_vm9, 0, %v3596_v6  ;;  %vm3601_vm7 = vweird.f32 %v7089_v63  ;;  %v3606_v54 = vxor.u32 2147483648, %v4439_v56  ;;  %v7919_v62 = vld [vmem:[#allocation36_spill] sm:$0xff]  ;;  %v7920_v9 = vld [vmem:[#allocation33_spill] sm:$0xff] }
 0x4cf   :  { %v3187_v0 = vand.u32 3, %v3186_v46  ;;  %v3602_v2 = vadd.s32 3, %v3598_v61  ;;  %v3609_v50 = vxor.u32 2147483648, %v7422_v3  ;;  %vm7909_vm4 = vcmp.lt.s32.totalorder %v7908_v12, 0  ;;  %v7458_v28 = vpop.eup %4440 }
 0x4d0   :  { %v3388_v33 = vsel %vm7909_vm4, %v3387_v15, %v7021_v44  ;;  %v3803_v13 = vsub.s32 4, %v7371_v24  ;;  %v3801_v27 = vxor.u32 2147483648, %v3800_v20  ;;  %v3398_v53 = vxor.u32 2147483648, %v7910_v17 }
 0x4d1   :  { %vm3189_vm10 = vcmp.eq.s32.totalorder %v3187_v0, 0  ;;  %vm3192_vm6 = vcmp.eq.s32.totalorder %v3187_v0, 2  ;;  %v3603_v52 = vand.u32 3, %v3602_v2  ;;  %v3390_v34 = vsel %vm7133_vm12, 0, %v3388_v33  ;;  %v7469_v7 = vpop.eup %4442 }
 0x4d2   :  { %v3191_v47 = vsel %vm3189_vm10, %v7183_v26, %v3190_v10  ;;  %v3194_v55 = vsel %vm3192_vm6, %v3193_v58, %v7207_v43  ;;  %v3802_v44 = vsel %vm3719_vm0, %v3801_v27, %v3800_v20  ;;  %vm3188_vm9 = vcmp.lt.s32.totalorder %v3187_v0, 2 }
 0x4d3   :  { %v3394_v5 = vadd.s32 3, %v3390_v34  ;;  %v3804_v39 = vsel %vm3719_vm0, %v3803_v13, %v7371_v24  ;;  %v3805_v26 = vsel %vm7431_vm1, %v7111_v51, %v3802_v44  ;;  %v3195_v43 = vsel %vm3188_vm9, %v3191_v47, %v3194_v55 }
 0x4d4   :  { %vm3605_vm11 = vcmp.eq.s32.totalorder %v3603_v52, 0  ;;  %v3401_v45 = vxor.u32 2147483648, %v7912_v60  ;;  %4444 = vcosq.f32 %v3805_v26  ;;  %vm3608_vm12 = vcmp.eq.s32.totalorder %v3603_v52, 2 }
 0x4d5   :  { %v3607_v1 = vsel %vm3605_vm11, %v7422_v3, %v3606_v54  ;;  %v3395_v59 = vand.u32 3, %v3394_v5  ;;  %4446 = vsinq.f32 %v3805_v26  ;;  %vm3604_vm8 = vcmp.lt.s32.totalorder %v3603_v52, 2  ;;  %v7922_v54 = vld [vmem:[#allocation38_spill] sm:$0xff] }
 0x4d6   :  { %v3610_v25 = vsel %vm3608_vm12, %v3609_v50, %v4439_v56  ;;  %v3806_v24 = vsel %vm7431_vm1, 0, %v3804_v39  ;;  %v3196_v49 = vsel %vm3185_vm15, nan, %v3195_v43  ;;  %v7914_v56 = vld [vmem:[#allocation37_spill] sm:$0xff]  ;;  %v7917_v4 = vsel %vm7146_vm5, 0, %v7916_v23 }
 0x4d7   :  { %v3611_v36 = vsel %vm3604_vm8, %v3607_v1, %v3610_v25  ;;  %vm3397_vm0 = vcmp.eq.s32.totalorder %v3395_v59, 0  ;;  %vm3400_vm2 = vcmp.eq.s32.totalorder %v3395_v59, 2  ;;  %v3810_v40 = vadd.s32 3, %v3806_v24  ;;  %v3821_v1 = vld [vmem:[%s7551_s5] sm:$0x7]  ;;  %s4481_s5 = smov [#allocation2]  }
 0x4d8   :  { %v3612_v30 = vsel %vm3601_vm7, nan, %v3611_v36  ;;  %v3399_v41 = vsel %vm3397_vm0, %v7912_v60, %v3398_v53  ;;  %v3402_v3 = vsel %vm3400_vm2, %v3401_v45, %v7910_v17  ;;  %v7915_v14 = vsel %vm6955_vm13, 0, %v7914_v56  ;;  %s3989_s9 = sshll.u32 %s4481_s5, 4  ;;  %s3990_s9 = int_to_ptr.vmem [resolvable:$true] %s3989_s9 }
 0x4d9   :  { %v3290_v18 = vadd.s32 3, %v7915_v14  ;;  %v3498_v32 = vadd.s32 3, %v7917_v4  ;;  %v4167_v21 = vpack.c.bf16 %v3612_v30, %v3196_v49  ;;  %v3083_v31 = vand.u32 3, %v7918_v19  ;;  %s4448_s10 = scalar_lea.vmem %s3990_s9, 256  ;;  %p4453_p1 = scmp.lt.s32.totalorder %s3990_s9, %s3990_s9 }
 0x4da   :  { %vm3396_vm1 = vcmp.lt.s32.totalorder %v3395_v59, 2  ;;  %v3811_v63 = vand.u32 3, %v3810_v40  ;;  %v3086_v11 = vxor.u32 2147483648, %v7919_v62  ;;  %v3089_v46 = vxor.u32 2147483648, %v7920_v9  ;;  %p4449_p0 = scmp.ne.s32.totalorder %s3990_s9, %s4448_s10  ;;  %p4454_p2 = scmp.lt.s32.totalorder %s4448_s10, %s4448_s10 }
 0x4db   :  { %v3706_v10 = vadd.s32 3, %v3702_v29  ;;  %4168 = vmatprep.subr.bf16.mxu0 %v4167_v21  ;;  %v3403_v58 = vsel %vm3396_vm1, %v3399_v41, %v3402_v3  ;;  %vm3081_vm13 = vweird.f32 %v7921_v35  ;;  %vm3085_vm5 = vcmp.eq.s32.totalorder %v3083_v31, 0  ;;  %v3826_v3 = vpop.permute.xlu0 %3825 }
 0x4dc   :  { %vm3393_vm3 = vweird.f32 %v7908_v12  ;;  %vm3809_vm15 = vweird.f32 %v7111_v51  ;;  %vm3084_vm7 = vcmp.lt.s32.totalorder %v3083_v31, 2  ;;  %v3087_v6 = vsel %vm3085_vm5, %v7920_v9, %v3086_v11  ;;  %v7924_v12 = vld [vmem:[#allocation25_spill] sm:$0xff]  ;;  %p4455_p3 = por %p4454_p2, %p4453_p1 }
 0x4dd   :  { %vm3088_vm4 = vcmp.eq.s32.totalorder %v3083_v31, 2  ;;  %vm3497_vm10 = vweird.f32 %v6862_v38  ;;  %v3499_v15 = vand.u32 3, %v3498_v32  ;;  %v3502_v22 = vxor.u32 2147483648, %v7304_v8 }
 0x4de   :  { %v3090_v48 = vsel %vm3088_vm4, %v3089_v46, %v7919_v62  ;;  %v3505_v29 = vxor.u32 2147483648, %v7301_v37  ;;  %vm3812_vm14 = vcmp.lt.s32.totalorder %v3811_v63, 2  ;;  %vm3813_vm6 = vcmp.eq.s32.totalorder %v3811_v63, 0  ;;  %v4445_v61 = vpop.eup %4444  ;;  %p4456_p4 = pnand %p4455_p3, %p4449_p0 }
 0x4df   :  { %v3091_v20 = vsel %vm3084_vm7, %v3087_v6, %v3090_v48  ;;  %v3291_v0 = vand.u32 3, %v3290_v18  ;;  %vm3816_vm9 = vcmp.eq.s32.totalorder %v3811_v63, 2  ;;  %vm3501_vm11 = vcmp.eq.s32.totalorder %v3499_v15, 0  ;;  %v4447_v50 = vpop.eup %4446 }
 0x4e0   :  { %vm3504_vm12 = vcmp.eq.s32.totalorder %v3499_v15, 2  ;;  %v3294_v2 = vxor.u32 2147483648, %v7922_v54  ;;  %v3817_v33 = vxor.u32 2147483648, %v4445_v61  ;;  %vm3500_vm8 = vcmp.lt.s32.totalorder %v3499_v15, 2 }
 0x4e1   :  { %v3503_v13 = vsel %vm3501_vm11, %v7301_v37, %v3502_v22  ;;  %v3506_v27 = vsel %vm3504_vm12, %v3505_v29, %v7304_v8  ;;  %v3814_v17 = vxor.u32 2147483648, %v4447_v50  ;;  %v3092_v53 = vsel %vm3081_vm13, nan, %v3091_v20 }
 0x4e2   :  { %v3507_v47 = vsel %vm3500_vm8, %v3503_v13, %v3506_v27  ;;  %vm3293_vm0 = vcmp.eq.s32.totalorder %v3291_v0, 0  ;;  %v3818_v55 = vsel %vm3816_vm9, %v3817_v33, %v4447_v50  ;;  %vm3296_vm2 = vcmp.eq.s32.totalorder %v3291_v0, 2 }
 0x4e3   :  { %v3508_v52 = vsel %vm3497_vm10, nan, %v3507_v47  ;;  %v3297_v34 = vxor.u32 2147483648, %v7923_v42  ;;  %v3815_v44 = vsel %vm3813_vm6, %v4445_v61, %v3814_v17  ;;  %v3295_v37 = vsel %vm3293_vm0, %v7923_v42, %v3294_v2 }
 0x4e4   :  { %v4169_v5 = vpack.c.bf16 %v3508_v52, %v3092_v53  ;;  %v3707_v39 = vand.u32 3, %v3706_v10  ;;  %v3819_v8 = vsel %vm3812_vm14, %v3815_v44, %v3818_v55  ;;  %v3710_v43 = vxor.u32 2147483648, %v7469_v7 }
 0x4e5   :  { %v3298_v26 = vsel %vm3296_vm2, %v3297_v34, %v7922_v54  ;;  %v3713_v60 = vxor.u32 2147483648, %v7458_v28  ;;  %v3404_v38 = vsel %vm3393_vm3, nan, %v3403_v58  ;;  %v3820_v45 = vsel %vm3809_vm15, nan, %v3819_v8 }
 0x4e6   :  { %4170 = vmatpush1.bf16.msra.mxu0 %v4169_v5  ;;  %vm3292_vm1 = vcmp.lt.s32.totalorder %v3291_v0, 2  ;;  %vm3709_vm13 = vcmp.eq.s32.totalorder %v3707_v39, 0  ;;  %v4175_v59 = vpack.c.bf16 %v3820_v45, %v3404_v38  ;;  %vm3712_vm5 = vcmp.eq.s32.totalorder %v3707_v39, 2 }
 0x4e7   :  { %v3299_v25 = vsel %vm3292_vm1, %v3295_v37, %v3298_v26  ;;  %v3711_v24 = vsel %vm3709_vm13, %v7458_v28, %v3710_v43  ;;  %vm3708_vm7 = vcmp.lt.s32.totalorder %v3707_v39, 2  ;;  %v3714_v49 = vsel %vm3712_vm5, %v3713_v60, %v7469_v7 }
 0x4e8   :  { %4176 = vmatprep.subr.bf16.mxu1 %v4175_v59  ;;  %vm3289_vm3 = vweird.f32 %v7924_v12  ;;  %vm3705_vm15 = vweird.f32 %v6994_v16  ;;  %v3715_v51 = vsel %vm3708_vm7, %v3711_v24, %v3714_v49  ;;  %vm7925_vm4 = vcmask 261120  }
 0x4e9   :  { %4145 = vmatmul.mubr.msk.f32.vlgmr.msra.gmra.mrb[16].mxu0 %vm7925_vm4, %v3821_v1  ;;  %v3300_v36 = vsel %vm3289_vm3, nan, %v3299_v25  ;;  %v3716_v30 = vsel %vm3705_vm15, nan, %v3715_v51  ;;  %vm7926_vm10 = vmmov %vm7925_vm4 }
 0x4ea   :  { %v4177_v41 = vpack.c.bf16 %v3716_v30, %v3300_v36 }
 0x4ec   :  { %4178 = vmatpush1.bf16.msra.mxu1 %v4177_v41 }
 0x4ef   :  { %4146 = vmatmul.mubr.msk.f32.vlgmr.msra.gmra.mrb[16].mxu1 %vm7926_vm10, %v3821_v1 }
 0x5bc   :  { %v3897_v28 = vpop.f32.mrb[16].mxu0 }
 0x5bd   :  { %v3898_v40 = vadd.f32 %v3897_v28, %v3826_v3  ;;  %v3899_v57 = vpop.f32.mrb[17].mxu0 }
 0x5be   :  { %v3900_v56 = vadd.f32 %v3899_v57, %v3826_v3 }
 0x5c0   :  { %v3977_v7 = vcombine.low %v3898_v40, %v3900_v56 }
 0x5c2   :  { %3981 = vst [vmem:[#allocation2] sm:$0x77] %v3977_v7  ;;  %v3968_v14 = vpop.f32.mrb[16].mxu1 }
 0x5c3   :  { %v3969_v18 = vadd.f32 %v3968_v14, %v3826_v3  ;;  %v3970_v23 = vpop.f32.mrb[17].mxu1 }
 0x5c4   :  { %v3971_v16 = vadd.f32 %v3970_v23, %v3826_v3 }
 0x5c6   :  { %v3978_v4 = vcombine.low %v3969_v18, %v3971_v16 }
 0x5c8   :  { %3982 = vst [vmem:[#allocation2 + $0x8] sm:$0x77] %v3978_v4 }
 0x5c9   :  { %4459 = shalt.err (!%p4456_p4)
}
 0x5ca   :  { %s4460_s13 = scalar_lea.hbm %s7553_s7, 256 }
 0x5cb   :  { %p4461_p5 = scmp.ne.s32.totalorder %s7553_s7, %s4460_s13  ;;  %p4464_p6 = scmp.lt.u32.totalorder %s4460_s13, %s7553_s7 }
 0x5cd   :  { %p4466_p7 = pnand %p4464_p6, %p4461_p5 }
 0x5cf   :  { %4469 = shalt.err (!%p4466_p7)
}
 0x5d0   :  { %3992 = dma.vmem_to_hbm [thread:$0]  %s3990_s9, 256, %s7553_s7, [#allocation3]  }
 0x5d1   :  { %4470 = dma.done.wait [#allocation3], 256  }
 0x5d2   :  { %4471 = vsyncadd [#allocation3], 4294967040 }
 0x5d3   :  { %3996 = vsyncpa [#allocation3], 1 }

</bundles_post_ra>
